<compile_context>
chip_gen: v6e
topology: v6e:2x2x1
jax: 0.10.0
libtpu: 0.0.40
codegen_flags: <defaults>
</compile_context>

<pallas_src>
import functools

import numpy as np
import jax
import jax.numpy as jnp
from jax import lax
from jax.experimental import pallas as pl
from jax.experimental.pallas import tpu as pltpu


# --------------------------------------------------------------------------------------
# Kernel
# --------------------------------------------------------------------------------------
def _spade_kernel(x_ref, im2col_ref, w1_ref, b1_ref, w2_ref, b2_ref, pn_ref,
                  o_ref, *, H, W, C, eps):
    """One batch element, everything in (H*W, channels) lane-dense layout.

    x_ref      : (1, HW, C)        normalized-input operand (NCHW -> (HW, C) in glue)
    im2col_ref : (1, HW, Cl*9)     resized+reflect-padded 3x3 taps of cond (glue)
    w1_ref     : (Cl*9, 128)       mlp_shared conv weights  (matmul layout)
    b1_ref     : (1, 128)
    w2_ref     : (9, 128, 2*C)     mlp_gamma | mlp_beta weights, per tap
    b2_ref     : (1, 2*C)
    pn_ref     : (C, C)            group-averaging matrix (1/(group_size*HW) inside group)
    o_ref      : (1, HW, C)
    """
    f32 = jnp.float32
    HW = H * W

    # ---- GroupNorm(x), affine=False: stats via one tiny group-average matmul ----------
    x = x_ref[0]                                                         # (HW, C)
    mean = jnp.sum(jnp.dot(x, pn_ref[...], preferred_element_type=f32),
                   axis=0, keepdims=True)                                # (1, C) group mean
    ex2 = jnp.sum(jnp.dot(x * x, pn_ref[...], preferred_element_type=f32),
                  axis=0, keepdims=True)                                 # (1, C) group E[x^2]
    var = ex2 - mean * mean
    x_hat = (x - mean) * lax.rsqrt(var + eps)

    # ---- mlp_shared: 3x3 reflect conv + ReLU as a single MXU matmul -------------------
    a = jnp.dot(im2col_ref[0], w1_ref[...], preferred_element_type=f32)  # (HW, 128)
    a = jnp.maximum(a + b1_ref[...], 0.0)

    # ---- reflect-pad rows of actv: image rows are contiguous, aligned W-row blocks ----
    a_rp = jnp.concatenate(
        [a[W:2 * W], a, a[(H - 2) * W:(H - 1) * W]], axis=0)             # ((H+2)*W, 128)
    npad = (H + 2) * W

    # ---- column (w) shifts with reflect: 2 shifted copies + masked edge corrections ---
    s_m = jnp.concatenate([a_rp[0:1], a_rp[:npad - 1]], axis=0)          # [i] = a_rp[i-1]
    s_p = jnp.concatenate([a_rp[1:], a_rp[npad - 1:]], axis=0)           # [i] = a_rp[i+1]
    w_idx = lax.broadcasted_iota(jnp.int32, (npad, 1), 0) % W
    col = (jnp.where(w_idx == 0, s_p, s_m),       # kw=0 : column w-1 (reflected at w=0)
           a_rp,                                  # kw=1 : column w
           jnp.where(w_idx == W - 1, s_m, s_p))   # kw=2 : column w+1 (reflected at w=W-1)

    # ---- mlp_gamma & mlp_beta fused: 9 accumulated MXU matmuls ------------------------
    gb = jnp.zeros((HW, 2 * C), dtype=f32)
    for kh in range(3):
        for kw in range(3):
            tap = col[kw][kh * W:kh * W + HW]                            # (HW, 128) aligned view
            gb = gb + jnp.dot(tap, w2_ref[kh * 3 + kw],
                              preferred_element_type=f32)
    gb = gb + b2_ref[...]
    gamma = gb[:, :C]
    beta = gb[:, C:]

    # ---- SPADE modulation --------------------------------------------------------------
    o_ref[0] = (x_hat * (1.0 + gamma) + beta).astype(o_ref.dtype)


# --------------------------------------------------------------------------------------
# Glue helpers
# --------------------------------------------------------------------------------------
def _bilinear_matrix(out_size, in_size):
    """Row-interpolation matrix matching F.interpolate(mode='bilinear', align_corners=False)."""
    scale = in_size / out_size
    i = np.arange(out_size)
    src = np.maximum((i + 0.5) * scale - 0.5, 0.0)
    i0f = np.floor(src)
    frac = src - i0f
    i0 = np.minimum(i0f.astype(np.int64), in_size - 1)
    i1 = np.minimum(i0 + 1, in_size - 1)
    m = np.zeros((out_size, in_size), np.float32)
    m[np.arange(out_size), i0] += (1.0 - frac)
    m[np.arange(out_size), i1] += frac
    return jnp.asarray(m)


def spade_group_norm_forward(x, cond, w1, b1, wg, bg, wb, bb, *, num_groups, eps=1e-5):
    """JAX/Pallas equivalent of SPADEGroupNorm.forward (NCHW in, NCHW out)."""
    f32 = jnp.float32
    N, C, H, W = x.shape
    HW = H * W
    Cl = cond.shape[1]
    nh = w1.shape[0]                       # nhidden = 128 in the module
    assert C % num_groups == 0
    assert wg.shape == (C, nh, 3, 3) and wb.shape == (C, nh, 3, 3)

    # --- glue: bilinear resize (as matrices) + 3x3 reflect im2col of the small cond ----
    rh = _bilinear_matrix(H, cond.shape[2])
    rw = _bilinear_matrix(W, cond.shape[3])
    cond_r = jnp.einsum('hH,ncHW,wW->nchw', rh, cond.astype(f32), rw)    # (N, Cl, H, W)
    cond_pad = jnp.pad(cond_r, ((0, 0), (0, 0), (1, 1), (1, 1)), mode='reflect')
    taps = [cond_pad[:, :, kh:kh + H, kw:kw + W]
            for kh in range(3) for kw in range(3)]                       # 9 x (N, Cl, H, W)
    im2col = jnp.stack(taps, axis=2).reshape(N, Cl * 9, HW).transpose(0, 2, 1)  # (N, HW, Cl*9)

    # --- glue: repack weights into matmul layout ---------------------------------------
    w1m = w1.astype(f32).transpose(1, 2, 3, 0).reshape(Cl * 9, nh)       # [(c,kh,kw), co]
    b1v = b1.astype(f32).reshape(1, nh)
    w2g = wg.astype(f32).transpose(2, 3, 1, 0).reshape(9, nh, C)         # [t, ci, co]
    w2b = wb.astype(f32).transpose(2, 3, 1, 0).reshape(9, nh, C)
    w2m = jnp.concatenate([w2g, w2b], axis=-1)                           # (9, nh, 2C)
    b2v = jnp.concatenate([bg, bb]).astype(f32).reshape(1, 2 * C)

    # group-averaging matrix for GroupNorm stats
    gs = C // num_groups
    gid = np.arange(C) // gs
    pn = jnp.asarray((gid[:, None] == gid[None, :]).astype(np.float32) / (gs * HW))

    # x in (N, HW, C) so the epilogue matches the (HW, channels) conv layout
    x_t = x.astype(f32).reshape(N, C, HW).transpose(0, 2, 1)

    kernel = functools.partial(_spade_kernel, H=H, W=W, C=C, eps=float(eps))
    out = pl.pallas_call(
        kernel,
        out_shape=jax.ShapeDtypeStruct((N, HW, C), f32),
        grid=(N,),
        in_specs=[
            pl.BlockSpec((1, HW, C), lambda b: (b, 0, 0)),
            pl.BlockSpec((1, HW, Cl * 9), lambda b: (b, 0, 0)),
            pl.BlockSpec((Cl * 9, nh), lambda b: (0, 0)),
            pl.BlockSpec((1, nh), lambda b: (0, 0)),
            pl.BlockSpec((9, nh, 2 * C), lambda b: (0, 0, 0)),
            pl.BlockSpec((1, 2 * C), lambda b: (0, 0)),
            pl.BlockSpec((C, C), lambda b: (0, 0)),
        ],
        out_specs=pl.BlockSpec((1, HW, C), lambda b: (b, 0, 0)),
        compiler_params=pltpu.CompilerParams(dimension_semantics=("parallel",)),
    )(x_t, im2col, w1m, b1v, w2m, b2v, pn)
    # TODO(synk): for production H*W, additionally tile the grid over spatial row blocks
    # (with a 1-row halo) to deepen the software pipeline beyond the batch axis.

    return out.transpose(0, 2, 1).reshape(N, C, H, W)


# --------------------------------------------------------------------------------------
# Pure-JAX reference (PyTorch semantics) for the correctness check
# --------------------------------------------------------------------------------------
def _reference(x, cond, w1, b1, wg, bg, wb, bb, *, num_groups, eps=1e-5):
    N, C, H, W = x.shape
    xg = x.reshape(N, num_groups, -1)
    mean = xg.mean(axis=2, keepdims=True)
    var = xg.var(axis=2, keepdims=True)          # biased, like nn.GroupNorm
    x_n = ((xg - mean) / jnp.sqrt(var + eps)).reshape(x.shape)

    rh = _bilinear_matrix(H, cond.shape[2])
    rw = _bilinear_matrix(W, cond.shape[3])
    cond_r = jnp.einsum('hH,ncHW,wW->nchw', rh, cond.astype(jnp.float32), rw)

    def conv_reflect(z, w, b):
        zp = jnp.pad(z, ((0, 0), (0, 0), (1, 1), (1, 1)), mode='reflect')
        y = lax.conv_general_dilated(zp, w.astype(jnp.float32), (1, 1), 'VALID',
                                     dimension_numbers=('NCHW', 'OIHW', 'NCHW'))
        return y + b.astype(jnp.float32)[None, :, None, None]

    actv = jax.nn.relu(conv_reflect(cond_r, w1, b1))
    gamma = conv_reflect(actv, wg, bg)
    beta = conv_reflect(actv, wb, bb)
    return x_n * (1.0 + gamma) + beta


# --------------------------------------------------------------------------------------
if __name__ == "__main__":
    key = jax.random.PRNGKey(0)
    ks = jax.random.split(key, 8)

    N, C, H, W = 2, 32, 16, 16       # norm_nc = 32
    Cl, Hc, Wc = 4, 8, 8             # label_nc = 4, cond at half resolution
    nh = 128                         # nhidden (fixed by the module)
    num_groups = 8                   # normalization_fn = partial(nn.GroupNorm, 8)
    eps = 1e-5

    x = jax.random.normal(ks[0], (N, C, H, W), dtype=jnp.float32)
    cond = jax.random.normal(ks[1], (N, Cl, Hc, Wc), dtype=jnp.float32)

    def conv_init(kw_, kb_, cout, cin):
        fan_in = cin * 9
        bound = 1.0 / (fan_in ** 0.5)
        w = jax.random.uniform(kw_, (cout, cin, 3, 3), minval=-bound, maxval=bound,
                               dtype=jnp.float32)
        b = jax.random.uniform(kb_, (cout,), minval=-bound, maxval=bound,
                               dtype=jnp.float32)
        return w, b

    w1, b1 = conv_init(ks[2], ks[3], nh, Cl)     # mlp_shared conv
    wg, bg = conv_init(ks[4], ks[5], C, nh)      # mlp_gamma
    wb, bb = conv_init(ks[6], ks[7], C, nh)      # mlp_beta

    y = spade_group_norm_forward(x, cond, w1, b1, wg, bg, wb, bb,
                                 num_groups=num_groups, eps=eps)
    y = jax.block_until_ready(y)

    y_ref = _reference(x, cond, w1, b1, wg, bg, wb, bb, num_groups=num_groups, eps=eps)
    assert y.shape == (N, C, H, W), y.shape
    max_err = float(jnp.max(jnp.abs(y - y_ref)))
    assert jnp.allclose(y, y_ref, atol=1e-4, rtol=1e-4), max_err

    print("KERNEL_OK")
</pallas_src>

<mosaic_0001>
module attributes {stable_mosaic.version = 11 : i64} {
  func.func @_spade_kernel(%arg0: i32, %arg1: memref<1x256x32xf32, #tpu.memory_space<vmem>>, %arg2: memref<1x256x36xf32, #tpu.memory_space<vmem>>, %arg3: memref<36x128xf32, #tpu.memory_space<vmem>>, %arg4: memref<1x128xf32, #tpu.memory_space<vmem>>, %arg5: memref<9x128x64xf32, #tpu.memory_space<vmem>>, %arg6: memref<1x64xf32, #tpu.memory_space<vmem>>, %arg7: memref<32x32xf32, #tpu.memory_space<vmem>>, %arg8: memref<1x256x32xf32, #tpu.memory_space<vmem>>) attributes {dimension_semantics = [#tpu.dimension_semantics<parallel>], iteration_bounds = array<i64: 2>, scalar_prefetch = 0 : i64, scratch_operands = 0 : i64, tpu.core_type = #tpu.core_type<tc>, window_params = [{transform_indices = @transform_0, window_bounds = array<i64: 1, 256, 32>}, {transform_indices = @transform_1, window_bounds = array<i64: 1, 256, 36>}, {pipeline_mode = #tpu.pipeline_mode<synchronous>, transform_indices = @transform_2, window_bounds = array<i64: 36, 128>}, {pipeline_mode = #tpu.pipeline_mode<synchronous>, transform_indices = @transform_3, window_bounds = array<i64: 1, 128>}, {pipeline_mode = #tpu.pipeline_mode<synchronous>, transform_indices = @transform_4, window_bounds = array<i64: 9, 128, 64>}, {pipeline_mode = #tpu.pipeline_mode<synchronous>, transform_indices = @transform_5, window_bounds = array<i64: 1, 64>}, {pipeline_mode = #tpu.pipeline_mode<synchronous>, transform_indices = @transform_6, window_bounds = array<i64: 32, 32>}, {transform_indices = @transform_7, window_bounds = array<i64: 1, 256, 32>}]} {
    %c0 = arith.constant 0 : index
    %c0_0 = arith.constant 0 : index
    %c0_1 = arith.constant 0 : index
    %0 = vector.load %arg1[%c0, %c0_0, %c0_1] : memref<1x256x32xf32, #tpu.memory_space<vmem>>, vector<1x256x32xf32>
    %1 = vector.shape_cast %0 : vector<1x256x32xf32> to vector<256x32xf32>
    %c0_2 = arith.constant 0 : index
    %c0_3 = arith.constant 0 : index
    %2 = vector.load %arg7[%c0_2, %c0_3] : memref<32x32xf32, #tpu.memory_space<vmem>>, vector<32x32xf32>
    %cst = arith.constant dense<0.000000e+00> : vector<256x32xf32>
    %3 = tpu.matmul %1, %2, %cst {dimension_numbers = #tpu.dot_dimension_numbers<[1], [0], [0], [1], [0, 0, 1, 1], [], []>} : vector<256x32xf32>, vector<32x32xf32>, vector<256x32xf32> -> vector<256x32xf32>
    %cst_4 = arith.constant dense<0.000000e+00> : vector<32xf32>
    %4 = vector.multi_reduction <add>, %3, %cst_4 [0] : vector<256x32xf32> to vector<32xf32>
    %5 = vector.shape_cast %4 : vector<32xf32> to vector<1x32xf32>
    %6 = arith.mulf %1, %1 : vector<256x32xf32>
    %c0_5 = arith.constant 0 : index
    %c0_6 = arith.constant 0 : index
    %7 = vector.load %arg7[%c0_5, %c0_6] : memref<32x32xf32, #tpu.memory_space<vmem>>, vector<32x32xf32>
    %cst_7 = arith.constant dense<0.000000e+00> : vector<256x32xf32>
    %8 = tpu.matmul %6, %7, %cst_7 {dimension_numbers = #tpu.dot_dimension_numbers<[1], [0], [0], [1], [0, 0, 1, 1], [], []>} : vector<256x32xf32>, vector<32x32xf32>, vector<256x32xf32> -> vector<256x32xf32>
    %cst_8 = arith.constant dense<0.000000e+00> : vector<32xf32>
    %9 = vector.multi_reduction <add>, %8, %cst_8 [0] : vector<256x32xf32> to vector<32xf32>
    %10 = vector.shape_cast %9 : vector<32xf32> to vector<1x32xf32>
    %11 = arith.mulf %5, %5 : vector<1x32xf32>
    %12 = arith.subf %10, %11 : vector<1x32xf32>
    %13 = vector.broadcast %5 : vector<1x32xf32> to vector<256x32xf32>
    %14 = arith.subf %1, %13 : vector<256x32xf32>
    %cst_9 = arith.constant 9.99999974E-6 : f32
    %15 = vector.broadcast %cst_9 : f32 to vector<1x32xf32>
    %16 = arith.addf %12, %15 : vector<1x32xf32>
    %17 = math.rsqrt %16 : vector<1x32xf32>
    %18 = vector.broadcast %17 : vector<1x32xf32> to vector<256x32xf32>
    %19 = arith.mulf %14, %18 : vector<256x32xf32>
    %c0_10 = arith.constant 0 : index
    %c0_11 = arith.constant 0 : index
    %c0_12 = arith.constant 0 : index
    %20 = vector.load %arg2[%c0_10, %c0_11, %c0_12] : memref<1x256x36xf32, #tpu.memory_space<vmem>>, vector<1x256x36xf32>
    %21 = vector.shape_cast %20 : vector<1x256x36xf32> to vector<256x36xf32>
    %c0_13 = arith.constant 0 : index
    %c0_14 = arith.constant 0 : index
    %22 = vector.load %arg3[%c0_13, %c0_14] : memref<36x128xf32, #tpu.memory_space<vmem>>, vector<36x128xf32>
    %cst_15 = arith.constant dense<0.000000e+00> : vector<256x128xf32>
    %23 = tpu.matmul %21, %22, %cst_15 {dimension_numbers = #tpu.dot_dimension_numbers<[1], [0], [0], [1], [0, 0, 1, 1], [], []>} : vector<256x36xf32>, vector<36x128xf32>, vector<256x128xf32> -> vector<256x128xf32>
    %c0_16 = arith.constant 0 : index
    %c0_17 = arith.constant 0 : index
    %24 = vector.load %arg4[%c0_16, %c0_17] : memref<1x128xf32, #tpu.memory_space<vmem>>, vector<1x128xf32>
    %25 = vector.broadcast %24 : vector<1x128xf32> to vector<256x128xf32>
    %26 = arith.addf %23, %25 : vector<256x128xf32>
    %cst_18 = arith.constant 0.000000e+00 : f32
    %27 = vector.broadcast %cst_18 : f32 to vector<256x128xf32>
    %28 = arith.maximumf %26, %27 : vector<256x128xf32>
    %29 = vector.extract_strided_slice %28 {offsets = [16, 0], sizes = [16, 128], strides = [1, 1]} : vector<256x128xf32> to vector<16x128xf32>
    %30 = vector.extract_strided_slice %28 {offsets = [224, 0], sizes = [16, 128], strides = [1, 1]} : vector<256x128xf32> to vector<16x128xf32>
    %31 = tpu.concatenate %29, %28, %30 in 0 : vector<16x128xf32>, vector<256x128xf32>, vector<16x128xf32> -> vector<288x128xf32>
    %32 = vector.extract_strided_slice %31 {offsets = [0, 0], sizes = [1, 128], strides = [1, 1]} : vector<288x128xf32> to vector<1x128xf32>
    %33 = vector.extract_strided_slice %31 {offsets = [0, 0], sizes = [287, 128], strides = [1, 1]} : vector<288x128xf32> to vector<287x128xf32>
    %34 = tpu.concatenate %32, %33 in 0 : vector<1x128xf32>, vector<287x128xf32> -> vector<288x128xf32>
    %35 = vector.extract_strided_slice %31 {offsets = [1, 0], sizes = [287, 128], strides = [1, 1]} : vector<288x128xf32> to vector<287x128xf32>
    %36 = vector.extract_strided_slice %31 {offsets = [287, 0], sizes = [1, 128], strides = [1, 1]} : vector<288x128xf32> to vector<1x128xf32>
    %37 = tpu.concatenate %35, %36 in 0 : vector<287x128xf32>, vector<1x128xf32> -> vector<288x128xf32>
    %38 = tpu.iota {dimensions = array<i32: 0>} : vector<288x1xi32>
    %c16_i32 = arith.constant 16 : i32
    %c0_i32 = arith.constant 0 : i32
    %39 = arith.cmpi eq, %c16_i32, %c0_i32 : i32
    %c1_i32 = arith.constant 1 : i32
    %40 = arith.select %39, %c1_i32, %c16_i32 : i32
    %41 = vector.broadcast %40 : i32 to vector<288x1xi32>
    %42 = arith.remsi %38, %41 : vector<288x1xi32>
    %c0_i32_19 = arith.constant 0 : i32
    %43 = vector.broadcast %c0_i32_19 : i32 to vector<288x1xi32>
    %44 = arith.cmpi ne, %42, %43 : vector<288x1xi32>
    %c0_i32_20 = arith.constant 0 : i32
    %45 = vector.broadcast %c0_i32_20 : i32 to vector<288x1xi32>
    %46 = arith.cmpi slt, %42, %45 : vector<288x1xi32>
    %c0_i32_21 = arith.constant 0 : i32
    %47 = arith.cmpi slt, %40, %c0_i32_21 : i32
    %48 = vector.broadcast %47 : i1 to vector<288x1xi1>
    %49 = vector.broadcast %48 : vector<288x1xi1> to vector<288x1xi1>
    %50 = arith.xori %46, %49 : vector<288x1xi1>
    %51 = arith.andi %50, %44 : vector<288x1xi1>
    %52 = vector.broadcast %40 : i32 to vector<288x1xi32>
    %53 = arith.addi %42, %52 : vector<288x1xi32>
    %54 = arith.select %51, %53, %42 : vector<288x1xi1>, vector<288x1xi32>
    %c0_i32_22 = arith.constant 0 : i32
    %55 = vector.broadcast %c0_i32_22 : i32 to vector<288x1xi32>
    %56 = arith.cmpi eq, %54, %55 : vector<288x1xi32>
    %57 = vector.shape_cast %56 : vector<288x1xi1> to vector<288x1xi1>
    %58 = vector.broadcast %57 : vector<288x1xi1> to vector<288x128xi1>
    %59 = arith.select %58, %37, %34 : vector<288x128xi1>, vector<288x128xf32>
    %c15_i32 = arith.constant 15 : i32
    %60 = vector.broadcast %c15_i32 : i32 to vector<288x1xi32>
    %61 = arith.cmpi eq, %54, %60 : vector<288x1xi32>
    %62 = vector.shape_cast %61 : vector<288x1xi1> to vector<288x1xi1>
    %63 = vector.broadcast %62 : vector<288x1xi1> to vector<288x128xi1>
    %64 = arith.select %63, %34, %37 : vector<288x128xi1>, vector<288x128xf32>
    %cst_23 = arith.constant 0.000000e+00 : f32
    %65 = vector.broadcast %cst_23 : f32 to vector<256x64xf32>
    %66 = vector.extract_strided_slice %59 {offsets = [0, 0], sizes = [256, 128], strides = [1, 1]} : vector<288x128xf32> to vector<256x128xf32>
    %c0_24 = arith.constant 0 : index
    %c0_25 = arith.constant 0 : index
    %c0_26 = arith.constant 0 : index
    %67 = vector.load %arg5[%c0_24, %c0_25, %c0_26] : memref<9x128x64xf32, #tpu.memory_space<vmem>>, vector<1x128x64xf32>
    %68 = vector.shape_cast %67 : vector<1x128x64xf32> to vector<128x64xf32>
    %cst_27 = arith.constant dense<0.000000e+00> : vector<256x64xf32>
    %69 = tpu.matmul %66, %68, %cst_27 {dimension_numbers = #tpu.dot_dimension_numbers<[1], [0], [0], [1], [0, 0, 1, 1], [], []>} : vector<256x128xf32>, vector<128x64xf32>, vector<256x64xf32> -> vector<256x64xf32>
    %70 = arith.addf %65, %69 : vector<256x64xf32>
    %71 = vector.extract_strided_slice %31 {offsets = [0, 0], sizes = [256, 128], strides = [1, 1]} : vector<288x128xf32> to vector<256x128xf32>
    %c1 = arith.constant 1 : index
    %c0_28 = arith.constant 0 : index
    %c0_29 = arith.constant 0 : index
    %72 = vector.load %arg5[%c1, %c0_28, %c0_29] : memref<9x128x64xf32, #tpu.memory_space<vmem>>, vector<1x128x64xf32>
    %73 = vector.shape_cast %72 : vector<1x128x64xf32> to vector<128x64xf32>
    %cst_30 = arith.constant dense<0.000000e+00> : vector<256x64xf32>
    %74 = tpu.matmul %71, %73, %cst_30 {dimension_numbers = #tpu.dot_dimension_numbers<[1], [0], [0], [1], [0, 0, 1, 1], [], []>} : vector<256x128xf32>, vector<128x64xf32>, vector<256x64xf32> -> vector<256x64xf32>
    %75 = arith.addf %70, %74 : vector<256x64xf32>
    %76 = vector.extract_strided_slice %64 {offsets = [0, 0], sizes = [256, 128], strides = [1, 1]} : vector<288x128xf32> to vector<256x128xf32>
    %c2 = arith.constant 2 : index
    %c0_31 = arith.constant 0 : index
    %c0_32 = arith.constant 0 : index
    %77 = vector.load %arg5[%c2, %c0_31, %c0_32] : memref<9x128x64xf32, #tpu.memory_space<vmem>>, vector<1x128x64xf32>
    %78 = vector.shape_cast %77 : vector<1x128x64xf32> to vector<128x64xf32>
    %cst_33 = arith.constant dense<0.000000e+00> : vector<256x64xf32>
    %79 = tpu.matmul %76, %78, %cst_33 {dimension_numbers = #tpu.dot_dimension_numbers<[1], [0], [0], [1], [0, 0, 1, 1], [], []>} : vector<256x128xf32>, vector<128x64xf32>, vector<256x64xf32> -> vector<256x64xf32>
    %80 = arith.addf %75, %79 : vector<256x64xf32>
    %81 = vector.extract_strided_slice %59 {offsets = [16, 0], sizes = [256, 128], strides = [1, 1]} : vector<288x128xf32> to vector<256x128xf32>
    %c3 = arith.constant 3 : index
    %c0_34 = arith.constant 0 : index
    %c0_35 = arith.constant 0 : index
    %82 = vector.load %arg5[%c3, %c0_34, %c0_35] : memref<9x128x64xf32, #tpu.memory_space<vmem>>, vector<1x128x64xf32>
    %83 = vector.shape_cast %82 : vector<1x128x64xf32> to vector<128x64xf32>
    %cst_36 = arith.constant dense<0.000000e+00> : vector<256x64xf32>
    %84 = tpu.matmul %81, %83, %cst_36 {dimension_numbers = #tpu.dot_dimension_numbers<[1], [0], [0], [1], [0, 0, 1, 1], [], []>} : vector<256x128xf32>, vector<128x64xf32>, vector<256x64xf32> -> vector<256x64xf32>
    %85 = arith.addf %80, %84 : vector<256x64xf32>
    %86 = vector.extract_strided_slice %31 {offsets = [16, 0], sizes = [256, 128], strides = [1, 1]} : vector<288x128xf32> to vector<256x128xf32>
    %c4 = arith.constant 4 : index
    %c0_37 = arith.constant 0 : index
    %c0_38 = arith.constant 0 : index
    %87 = vector.load %arg5[%c4, %c0_37, %c0_38] : memref<9x128x64xf32, #tpu.memory_space<vmem>>, vector<1x128x64xf32>
    %88 = vector.shape_cast %87 : vector<1x128x64xf32> to vector<128x64xf32>
    %cst_39 = arith.constant dense<0.000000e+00> : vector<256x64xf32>
    %89 = tpu.matmul %86, %88, %cst_39 {dimension_numbers = #tpu.dot_dimension_numbers<[1], [0], [0], [1], [0, 0, 1, 1], [], []>} : vector<256x128xf32>, vector<128x64xf32>, vector<256x64xf32> -> vector<256x64xf32>
    %90 = arith.addf %85, %89 : vector<256x64xf32>
    %91 = vector.extract_strided_slice %64 {offsets = [16, 0], sizes = [256, 128], strides = [1, 1]} : vector<288x128xf32> to vector<256x128xf32>
    %c5 = arith.constant 5 : index
    %c0_40 = arith.constant 0 : index
    %c0_41 = arith.constant 0 : index
    %92 = vector.load %arg5[%c5, %c0_40, %c0_41] : memref<9x128x64xf32, #tpu.memory_space<vmem>>, vector<1x128x64xf32>
    %93 = vector.shape_cast %92 : vector<1x128x64xf32> to vector<128x64xf32>
    %cst_42 = arith.constant dense<0.000000e+00> : vector<256x64xf32>
    %94 = tpu.matmul %91, %93, %cst_42 {dimension_numbers = #tpu.dot_dimension_numbers<[1], [0], [0], [1], [0, 0, 1, 1], [], []>} : vector<256x128xf32>, vector<128x64xf32>, vector<256x64xf32> -> vector<256x64xf32>
    %95 = arith.addf %90, %94 : vector<256x64xf32>
    %96 = vector.extract_strided_slice %59 {offsets = [32, 0], sizes = [256, 128], strides = [1, 1]} : vector<288x128xf32> to vector<256x128xf32>
    %c6 = arith.constant 6 : index
    %c0_43 = arith.constant 0 : index
    %c0_44 = arith.constant 0 : index
    %97 = vector.load %arg5[%c6, %c0_43, %c0_44] : memref<9x128x64xf32, #tpu.memory_space<vmem>>, vector<1x128x64xf32>
    %98 = vector.shape_cast %97 : vector<1x128x64xf32> to vector<128x64xf32>
    %cst_45 = arith.constant dense<0.000000e+00> : vector<256x64xf32>
    %99 = tpu.matmul %96, %98, %cst_45 {dimension_numbers = #tpu.dot_dimension_numbers<[1], [0], [0], [1], [0, 0, 1, 1], [], []>} : vector<256x128xf32>, vector<128x64xf32>, vector<256x64xf32> -> vector<256x64xf32>
    %100 = arith.addf %95, %99 : vector<256x64xf32>
    %101 = vector.extract_strided_slice %31 {offsets = [32, 0], sizes = [256, 128], strides = [1, 1]} : vector<288x128xf32> to vector<256x128xf32>
    %c7 = arith.constant 7 : index
    %c0_46 = arith.constant 0 : index
    %c0_47 = arith.constant 0 : index
    %102 = vector.load %arg5[%c7, %c0_46, %c0_47] : memref<9x128x64xf32, #tpu.memory_space<vmem>>, vector<1x128x64xf32>
    %103 = vector.shape_cast %102 : vector<1x128x64xf32> to vector<128x64xf32>
    %cst_48 = arith.constant dense<0.000000e+00> : vector<256x64xf32>
    %104 = tpu.matmul %101, %103, %cst_48 {dimension_numbers = #tpu.dot_dimension_numbers<[1], [0], [0], [1], [0, 0, 1, 1], [], []>} : vector<256x128xf32>, vector<128x64xf32>, vector<256x64xf32> -> vector<256x64xf32>
    %105 = arith.addf %100, %104 : vector<256x64xf32>
    %106 = vector.extract_strided_slice %64 {offsets = [32, 0], sizes = [256, 128], strides = [1, 1]} : vector<288x128xf32> to vector<256x128xf32>
    %c8 = arith.constant 8 : index
    %c0_49 = arith.constant 0 : index
    %c0_50 = arith.constant 0 : index
    %107 = vector.load %arg5[%c8, %c0_49, %c0_50] : memref<9x128x64xf32, #tpu.memory_space<vmem>>, vector<1x128x64xf32>
    %108 = vector.shape_cast %107 : vector<1x128x64xf32> to vector<128x64xf32>
    %cst_51 = arith.constant dense<0.000000e+00> : vector<256x64xf32>
    %109 = tpu.matmul %106, %108, %cst_51 {dimension_numbers = #tpu.dot_dimension_numbers<[1], [0], [0], [1], [0, 0, 1, 1], [], []>} : vector<256x128xf32>, vector<128x64xf32>, vector<256x64xf32> -> vector<256x64xf32>
    %110 = arith.addf %105, %109 : vector<256x64xf32>
    %c0_52 = arith.constant 0 : index
    %c0_53 = arith.constant 0 : index
    %111 = vector.load %arg6[%c0_52, %c0_53] : memref<1x64xf32, #tpu.memory_space<vmem>>, vector<1x64xf32>
    %112 = vector.broadcast %111 : vector<1x64xf32> to vector<256x64xf32>
    %113 = arith.addf %110, %112 : vector<256x64xf32>
    %114 = vector.extract_strided_slice %113 {offsets = [0, 0], sizes = [256, 32], strides = [1, 1]} : vector<256x64xf32> to vector<256x32xf32>
    %115 = vector.extract_strided_slice %113 {offsets = [0, 32], sizes = [256, 32], strides = [1, 1]} : vector<256x64xf32> to vector<256x32xf32>
    %cst_54 = arith.constant 1.000000e+00 : f32
    %116 = vector.broadcast %cst_54 : f32 to vector<256x32xf32>
    %117 = arith.addf %116, %114 : vector<256x32xf32>
    %118 = arith.mulf %19, %117 : vector<256x32xf32>
    %119 = arith.addf %118, %115 : vector<256x32xf32>
    %c0_55 = arith.constant 0 : index
    %c0_56 = arith.constant 0 : index
    %c0_57 = arith.constant 0 : index
    %120 = vector.load %arg8[%c0_55, %c0_56, %c0_57] : memref<1x256x32xf32, #tpu.memory_space<vmem>>, vector<1x256x32xf32>
    %121 = vector.shape_cast %120 : vector<1x256x32xf32> to vector<256x32xf32>
    %122 = vector.shape_cast %119 : vector<256x32xf32> to vector<1x256x32xf32>
    tpu.vector_store %arg8[%c0_55, %c0_56, %c0_57], %122 {strides = array<i32>} : memref<1x256x32xf32, #tpu.memory_space<vmem>>, vector<1x256x32xf32>,
    return
  }
  func.func @transform_0(%arg0: i32) -> (i32, i32, i32) {
    %c0_i32 = arith.constant 0 : i32
    %c0_i32_0 = arith.constant 0 : i32
    %c0_i32_1 = arith.constant 0 : i32
    return %arg0, %c0_i32, %c0_i32_0 : i32, i32, i32
  }
  func.func @transform_1(%arg0: i32) -> (i32, i32, i32) {
    %c0_i32 = arith.constant 0 : i32
    %c0_i32_0 = arith.constant 0 : i32
    %c0_i32_1 = arith.constant 0 : i32
    return %arg0, %c0_i32, %c0_i32_0 : i32, i32, i32
  }
  func.func @transform_2(%arg0: i32) -> (i32, i32) {
    %c0_i32 = arith.constant 0 : i32
    %c0_i32_0 = arith.constant 0 : i32
    %c0_i32_1 = arith.constant 0 : i32
    return %c0_i32, %c0_i32_0 : i32, i32
  }
  func.func @transform_3(%arg0: i32) -> (i32, i32) {
    %c0_i32 = arith.constant 0 : i32
    %c0_i32_0 = arith.constant 0 : i32
    %c0_i32_1 = arith.constant 0 : i32
    return %c0_i32, %c0_i32_0 : i32, i32
  }
  func.func @transform_4(%arg0: i32) -> (i32, i32, i32) {
    %c0_i32 = arith.constant 0 : i32
    %c0_i32_0 = arith.constant 0 : i32
    %c0_i32_1 = arith.constant 0 : i32
    %c0_i32_2 = arith.constant 0 : i32
    return %c0_i32, %c0_i32_0, %c0_i32_1 : i32, i32, i32
  }
  func.func @transform_5(%arg0: i32) -> (i32, i32) {
    %c0_i32 = arith.constant 0 : i32
    %c0_i32_0 = arith.constant 0 : i32
    %c0_i32_1 = arith.constant 0 : i32
    return %c0_i32, %c0_i32_0 : i32, i32
  }
  func.func @transform_6(%arg0: i32) -> (i32, i32) {
    %c0_i32 = arith.constant 0 : i32
    %c0_i32_0 = arith.constant 0 : i32
    %c0_i32_1 = arith.constant 0 : i32
    return %c0_i32, %c0_i32_0 : i32, i32
  }
  func.func @transform_7(%arg0: i32) -> (i32, i32, i32) {
    %c0_i32 = arith.constant 0 : i32
    %c0_i32_0 = arith.constant 0 : i32
    %c0_i32_1 = arith.constant 0 : i32
    return %arg0, %c0_i32, %c0_i32_0 : i32, i32, i32
  }
}

</mosaic_0001>

<bundles_post_ra>
// kernel: tpu_custom_call.1
= control target key start
LH: loop header
LB: loop body
LE: loop exit
PB: predicated region body
PF: predicated region fallthrough
CT: control target
= control target key end

     0   :  { %s7138_s24 = smov 0   ;;  %s9712_s0 = inlined_call_operand.vmem [shape: f32[2,256,32], index: 0, kind: input, shape index: {}]   ;;  %s9713_s1 = inlined_call_operand.vmem [shape: f32[2,256,36], index: 1, kind: input, shape index: {}]   ;;  %s9714_s2 = inlined_call_operand.vmem [shape: f32[36,128], index: 2, kind: input, shape index: {}]   ;;  %s9715_s3 = inlined_call_operand.vmem [shape: f32[1,128], index: 3, kind: input, shape index: {}]   ;;  %s9716_s4 = inlined_call_operand.vmem [shape: f32[9,128,64], index: 4, kind: input, shape index: {}]   ;;  %s9717_s5 = inlined_call_operand.vmem [shape: f32[1,64], index: 5, kind: input, shape index: {}]   ;;  %s9718_s6 = inlined_call_operand.vmem [shape: f32[32,32], index: 6, kind: input, shape index: {}]   ;;  %s9719_s7 = inlined_call_operand.vmem [shape: f32[2,256,32], index: 7, kind: output, shape index: {}]  }
   0x1 LB: > { %s5372_s25 = sadd.s32 4294967295, %s7095_s24   ;;  %p5376_p0 = scmp.ge.s32.totalorder %s7095_s24, 1  ;;  %s7095_s24 = sphi %s7138_s24, %s17_s24  }
   0x2   : > { %p247_p1 = scmp.lt.s32.totalorder %s7095_s24, 3 }
   0x4   : > { %p248_p2 = pnand %p5376_p0, %p247_p1 }
   0x6   : > { %251 = sbr.rel (%p248_p2) target bundleno = 924 (0x39c), region = 48 }
   0xb   : > { %v334_v0 = vld [vmem:[%s9718_s6 + $0x18] sm:$0xff]  ;;  %v333_v1 = vld [vmem:[%s9718_s6 + $0x10] sm:$0xff]  ;;  %p284_p3 = scmp.lt.s32.totalorder %s5372_s25, 1  ;;  %v332_v2 = vld [vmem:[%s9718_s6 + $0x8] sm:$0xff]  ;;  %vm335_vm0 = vcmask 261120   ;;  %vm1357_vm1 = vcmask 1043456  }
   0xc   : > { %6156 = vmatprep.subr.mxu0 %v334_v0  ;;  %6212 = vmatprep.subr.mxu1 %v334_v0  ;;  %v331_v3 = vld [vmem:[%s9718_s6] sm:$0xff]  ;;  %v1251_v13 = vld [vmem:[%s9714_s2 + $0x18] sm:$0xff]  ;;  %v1250_v17 = vld [vmem:[%s9714_s2 + $0x10] sm:$0xff]  ;;  %vm1260_vm2 = vcmask 293888   ;;  %vm1650_vm3 = vcmask 1040384   ;;  %vm1751_vm4 = vcmask 1046528  }
   0xd   : > { %6157 = vmatpush3.msra.mxu0 %v334_v0  ;;  %6213 = vmatpush3.msra.mxu1 %v334_v0  ;;  %s10103_s25 = smov (!%p284_p3, %s5372_s25), 1  ;;  %v1252_v4 = vld [vmem:[%s9714_s2 + $0x20] sm:$0xf]  ;;  %v1249_v19 = vld [vmem:[%s9714_s2 + $0x8] sm:$0xff]  ;;  %s7097_s21 = smov 96  }
   0xe   : > { %6158 = vmatprep.subr.mxu0 %v333_v1  ;;  %6214 = vmatprep.subr.mxu1 %v333_v1  ;;  %s7158_s11 = sshll.u32 %s10103_s25, 8  ;;  %v1248_v23 = vld [vmem:[%s9714_s2] sm:$0xff] }
   0xf   : > { %6159 = vmatpush3.msra.mxu0 %v333_v1  ;;  %6215 = vmatpush3.msra.mxu1 %v333_v1  ;;  %s7164_s14 = scalar_lea.vmem %s9712_s0, %s7158_s11  ;;  %s7277_s28 = scalar_lea.vmem %s9713_s1, %s7158_s11 }
  0x10   : > { %6160 = vmatprep.subr.mxu0 %v332_v2  ;;  %6216 = vmatprep.subr.mxu1 %v332_v2  ;;  %v299_v5 = vld [vmem:[%s7164_s14] sm:$0xff]  ;;  %v300_v6 = vld [vmem:[%s7164_s14 + $0x8] sm:$0xff]  ;;  %v301_v7 = vld [vmem:[%s7164_s14 + $0x10] sm:$0xff]  ;;  %s9611_s23 = scalar_lea.vmem %s9719_s7, %s7158_s11 }
  0x11   : > { %6161 = vmatpush3.msra.mxu0 %v332_v2  ;;  %6217 = vmatpush3.msra.mxu1 %v332_v2  ;;  %v727_v8 = vmul.f32 %v300_v6, %v300_v6  ;;  %v726_v9 = vmul.f32 %v299_v5, %v299_v5  ;;  %v728_v10 = vmul.f32 %v301_v7, %v301_v7  ;;  %v302_v11 = vld [vmem:[%s7164_s14 + $0x18] sm:$0xff]  ;;  %v303_v12 = vld [vmem:[%s7164_s14 + $0x20] sm:$0xff]  ;;  %v304_v16 = vld [vmem:[%s7164_s14 + $0x28] sm:$0xff] }
  0x12   : > { %6162 = vmatprep.subr.mxu0 %v331_v3  ;;  %6164 = vmatprep.mubr.msk.f32.mxu0 %vm335_vm0, %v299_v5  ;;  %v729_v14 = vmul.f32 %v302_v11, %v302_v11  ;;  %v730_v15 = vmul.f32 %v303_v12, %v303_v12  ;;  %v305_v18 = vld [vmem:[%s7164_s14 + $0x30] sm:$0xff]  ;;  %v731_v20 = vmul.f32 %v304_v16, %v304_v16  ;;  %v306_v22 = vld [vmem:[%s7164_s14 + $0x38] sm:$0xff]  ;;  %v307_v24 = vld [vmem:[%s7164_s14 + $0x40] sm:$0xff] }
  0x13   : > { %6163 = vmatpush3.msra.mxu0 %v331_v3  ;;  %6218 = vmatprep.subr.mxu1 %v331_v3  ;;  %v732_v21 = vmul.f32 %v305_v18, %v305_v18  ;;  %v733_v25 = vmul.f32 %v306_v22, %v306_v22  ;;  %v734_v26 = vmul.f32 %v307_v24, %v307_v24  ;;  %v308_v27 = vld [vmem:[%s7164_s14 + $0x48] sm:$0xff]  ;;  %v309_v28 = vld [vmem:[%s7164_s14 + $0x50] sm:$0xff]  ;;  %v310_v31 = vld [vmem:[%s7164_s14 + $0x58] sm:$0xff] }
  0x14   : > { %6165 = vmatmul.mubr.msk.f32.vlgmr.msra.gmra.mxu0 %vm335_vm0, %v300_v6  ;;  %6268 = vmatprep.subr.msk.mxu0 %vm1357_vm1, %v1252_v4  ;;  %v735_v29 = vmul.f32 %v308_v27, %v308_v27  ;;  %v736_v30 = vmul.f32 %v309_v28, %v309_v28  ;;  %v311_v32 = vld [vmem:[%s7164_s14 + $0x60] sm:$0xff]  ;;  %v737_v33 = vmul.f32 %v310_v31, %v310_v31  ;;  %v312_v35 = vld [vmem:[%s7164_s14 + $0x68] sm:$0xff]  ;;  %v313_v36 = vld [vmem:[%s7164_s14 + $0x70] sm:$0xff] }
  0x15   : > { %6219 = vmatpush3.msra.mxu1 %v331_v3  ;;  %6220 = vmatprep.mubr.msk.f32.mxu1 %vm335_vm0, %v726_v9  ;;  %v738_v34 = vmul.f32 %v311_v32, %v311_v32  ;;  %v739_v37 = vmul.f32 %v312_v35, %v312_v35  ;;  %v740_v38 = vmul.f32 %v313_v36, %v313_v36  ;;  %v314_v39 = vld [vmem:[%s7164_s14 + $0x78] sm:$0xff]  ;;  %v315_v40 = vld [vmem:[%s7164_s14 + $0x80] sm:$0xff]  ;;  %v316_v43 = vld [vmem:[%s7164_s14 + $0x88] sm:$0xff] }
  0x16   : > { %6269 = vmatpush3.msk.msra.mxu0 %vm1357_vm1, %v1252_v4  ;;  %6221 = vmatmul.mubr.msk.f32.vlgmr.msra.gmra.mxu1 %vm335_vm0, %v727_v8  ;;  %v741_v41 = vmul.f32 %v314_v39, %v314_v39  ;;  %v742_v42 = vmul.f32 %v315_v40, %v315_v40  ;;  %v317_v44 = vld [vmem:[%s7164_s14 + $0x90] sm:$0xff]  ;;  %v743_v45 = vmul.f32 %v316_v43, %v316_v43  ;;  %v318_v47 = vld [vmem:[%s7164_s14 + $0x98] sm:$0xff]  ;;  %v319_v48 = vld [vmem:[%s7164_s14 + $0xa0] sm:$0xff] }
  0x17   : > { %6167 = vmatprep.mubr.msk.f32.mxu0 %vm335_vm0, %v301_v7  ;;  %6223 = vmatprep.mubr.msk.f32.mxu1 %vm335_vm0, %v728_v10  ;;  %v744_v46 = vmul.f32 %v317_v44, %v317_v44  ;;  %v745_v49 = vmul.f32 %v318_v47, %v318_v47  ;;  %v746_v50 = vmul.f32 %v319_v48, %v319_v48  ;;  %v320_v51 = vld [vmem:[%s7164_s14 + $0xa8] sm:$0xff]  ;;  %v321_v52 = vld [vmem:[%s7164_s14 + $0xb0] sm:$0xff]  ;;  %v322_v55 = vld [vmem:[%s7164_s14 + $0xb8] sm:$0xff] }
  0x18   : > { %6168 = vmatmul.mubr.msk.f32.gmra.mxu0 %vm335_vm0, %v302_v11  ;;  %6270 = vmatprep.subr.mxu0 %v1251_v13  ;;  %v747_v53 = vmul.f32 %v320_v51, %v320_v51  ;;  %v748_v54 = vmul.f32 %v321_v52, %v321_v52  ;;  %v323_v56 = vld [vmem:[%s7164_s14 + $0xc0] sm:$0xff]  ;;  %v749_v57 = vmul.f32 %v322_v55, %v322_v55  ;;  %v324_v59 = vld [vmem:[%s7164_s14 + $0xc8] sm:$0xff]  ;;  %v325_v60 = vld [vmem:[%s7164_s14 + $0xd0] sm:$0xff] }
  0x19   : > { %6170 = vmatprep.mubr.msk.f32.mxu0 %vm335_vm0, %v303_v12  ;;  %6271 = vmatpush3.msra.mxu0 %v1251_v13  ;;  %v750_v58 = vmul.f32 %v323_v56, %v323_v56  ;;  %v751_v61 = vmul.f32 %v324_v59, %v324_v59  ;;  %v752_v62 = vmul.f32 %v325_v60, %v325_v60  ;;  %v326_v63 = vld [vmem:[%s7164_s14 + $0xd8] sm:$0xff]  ;;  %v327_v0 = vld [vmem:[%s7164_s14 + $0xe0] sm:$0xff]  ;;  %v328_v3 = vld [vmem:[%s7164_s14 + $0xe8] sm:$0xff] }
  0x1a   : > { %6224 = vmatmul.mubr.msk.f32.gmra.mxu1 %vm335_vm0, %v729_v14  ;;  %6272 = vmatprep.subr.mxu0 %v1250_v17  ;;  %v753_v1 = vmul.f32 %v326_v63, %v326_v63  ;;  %v754_v2 = vmul.f32 %v327_v0, %v327_v0  ;;  %v329_v4 = vld [vmem:[%s7164_s14 + $0xf0] sm:$0xff]  ;;  %v755_v5 = vmul.f32 %v328_v3, %v328_v3  ;;  %v330_v7 = vld [vmem:[%s7164_s14 + $0xf8] sm:$0xff]  ;;  %v1216_v9 = vld [vmem:[%s7277_s28] sm:$0xff] }
  0x1b   : > { %6226 = vmatprep.mubr.msk.f32.mxu1 %vm335_vm0, %v730_v15  ;;  %6273 = vmatpush3.msra.mxu0 %v1250_v17  ;;  %v756_v6 = vmul.f32 %v329_v4, %v329_v4  ;;  %v757_v8 = vmul.f32 %v330_v7, %v330_v7  ;;  %v1217_v10 = vld [vmem:[%s7277_s28 + $0x8] sm:$0xff]  ;;  %v1218_v11 = vld [vmem:[%s7277_s28 + $0x10] sm:$0xff]  ;;  %v1219_v12 = vld [vmem:[%s7277_s28 + $0x18] sm:$0xff] }
  0x1c   : > { %6171 = vmatmul.mubr.msk.f32.gmra.mxu0 %vm335_vm0, %v304_v16  ;;  %6274 = vmatprep.subr.mxu0 %v1249_v19  ;;  %v1220_v13 = vld [vmem:[%s7277_s28 + $0x20] sm:$0xff]  ;;  %v1221_v14 = vld [vmem:[%s7277_s28 + $0x28] sm:$0xff]  ;;  %v1222_v15 = vld [vmem:[%s7277_s28 + $0x30] sm:$0xff] }
  0x1d   : > { %6173 = vmatprep.mubr.msk.f32.mxu0 %vm335_vm0, %v305_v18  ;;  %6275 = vmatpush3.msra.mxu0 %v1249_v19  ;;  %v1223_v16 = vld [vmem:[%s7277_s28 + $0x38] sm:$0xff]  ;;  %v1224_v17 = vld [vmem:[%s7277_s28 + $0x40] sm:$0xff]  ;;  %v1225_v18 = vld [vmem:[%s7277_s28 + $0x48] sm:$0xff] }
  0x1e   : > { %6227 = vmatmul.mubr.msk.f32.gmra.mxu1 %vm335_vm0, %v731_v20  ;;  %6276 = vmatprep.subr.mxu0 %v1248_v23  ;;  %v1226_v19 = vld [vmem:[%s7277_s28 + $0x50] sm:$0xff]  ;;  %v5496_v20 = vld [vmem:[%s9716_s4 + $0xf8] sm:$0xff] }
  0x1f   : > { %6229 = vmatprep.mubr.msk.f32.mxu1 %vm335_vm0, %v732_v21  ;;  %6277 = vmatpush3.msra.mxu0 %v1248_v23  ;;  %v1227_v21 = vld [vmem:[%s7277_s28 + $0x58] sm:$0xff]  ;;  %v5495_v23 = vld [vmem:[%s9716_s4 + $0xf0] sm:$0xff] }
  0x20   : > { %6174 = vmatmul.mubr.msk.f32.gmra.mxu0 %vm335_vm0, %v306_v22  ;;  %6326 = vmatprep.subr.mxu1 %v5496_v20  ;;  %v1228_v22 = vld [vmem:[%s7277_s28 + $0x60] sm:$0xff] }
  0x21   : > { %6176 = vmatprep.mubr.msk.f32.mxu0 %vm335_vm0, %v307_v24  ;;  %6327 = vmatpush3.msra.mxu1 %v5496_v20  ;;  %v1229_v24 = vld [vmem:[%s7277_s28 + $0x68] sm:$0xff] }
  0x22   : > { %6230 = vmatmul.mubr.msk.f32.gmra.mxu1 %vm335_vm0, %v733_v25  ;;  %6328 = vmatprep.subr.mxu1 %v5495_v23  ;;  %v1230_v25 = vld [vmem:[%s7277_s28 + $0x70] sm:$0xff] }
  0x23   : > { %6232 = vmatprep.mubr.msk.f32.mxu1 %vm335_vm0, %v734_v26  ;;  %6329 = vmatpush3.msra.mxu1 %v5495_v23  ;;  %v5494_v26 = vld [vmem:[%s9716_s4 + $0xe8] sm:$0xff] }
  0x24   : > { %6177 = vmatmul.mubr.msk.f32.gmra.mxu0 %vm335_vm0, %v308_v27  ;;  %6330 = vmatprep.subr.mxu1 %v5494_v26  ;;  %v1231_v27 = vld [vmem:[%s7277_s28 + $0x78] sm:$0xff] }
  0x25   : > { %6179 = vmatprep.mubr.msk.f32.mxu0 %vm335_vm0, %v309_v28  ;;  %6331 = vmatpush3.msra.mxu1 %v5494_v26  ;;  %v1232_v28 = vld [vmem:[%s7277_s28 + $0x80] sm:$0xff] }
  0x26   : > { %6233 = vmatmul.mubr.msk.f32.gmra.mxu1 %vm335_vm0, %v735_v29  ;;  %v5493_v29 = vld [vmem:[%s9716_s4 + $0xe0] sm:$0xff] }
  0x27   : > { %6235 = vmatprep.mubr.msk.f32.mxu1 %vm335_vm0, %v736_v30  ;;  %6332 = vmatprep.subr.mxu1 %v5493_v29  ;;  %v1233_v30 = vld [vmem:[%s7277_s28 + $0x88] sm:$0xff] }
  0x28   : > { %6180 = vmatmul.mubr.msk.f32.gmra.mxu0 %vm335_vm0, %v310_v31  ;;  %6333 = vmatpush3.msra.mxu1 %v5493_v29  ;;  %v1234_v31 = vld [vmem:[%s7277_s28 + $0x90] sm:$0xff] }
  0x29   : > { %6182 = vmatprep.mubr.msk.f32.mxu0 %vm335_vm0, %v311_v32  ;;  %v5492_v32 = vld [vmem:[%s9716_s4 + $0xd8] sm:$0xff] }
  0x2a   : > { %6236 = vmatmul.mubr.msk.f32.gmra.mxu1 %vm335_vm0, %v737_v33  ;;  %6334 = vmatprep.subr.mxu1 %v5492_v32  ;;  %v1235_v33 = vld [vmem:[%s7277_s28 + $0x98] sm:$0xff] }
  0x2b   : > { %6238 = vmatprep.mubr.msk.f32.mxu1 %vm335_vm0, %v738_v34  ;;  %6335 = vmatpush3.msra.mxu1 %v5492_v32  ;;  %v1236_v34 = vld [vmem:[%s7277_s28 + $0xa0] sm:$0xff] }
  0x2c   : > { %6183 = vmatmul.mubr.msk.f32.gmra.mxu0 %vm335_vm0, %v312_v35  ;;  %v5491_v35 = vld [vmem:[%s9716_s4 + $0xd0] sm:$0xff] }
  0x2d   : > { %6185 = vmatprep.mubr.msk.f32.mxu0 %vm335_vm0, %v313_v36  ;;  %6336 = vmatprep.subr.mxu1 %v5491_v35  ;;  %v1237_v36 = vld [vmem:[%s7277_s28 + $0xa8] sm:$0xff] }
  0x2e   : > { %6239 = vmatmul.mubr.msk.f32.gmra.mxu1 %vm335_vm0, %v739_v37  ;;  %v1238_v37 = vld [vmem:[%s7277_s28 + $0xb0] sm:$0xff] }
  0x2f   : > { %6241 = vmatprep.mubr.msk.f32.mxu1 %vm335_vm0, %v740_v38  ;;  %6337 = vmatpush3.msra.mxu1 %v5491_v35  ;;  %v5490_v38 = vld [vmem:[%s9716_s4 + $0xc8] sm:$0xff] }
  0x30   : > { %6186 = vmatmul.mubr.msk.f32.gmra.mxu0 %vm335_vm0, %v314_v39  ;;  %6338 = vmatprep.subr.mxu1 %v5490_v38  ;;  %v1239_v39 = vld [vmem:[%s7277_s28 + $0xb8] sm:$0xff] }
  0x31   : > { %6188 = vmatprep.mubr.msk.f32.mxu0 %vm335_vm0, %v315_v40  ;;  %6339 = vmatpush3.msra.mxu1 %v5490_v38  ;;  %v1240_v40 = vld [vmem:[%s7277_s28 + $0xc0] sm:$0xff] }
  0x32   : > { %6242 = vmatmul.mubr.msk.f32.gmra.mxu1 %vm335_vm0, %v741_v41  ;;  %v5489_v41 = vld [vmem:[%s9716_s4 + $0xc0] sm:$0xff] }
  0x33   : > { %6244 = vmatprep.mubr.msk.f32.mxu1 %vm335_vm0, %v742_v42  ;;  %6340 = vmatprep.subr.mxu1 %v5489_v41  ;;  %v1241_v42 = vld [vmem:[%s7277_s28 + $0xc8] sm:$0xff] }
  0x34   : > { %6189 = vmatmul.mubr.msk.f32.gmra.mxu0 %vm335_vm0, %v316_v43  ;;  %6341 = vmatpush3.msra.mxu1 %v5489_v41  ;;  %v1242_v43 = vld [vmem:[%s7277_s28 + $0xd0] sm:$0xff] }
  0x35   : > { %6191 = vmatprep.mubr.msk.f32.mxu0 %vm335_vm0, %v317_v44  ;;  %v5488_v44 = vld [vmem:[%s9716_s4 + $0xb8] sm:$0xff] }
  0x36   : > { %6245 = vmatmul.mubr.msk.f32.gmra.mxu1 %vm335_vm0, %v743_v45  ;;  %6342 = vmatprep.subr.mxu1 %v5488_v44  ;;  %v2624_v45 = vld [vmem:[%s9716_s4 + $0x78] sm:$0xff] }
  0x37   : > { %6247 = vmatprep.mubr.msk.f32.mxu1 %vm335_vm0, %v744_v46  ;;  %6343 = vmatpush3.msra.mxu1 %v5488_v44  ;;  %v1243_v46 = vld [vmem:[%s7277_s28 + $0xd8] sm:$0xff] }
  0x38   : > { %6192 = vmatmul.mubr.msk.f32.gmra.mxu0 %vm335_vm0, %v318_v47  ;;  %6406 = vmatprep.subr.mxu0 %v2624_v45  ;;  %v2623_v47 = vld [vmem:[%s9716_s4 + $0x70] sm:$0xff] }
  0x39   : > { %6194 = vmatprep.mubr.msk.f32.mxu0 %vm335_vm0, %v319_v48  ;;  %v1244_v48 = vld [vmem:[%s7277_s28 + $0xe0] sm:$0xff] }
  0x3a   : > { %6248 = vmatmul.mubr.msk.f32.gmra.mxu1 %vm335_vm0, %v745_v49  ;;  %v5487_v49 = vld [vmem:[%s9716_s4 + $0xb0] sm:$0xff] }
  0x3b   : > { %6250 = vmatprep.mubr.msk.f32.mxu1 %vm335_vm0, %v746_v50  ;;  %6344 = vmatprep.subr.mxu1 %v5487_v49  ;;  %v2622_v50 = vld [vmem:[%s9716_s4 + $0x68] sm:$0xff] }
  0x3c   : > { %6195 = vmatmul.mubr.msk.f32.gmra.mxu0 %vm335_vm0, %v320_v51  ;;  %6345 = vmatpush3.msra.mxu1 %v5487_v49  ;;  %v1245_v51 = vld [vmem:[%s7277_s28 + $0xe8] sm:$0xff] }
  0x3d   : > { %6197 = vmatprep.mubr.msk.f32.mxu0 %vm335_vm0, %v321_v52  ;;  %v1246_v52 = vld [vmem:[%s7277_s28 + $0xf0] sm:$0xff] }
  0x3e   : > { %6251 = vmatmul.mubr.msk.f32.gmra.mxu1 %vm335_vm0, %v747_v53  ;;  %v5486_v53 = vld [vmem:[%s9716_s4 + $0xa8] sm:$0xff] }
  0x3f   : > { %6253 = vmatprep.mubr.msk.f32.mxu1 %vm335_vm0, %v748_v54  ;;  %v2621_v54 = vld [vmem:[%s9716_s4 + $0x60] sm:$0xff]  ;;  %6346 = vmatprep.subr.mxu1 %v5486_v53 }
  0x40   : > { %6198 = vmatmul.mubr.msk.f32.gmra.mxu0 %vm335_vm0, %v322_v55  ;;  %6347 = vmatpush3.msra.mxu1 %v5486_v53  ;;  %v2620_v55 = vld [vmem:[%s9716_s4 + $0x58] sm:$0xff] }
  0x41   : > { %6200 = vmatprep.mubr.msk.f32.mxu0 %vm335_vm0, %v323_v56  ;;  %v1247_v56 = vld [vmem:[%s7277_s28 + $0xf8] sm:$0xff] }
  0x42   : > { %6254 = vmatmul.mubr.msk.f32.gmra.mxu1 %vm335_vm0, %v749_v57  ;;  %v5485_v57 = vld [vmem:[%s9716_s4 + $0xa0] sm:$0xff] }
  0x43   : > { %6256 = vmatprep.mubr.msk.f32.mxu1 %vm335_vm0, %v750_v58  ;;  %6348 = vmatprep.subr.mxu1 %v5485_v57  ;;  %v2619_v58 = vld [vmem:[%s9716_s4 + $0x50] sm:$0xff] }
  0x44   : > { %6201 = vmatmul.mubr.msk.f32.gmra.mxu0 %vm335_vm0, %v324_v59  ;;  %6349 = vmatpush3.msra.mxu1 %v5485_v57  ;;  %v2618_v59 = vld [vmem:[%s9716_s4 + $0x48] sm:$0xff] }
  0x45   : > { %6203 = vmatprep.mubr.msk.f32.mxu0 %vm335_vm0, %v325_v60  ;;  %v5484_v60 = vld [vmem:[%s9716_s4 + $0x98] sm:$0xff] }
  0x46   : > { %6257 = vmatmul.mubr.msk.f32.gmra.mxu1 %vm335_vm0, %v751_v61  ;;  %6350 = vmatprep.subr.mxu1 %v5484_v60  ;;  %v2617_v61 = vld [vmem:[%s9716_s4 + $0x40] sm:$0xff] }
  0x47   : > { %6259 = vmatprep.mubr.msk.f32.mxu1 %vm335_vm0, %v752_v62  ;;  %6351 = vmatpush3.msra.mxu1 %v5484_v60  ;;  %v2616_v62 = vld [vmem:[%s9716_s4 + $0x38] sm:$0xff] }
  0x48   : > { %6204 = vmatmul.mubr.msk.f32.gmra.mxu0 %vm335_vm0, %v326_v63  ;;  %v2615_v63 = vld [vmem:[%s9716_s4 + $0x30] sm:$0xff] }
  0x49   : > { %6206 = vmatprep.mubr.msk.f32.mxu0 %vm335_vm0, %v327_v0  ;;  %v5483_v0 = vld [vmem:[%s9716_s4 + $0x90] sm:$0xff] }
  0x4a   : > { %6260 = vmatmul.mubr.msk.f32.gmra.mxu1 %vm335_vm0, %v753_v1  ;;  %v2614_v1 = vld [vmem:[%s9716_s4 + $0x28] sm:$0xff]  ;;  %6352 = vmatprep.subr.mxu1 %v5483_v0 }
  0x4b   : > { %6262 = vmatprep.mubr.msk.f32.mxu1 %vm335_vm0, %v754_v2  ;;  %6353 = vmatpush3.msra.mxu1 %v5483_v0  ;;  %v5482_v2 = vld [vmem:[%s9716_s4 + $0x88] sm:$0xff] }
  0x4c   : > { %6207 = vmatmul.mubr.msk.f32.gmra.mxu0 %vm335_vm0, %v328_v3  ;;  %v2613_v3 = vld [vmem:[%s9716_s4 + $0x20] sm:$0xff]  ;;  %6354 = vmatprep.subr.mxu1 %v5482_v2 }
  0x4d   : > { %6209 = vmatprep.mubr.msk.f32.mxu0 %vm335_vm0, %v329_v4  ;;  %6355 = vmatpush3.msra.mxu1 %v5482_v2  ;;  %v5481_v4 = vld [vmem:[%s9716_s4 + $0x80] sm:$0xff] }
  0x4e   : > { %6263 = vmatmul.mubr.msk.f32.gmra.mxu1 %vm335_vm0, %v755_v5  ;;  %v2612_v5 = vld [vmem:[%s9716_s4 + $0x18] sm:$0xff]  ;;  %6356 = vmatprep.subr.mxu1 %v5481_v4 }
  0x4f   : > { %6265 = vmatprep.mubr.msk.f32.mxu1 %vm335_vm0, %v756_v6  ;;  %6357 = vmatpush3.msra.mxu1 %v5481_v4  ;;  %v2611_v6 = vld [vmem:[%s9716_s4 + $0x10] sm:$0xff] }
  0x50   : > { %6210 = vmatmul.mubr.msk.f32.gmra.mxu0 %vm335_vm0, %v330_v7  ;;  %v2610_v7 = vld [vmem:[%s9716_s4 + $0x8] sm:$0xff] }
  0x51   : > { %6278 = vmatprep.mubr.msk.f32.mxu0 %vm1260_vm2, %v1216_v9  ;;  %v7448_v9 = vld [vmem:[%s9716_s4 + $0x178] sm:$0xff] }
  0x52   : > { %6266 = vmatmul.mubr.msk.f32.gmra.mxu1 %vm335_vm0, %v757_v8  ;;  %v2609_v8 = vld [vmem:[%s9716_s4] sm:$0xff]  ;;  %6486 = vmatprep.subr.mxu1 %v7448_v9 }
  0x54   : > { %6279 = vmatmul.mubr.msk.f32.vlgmr.msra.gmra.mxu0 %vm1260_vm2, %v1217_v10  ;;  %v7454_v10 = vld [vmem:[%s9716_s4 + $0x1f8] sm:$0xff] }
  0x55   : > { %6281 = vmatprep.mubr.msk.f32.mxu0 %vm1260_vm2, %v1218_v11  ;;  %6407 = vmatpush3.msra.mxu0 %v2624_v45 }
  0x56   : > { %6408 = vmatprep.subr.mxu0 %v2623_v47 }
  0x57   : > { %6409 = vmatpush3.msra.mxu0 %v2623_v47 }
  0x58   : > { %6282 = vmatmul.mubr.msk.f32.gmra.mxu0 %vm1260_vm2, %v1219_v12  ;;  %6410 = vmatprep.subr.mxu0 %v2622_v50 }
  0x59   : > { %6284 = vmatprep.mubr.msk.f32.mxu0 %vm1260_vm2, %v1220_v13  ;;  %6411 = vmatpush3.msra.mxu0 %v2622_v50 }
  0x5a   : > { %6412 = vmatprep.subr.mxu0 %v2621_v54 }
  0x5b   : > { %6413 = vmatpush3.msra.mxu0 %v2621_v54 }
  0x5c   : > { %6285 = vmatmul.mubr.msk.f32.gmra.mxu0 %vm1260_vm2, %v1221_v14  ;;  %6414 = vmatprep.subr.mxu0 %v2620_v55 }
  0x5d   : > { %6287 = vmatprep.mubr.msk.f32.mxu0 %vm1260_vm2, %v1222_v15  ;;  %6415 = vmatpush3.msra.mxu0 %v2620_v55 }
  0x5e   : > { %6416 = vmatprep.subr.mxu0 %v2619_v58 }
  0x5f   : > { %6417 = vmatpush3.msra.mxu0 %v2619_v58 }
  0x60   : > { %6288 = vmatmul.mubr.msk.f32.gmra.mxu0 %vm1260_vm2, %v1223_v16  ;;  %6418 = vmatprep.subr.mxu0 %v2618_v59 }
  0x61   : > { %6290 = vmatprep.mubr.msk.f32.mxu0 %vm1260_vm2, %v1224_v17  ;;  %6419 = vmatpush3.msra.mxu0 %v2618_v59 }
  0x62   : > { %6420 = vmatprep.subr.mxu0 %v2617_v61 }
  0x63   : > { %6421 = vmatpush3.msra.mxu0 %v2617_v61 }
  0x64   : > { %6291 = vmatmul.mubr.msk.f32.gmra.mxu0 %vm1260_vm2, %v1225_v18  ;;  %6422 = vmatprep.subr.mxu0 %v2616_v62 }
  0x65   : > { %6293 = vmatprep.mubr.msk.f32.mxu0 %vm1260_vm2, %v1226_v19  ;;  %6423 = vmatpush3.msra.mxu0 %v2616_v62 }
  0x66   : > { %6424 = vmatprep.subr.mxu0 %v2615_v63 }
  0x67   : > { %6425 = vmatpush3.msra.mxu0 %v2615_v63 }
  0x68   : > { %6294 = vmatmul.mubr.msk.f32.gmra.mxu0 %vm1260_vm2, %v1227_v21  ;;  %6426 = vmatprep.subr.mxu0 %v2614_v1 }
  0x69   : > { %6296 = vmatprep.mubr.msk.f32.mxu0 %vm1260_vm2, %v1228_v22  ;;  %6427 = vmatpush3.msra.mxu0 %v2614_v1 }
  0x6a   : > { %6428 = vmatprep.subr.mxu0 %v2613_v3 }
  0x6b   : > { %6429 = vmatpush3.msra.mxu0 %v2613_v3 }
  0x6c   : > { %6297 = vmatmul.mubr.msk.f32.gmra.mxu0 %vm1260_vm2, %v1229_v24  ;;  %6430 = vmatprep.subr.mxu0 %v2612_v5 }
  0x6d   : > { %6299 = vmatprep.mubr.msk.f32.mxu0 %vm1260_vm2, %v1230_v25  ;;  %6431 = vmatpush3.msra.mxu0 %v2612_v5 }
  0x6e   : > { %6432 = vmatprep.subr.mxu0 %v2611_v6 }
  0x6f   : > { %6433 = vmatpush3.msra.mxu0 %v2611_v6 }
  0x70   : > { %6300 = vmatmul.mubr.msk.f32.gmra.mxu0 %vm1260_vm2, %v1231_v27  ;;  %6434 = vmatprep.subr.mxu0 %v2610_v7 }
  0x71   : > { %6302 = vmatprep.mubr.msk.f32.mxu0 %vm1260_vm2, %v1232_v28  ;;  %6435 = vmatpush3.msra.mxu0 %v2610_v7 }
  0x72   : > { %6436 = vmatprep.subr.mxu0 %v2609_v8 }
  0x73   : > { %6437 = vmatpush3.msra.mxu0 %v2609_v8 }
  0x74   : > { %6303 = vmatmul.mubr.msk.f32.gmra.mxu0 %vm1260_vm2, %v1233_v30  ;;  %6566 = vmatprep.subr.mxu0 %v7454_v10 }
  0x75   : > { %6305 = vmatprep.mubr.msk.f32.mxu0 %vm1260_vm2, %v1234_v31 }
  0x78   : > { %6306 = vmatmul.mubr.msk.f32.gmra.mxu0 %vm1260_vm2, %v1235_v33 }
  0x79   : > { %6308 = vmatprep.mubr.msk.f32.mxu0 %vm1260_vm2, %v1236_v34 }
  0x7c   : > { %6309 = vmatmul.mubr.msk.f32.gmra.mxu0 %vm1260_vm2, %v1237_v36 }
  0x7d   : > { %6311 = vmatprep.mubr.msk.f32.mxu0 %vm1260_vm2, %v1238_v37 }
  0x80   : > { %6312 = vmatmul.mubr.msk.f32.gmra.mxu0 %vm1260_vm2, %v1239_v39 }
  0x81   : > { %6314 = vmatprep.mubr.msk.f32.mxu0 %vm1260_vm2, %v1240_v40 }
  0x84   : > { %6315 = vmatmul.mubr.msk.f32.gmra.mxu0 %vm1260_vm2, %v1241_v42 }
  0x85   : > { %6317 = vmatprep.mubr.msk.f32.mxu0 %vm1260_vm2, %v1242_v43 }
  0x88   : > { %6318 = vmatmul.mubr.msk.f32.gmra.mxu0 %vm1260_vm2, %v1243_v46 }
  0x89   : > { %6320 = vmatprep.mubr.msk.f32.mxu0 %vm1260_vm2, %v1244_v48 }
  0x8c   : > { %6321 = vmatmul.mubr.msk.f32.gmra.mxu0 %vm1260_vm2, %v1245_v51 }
  0x8d   : > { %6323 = vmatprep.mubr.msk.f32.mxu0 %vm1260_vm2, %v1246_v52 }
  0x90   : > { %6324 = vmatmul.mubr.msk.f32.gmra.mxu0 %vm1260_vm2, %v1247_v56 }
  0xd4   : > { %v6166_v11 = vpop.f32.mrf.mxu0 }
  0xd5   : > { %v658_v18 = vsel %vm335_vm0, %v6166_v11, 0.0 }
  0xd6   : > { %v498_v12 = vpop.f32.mrf.mxu0  ;;  %v6222_v13 = vpop.f32.mrf.mxu1 }
  0xd7   : > { %v657_v14 = vsel %vm335_vm0, %v498_v12, 0.0  ;;  %v1080_v15 = vsel %vm335_vm0, %v6222_v13, 0.0 }
  0xd8   : > { %v6169_v16 = vpop.f32.mrf.mxu0  ;;  %v920_v17 = vpop.f32.mrf.mxu1  ;;  %v659_v20 = vadd.f32 %v658_v18, %v657_v14 }
  0xd9   : > { %v1079_v19 = vsel %vm335_vm0, %v920_v17, 0.0  ;;  %v662_v28 = vsel %vm335_vm0, %v6169_v16, 0.0 }
  0xda   : > { %v1081_v21 = vadd.f32 %v1080_v15, %v1079_v19  ;;  %v508_v22 = vpop.f32.mrf.mxu0  ;;  %v6225_v23 = vpop.f32.mrf.mxu1 }
  0xdb   : > { %v660_v24 = vsel %vm335_vm0, %v508_v22, 0.0  ;;  %v1084_v29 = vsel %vm335_vm0, %v6225_v23, 0.0 }
  0xdc   : > { %v661_v25 = vadd.f32 %v660_v24, %v659_v20  ;;  %v6172_v26 = vpop.f32.mrf.mxu0  ;;  %v930_v27 = vpop.f32.mrf.mxu1 }
  0xdd   : > { %v1082_v30 = vsel %vm335_vm0, %v930_v27, 0.0  ;;  %v666_v40 = vsel %vm335_vm0, %v6172_v26, 0.0 }
  0xde   : > { %v1083_v31 = vadd.f32 %v1082_v30, %v1081_v21  ;;  %v518_v32 = vpop.f32.mrf.mxu0  ;;  %v663_v33 = vadd.f32 %v662_v28, %v661_v25  ;;  %v6228_v34 = vpop.f32.mrf.mxu1 }
  0xdf   : > { %v664_v35 = vsel %vm335_vm0, %v518_v32, 0.0  ;;  %v1088_v41 = vsel %vm335_vm0, %v6228_v34, 0.0 }
  0xe0   : > { %v665_v36 = vadd.f32 %v664_v35, %v663_v33  ;;  %v6175_v37 = vpop.f32.mrf.mxu0  ;;  %v940_v38 = vpop.f32.mrf.mxu1  ;;  %v1085_v39 = vadd.f32 %v1084_v29, %v1083_v31 }
  0xe1   : > { %v1086_v42 = vsel %vm335_vm0, %v940_v38, 0.0  ;;  %v670_v52 = vsel %vm335_vm0, %v6175_v37, 0.0 }
  0xe2   : > { %v1087_v43 = vadd.f32 %v1086_v42, %v1085_v39  ;;  %v528_v44 = vpop.f32.mrf.mxu0  ;;  %v667_v45 = vadd.f32 %v666_v40, %v665_v36  ;;  %v6231_v46 = vpop.f32.mrf.mxu1 }
  0xe3   : > { %v668_v47 = vsel %vm335_vm0, %v528_v44, 0.0  ;;  %v1092_v53 = vsel %vm335_vm0, %v6231_v46, 0.0 }
  0xe4   : > { %v669_v48 = vadd.f32 %v668_v47, %v667_v45  ;;  %v6178_v49 = vpop.f32.mrf.mxu0  ;;  %v950_v50 = vpop.f32.mrf.mxu1  ;;  %v1089_v51 = vadd.f32 %v1088_v41, %v1087_v43 }
  0xe5   : > { %v1090_v54 = vsel %vm335_vm0, %v950_v50, 0.0  ;;  %v674_v0 = vsel %vm335_vm0, %v6178_v49, 0.0 }
  0xe6   : > { %v1091_v55 = vadd.f32 %v1090_v54, %v1089_v51  ;;  %v538_v56 = vpop.f32.mrf.mxu0  ;;  %v671_v57 = vadd.f32 %v670_v52, %v669_v48  ;;  %v6234_v58 = vpop.f32.mrf.mxu1 }
  0xe7   : > { %v672_v59 = vsel %vm335_vm0, %v538_v56, 0.0  ;;  %v1096_v1 = vsel %vm335_vm0, %v6234_v58, 0.0 }
  0xe8   : > { %v673_v60 = vadd.f32 %v672_v59, %v671_v57  ;;  %v6181_v61 = vpop.f32.mrf.mxu0  ;;  %v960_v62 = vpop.f32.mrf.mxu1  ;;  %v1093_v63 = vadd.f32 %v1092_v53, %v1091_v55 }
  0xe9   : > { %v1094_v2 = vsel %vm335_vm0, %v960_v62, 0.0  ;;  %v678_v14 = vsel %vm335_vm0, %v6181_v61, 0.0 }
  0xea   : > { %v1095_v3 = vadd.f32 %v1094_v2, %v1093_v63  ;;  %v548_v4 = vpop.f32.mrf.mxu0  ;;  %v675_v5 = vadd.f32 %v674_v0, %v673_v60  ;;  %v6237_v6 = vpop.f32.mrf.mxu1 }
  0xeb   : > { %v676_v7 = vsel %vm335_vm0, %v548_v4, 0.0  ;;  %v1100_v15 = vsel %vm335_vm0, %v6237_v6, 0.0 }
  0xec   : > { %v677_v8 = vadd.f32 %v676_v7, %v675_v5  ;;  %v6184_v11 = vpop.f32.mrf.mxu0  ;;  %v970_v12 = vpop.f32.mrf.mxu1  ;;  %v1097_v13 = vadd.f32 %v1096_v1, %v1095_v3 }
  0xed   : > { %v1098_v16 = vsel %vm335_vm0, %v970_v12, 0.0  ;;  %v682_v26 = vsel %vm335_vm0, %v6184_v11, 0.0 }
  0xee   : > { %v1099_v17 = vadd.f32 %v1098_v16, %v1097_v13  ;;  %v558_v18 = vpop.f32.mrf.mxu0  ;;  %v679_v19 = vadd.f32 %v678_v14, %v677_v8  ;;  %v6240_v20 = vpop.f32.mrf.mxu1 }
  0xef   : > { %v680_v21 = vsel %vm335_vm0, %v558_v18, 0.0  ;;  %v1104_v27 = vsel %vm335_vm0, %v6240_v20, 0.0 }
  0xf0   : > { %v681_v22 = vadd.f32 %v680_v21, %v679_v19  ;;  %v6187_v23 = vpop.f32.mrf.mxu0  ;;  %v980_v24 = vpop.f32.mrf.mxu1  ;;  %v1101_v25 = vadd.f32 %v1100_v15, %v1099_v17 }
  0xf1   : > { %v1102_v28 = vsel %vm335_vm0, %v980_v24, 0.0  ;;  %v686_v38 = vsel %vm335_vm0, %v6187_v23, 0.0 }
  0xf2   : > { %v1103_v29 = vadd.f32 %v1102_v28, %v1101_v25  ;;  %v568_v30 = vpop.f32.mrf.mxu0  ;;  %v683_v31 = vadd.f32 %v682_v26, %v681_v22  ;;  %v6243_v32 = vpop.f32.mrf.mxu1 }
  0xf3   : > { %v684_v33 = vsel %vm335_vm0, %v568_v30, 0.0  ;;  %v1108_v39 = vsel %vm335_vm0, %v6243_v32, 0.0 }
  0xf4   : > { %v685_v34 = vadd.f32 %v684_v33, %v683_v31  ;;  %v6190_v35 = vpop.f32.mrf.mxu0  ;;  %v990_v36 = vpop.f32.mrf.mxu1  ;;  %v1105_v37 = vadd.f32 %v1104_v27, %v1103_v29 }
  0xf5   : > { %v1106_v40 = vsel %vm335_vm0, %v990_v36, 0.0  ;;  %v690_v50 = vsel %vm335_vm0, %v6190_v35, 0.0 }
  0xf6   : > { %v1107_v41 = vadd.f32 %v1106_v40, %v1105_v37  ;;  %v578_v42 = vpop.f32.mrf.mxu0  ;;  %v687_v43 = vadd.f32 %v686_v38, %v685_v34  ;;  %v6246_v44 = vpop.f32.mrf.mxu1 }
  0xf7   : > { %v688_v45 = vsel %vm335_vm0, %v578_v42, 0.0  ;;  %v1112_v51 = vsel %vm335_vm0, %v6246_v44, 0.0 }
  0xf8   : > { %v689_v46 = vadd.f32 %v688_v45, %v687_v43  ;;  %v6193_v47 = vpop.f32.mrf.mxu0  ;;  %v1000_v48 = vpop.f32.mrf.mxu1  ;;  %v1109_v49 = vadd.f32 %v1108_v39, %v1107_v41 }
  0xf9   : > { %v1110_v52 = vsel %vm335_vm0, %v1000_v48, 0.0  ;;  %v694_v62 = vsel %vm335_vm0, %v6193_v47, 0.0 }
  0xfa   : > { %v1111_v53 = vadd.f32 %v1110_v52, %v1109_v49  ;;  %v588_v54 = vpop.f32.mrf.mxu0  ;;  %v691_v55 = vadd.f32 %v690_v50, %v689_v46  ;;  %v6249_v56 = vpop.f32.mrf.mxu1 }
  0xfb   : > { %v692_v57 = vsel %vm335_vm0, %v588_v54, 0.0  ;;  %v1116_v63 = vsel %vm335_vm0, %v6249_v56, 0.0 }
  0xfc   : > { %v693_v58 = vadd.f32 %v692_v57, %v691_v55  ;;  %v6196_v59 = vpop.f32.mrf.mxu0  ;;  %v1010_v60 = vpop.f32.mrf.mxu1  ;;  %v1113_v61 = vadd.f32 %v1112_v51, %v1111_v53  ;;  %v1852_v51 = vlaneseq }
  0xfd   : > { %v1114_v0 = vsel %vm335_vm0, %v1010_v60, 0.0  ;;  %v698_v12 = vsel %vm335_vm0, %v6196_v59, 0.0 }
  0xfe   : > { %v1115_v1 = vadd.f32 %v1114_v0, %v1113_v61  ;;  %v598_v2 = vpop.f32.mrf.mxu0  ;;  %v695_v3 = vadd.f32 %v694_v62, %v693_v58  ;;  %v6252_v4 = vpop.f32.mrf.mxu1  ;;  %v7517_v0 = vshrl.u32 %v1852_v51, 7 }
  0xff   : > { %v696_v5 = vsel %vm335_vm0, %v598_v2, 0.0  ;;  %v1120_v13 = vsel %vm335_vm0, %v6252_v4, 0.0 }
 0x100   : > { %v697_v6 = vadd.f32 %v696_v5, %v695_v3  ;;  %v6199_v7 = vpop.f32.mrf.mxu0  ;;  %v1020_v8 = vpop.f32.mrf.mxu1  ;;  %v1117_v11 = vadd.f32 %v1116_v63, %v1115_v1 }
 0x101   : > { %v1118_v14 = vsel %vm335_vm0, %v1020_v8, 0.0  ;;  %v702_v24 = vsel %vm335_vm0, %v6199_v7, 0.0 }
 0x102   : > { %v1119_v15 = vadd.f32 %v1118_v14, %v1117_v11  ;;  %v608_v16 = vpop.f32.mrf.mxu0  ;;  %v699_v17 = vadd.f32 %v698_v12, %v697_v6  ;;  %v6255_v18 = vpop.f32.mrf.mxu1 }
 0x103   : > { %v700_v19 = vsel %vm335_vm0, %v608_v16, 0.0  ;;  %v1124_v25 = vsel %vm335_vm0, %v6255_v18, 0.0  ;;  %v1855_v16 = vadd.s32 16, %v7517_v0 }
 0x104   : > { %v701_v20 = vadd.f32 %v700_v19, %v699_v17  ;;  %v6202_v21 = vpop.f32.mrf.mxu0  ;;  %v1030_v22 = vpop.f32.mrf.mxu1  ;;  %v1121_v23 = vadd.f32 %v1120_v13, %v1119_v15  ;;  %v7526_v15 = vld [vmem:[%s9715_s3] ss:$0 sm:$0xff] }
 0x105   : > { %v1122_v26 = vsel %vm335_vm0, %v1030_v22, 0.0  ;;  %v706_v36 = vsel %vm335_vm0, %v6202_v21, 0.0 }
 0x106   : > { %v1123_v27 = vadd.f32 %v1122_v26, %v1121_v23  ;;  %v618_v28 = vpop.f32.mrf.mxu0  ;;  %v703_v29 = vadd.f32 %v702_v24, %v701_v20  ;;  %v6258_v30 = vpop.f32.mrf.mxu1  ;;  %v1857_v20 = vadd.s32 32, %v7517_v0  ;;  %v1907_v26 = vand.u32 15, %v1855_v16 }
 0x107   : > { %v704_v31 = vsel %vm335_vm0, %v618_v28, 0.0  ;;  %v1128_v37 = vsel %vm335_vm0, %v6258_v30, 0.0 }
 0x108   : > { %v705_v32 = vadd.f32 %v704_v31, %v703_v29  ;;  %v6205_v33 = vpop.f32.mrf.mxu0  ;;  %v1040_v34 = vpop.f32.mrf.mxu1  ;;  %v1125_v35 = vadd.f32 %v1124_v25, %v1123_v27  ;;  %v1893_v29 = vand.u32 15, %v7517_v0  ;;  %v1921_v30 = vand.u32 15, %v1857_v20 }
 0x109   : > { %v1126_v38 = vsel %vm335_vm0, %v1040_v34, 0.0  ;;  %v710_v48 = vsel %vm335_vm0, %v6205_v33, 0.0  ;;  %vm7552_vm5 = vcmp.eq.s32.totalorder %v1907_v26, 0 }
 0x10a   : > { %v1127_v39 = vadd.f32 %v1126_v38, %v1125_v35  ;;  %v628_v40 = vpop.f32.mrf.mxu0  ;;  %v707_v41 = vadd.f32 %v706_v36, %v705_v32  ;;  %v6261_v42 = vpop.f32.mrf.mxu1  ;;  %v1859_v35 = vadd.s32 48, %v7517_v0  ;;  %vm7556_vm6 = vcmp.eq.s32.totalorder %v1893_v29, 0 }
 0x10b   : > { %v708_v43 = vsel %vm335_vm0, %v628_v40, 0.0  ;;  %v1132_v49 = vsel %vm335_vm0, %v6261_v42, 0.0  ;;  %vm7562_vm7 = vcmp.eq.s32.totalorder %v1921_v30, 0 }
 0x10c   : > { %v709_v44 = vadd.f32 %v708_v43, %v707_v41  ;;  %v6208_v45 = vpop.f32.mrf.mxu0  ;;  %v1050_v46 = vpop.f32.mrf.mxu1  ;;  %v1129_v47 = vadd.f32 %v1128_v37, %v1127_v39  ;;  %v5526_v39 = vld [vmem:[%s9716_s4 + $0x1e8] sm:$0xff] }
 0x10d   : > { %v1130_v50 = vsel %vm335_vm0, %v1050_v46, 0.0  ;;  %v714_v61 = vsel %vm335_vm0, %v6208_v45, 0.0 }
 0x10e   : > { %v1131_v52 = vadd.f32 %v1130_v50, %v1129_v47  ;;  %v638_v53 = vpop.f32.mrf.mxu0  ;;  %v711_v54 = vadd.f32 %v710_v48, %v709_v44  ;;  %v6264_v55 = vpop.f32.mrf.mxu1 }
 0x10f   : > { %v712_v56 = vsel %vm335_vm0, %v638_v53, 0.0  ;;  %v1136_v62 = vsel %vm335_vm0, %v6264_v55, 0.0 }
 0x110   : > { %v713_v57 = vadd.f32 %v712_v56, %v711_v54  ;;  %v6211_v58 = vpop.f32.mrf.mxu0  ;;  %v1060_v59 = vpop.f32.mrf.mxu1  ;;  %v1133_v60 = vadd.f32 %v1132_v49, %v1131_v52  ;;  %v5511_v49 = vld [vmem:[%s9716_s4 + $0x170] sm:$0xff]  ;;  %v1935_v54 = vand.u32 15, %v1859_v35 }
 0x111   : > { %v1134_v63 = vsel %vm335_vm0, %v1060_v59, 0.0  ;;  %v718_v12 = vsel %vm335_vm0, %v6211_v58, 0.0 }
 0x112   : > { %v1135_v1 = vadd.f32 %v1134_v63, %v1133_v60  ;;  %v648_v2 = vpop.f32.mrf.mxu0  ;;  %v715_v3 = vadd.f32 %v714_v61, %v713_v57  ;;  %v6267_v4 = vpop.f32.mrf.mxu1  ;;  %vm7643_vm8 = vcmp.eq.s32.totalorder %v1935_v54, 0 }
 0x113   : > { %v716_v5 = vsel %vm335_vm0, %v648_v2, 0.0  ;;  %v1140_v13 = vsel %vm335_vm0, %v6267_v4, 0.0  ;;  %v7617_v4 = vadd.s32 96, %v7517_v0 }
 0x114   : > { %v717_v6 = vadd.f32 %v716_v5, %v715_v3  ;;  %v1070_v7 = vpop.f32.mrf.mxu1  ;;  %v1137_v8 = vadd.f32 %v1136_v62, %v1135_v1  ;;  %v6280_v11 = vpop.f32.mrf.mxu0  ;;  %v1863_v62 = vadd.s32 80, %v7517_v0  ;;  %v5510_v3 = vld [vmem:[%s9716_s4 + $0x168] sm:$0xff] }
 0x115   : > { %v1138_v14 = vsel %vm335_vm0, %v1070_v7, 0.0  ;;  %v1433_v23 = vadd.f32 %v6280_v11, %v7526_v15 }
 0x116   : > { %v7529_v17 = vadd.f32 %v718_v12, %v717_v6  ;;  %v1139_v18 = vadd.f32 %v1138_v14, %v1137_v8  ;;  %v1427_v19 = vpop.f32.mrf.mxu0  ;;  %v5527_v12 = vld [vmem:[%s9716_s4 + $0x1f0] sm:$0xff] }
 0x117   : > { %v1428_v21 = vadd.f32 %v7526_v15, %v1427_v19  ;;  %v7543_v33 = vmax.f32 %v1433_v23, 0.0 }
 0x118   : > { %9835 = vst [vmem:[#allocation2_spill] sm:$0xff] %v7529_v17  ;;  %v7533_v22 = vadd.f32 %v1140_v13, %v1139_v18  ;;  %v6283_v24 = vpop.f32.mrf.mxu0 }
 0x119   : > { %v1443_v25 = vadd.f32 %v6283_v24, %v7526_v15  ;;  %v7537_v27 = vmax.f32 %v1428_v21, 0.0  ;;  %9838 = vst [vmem:[#allocation5_spill] sm:$0xff] %v7543_v33  ;;  %v1757_v53 = vrot.slane %v7543_v33, 1  ;;  %v1656_v61 = vrot.slane %v7543_v33, 7 }
 0x11a   : > { %9836 = vst [vmem:[#allocation3_spill] sm:$0xff] %v7533_v22  ;;  %v1437_v28 = vpop.f32.mrf.mxu0  ;;  %v1963_v24 = vand.u32 15, %v1863_v62  ;;  %v5525_v62 = vld [vmem:[%s9716_s4 + $0x1e0] sm:$0xff]  ;;  %v7748_v21 = vadd.s32 128, %v7517_v0 }
 0x11b   : > { %v7540_v31 = vmax.f32 %v1443_v25, 0.0  ;;  %v1438_v32 = vadd.f32 %v7526_v15, %v1437_v28  ;;  %v1654_v42 = vrot.slane %v7537_v27, 7  ;;  %v9720_v43 = vrot.slane %v7537_v27, 1  ;;  %v5509_v28 = vld [vmem:[%s9716_s4 + $0x160] sm:$0xff] }
 0x11c   : > { %v6286_v34 = vpop.f32.mrf.mxu0  ;;  %vm7689_vm10 = vcmp.eq.s32.totalorder %v1963_v24, 0 }
 0x11d   : > { %9837 = vst [vmem:[#allocation4_spill] sm:$0xff] %v7540_v31  ;;  %v7546_v36 = vmax.f32 %v1438_v32, 0.0  ;;  %v1453_v37 = vadd.f32 %v6286_v34, %v7526_v15  ;;  %v7550_v38 = vrot.slane %v7540_v31, 7  ;;  %v7571_v48 = vrot.slane %v7540_v31, 1 }
 0x11e   : > { %v1447_v40 = vpop.f32.mrf.mxu0  ;;  %v7611_v2 = vsel %vm1751_vm4, %v9720_v43, %v1757_v53  ;;  %v7641_v19 = vsel %vm1650_vm3, %v1654_v42, %v1656_v61 }
 0x11f   : > { %9839 = vst [vmem:[#allocation6_spill] sm:$0xff] %v7546_v36  ;;  %v1448_v45 = vadd.f32 %v7526_v15, %v1447_v40  ;;  %6358 = vmatprep.mubr.f32.mxu1 %v7546_v36  ;;  %v1651_v46 = vrot.slane %v7546_v36, 7  ;;  %v1752_v47 = vrot.slane %v7546_v36, 1  ;;  %v7576_v50 = vmax.f32 %v1453_v37, 0.0 }
 0x120   : > { %6359 = vmatmul.mubr.f32.vlgmr.msra.gmra.mxu1 %v7540_v31  ;;  %v6289_v51 = vpop.f32.mrf.mxu0  ;;  %v1655_v52 = vsel %vm1650_vm3, %v7550_v38, %v1654_v42  ;;  %v1977_v42 = vand.u32 15, %v7617_v4 }
 0x121   : > { %9846 = vst [vmem:[#allocation7_spill] sm:$0xff] %v7576_v50  ;;  %v7582_v55 = vmax.f32 %v1448_v45, 0.0  ;;  %6361 = vmatprep.mubr.f32.mxu1 %v7537_v27  ;;  %6487 = vmatpush3.msra.mxu1 %v7448_v9  ;;  %v1463_v56 = vadd.f32 %v6289_v51, %v7526_v15  ;;  %v1750_v57 = vsel %vm1650_vm3, %v7546_v36, %v1651_v46  ;;  %v1861_v9 = vadd.s32 64, %v7517_v0 }
 0x122   : > { %v7593_v58 = vsel %vm1751_vm4, %v1752_v47, %v7571_v48  ;;  %6488 = vmatprep.subr.mxu1 %v5511_v49  ;;  %v1457_v60 = vpop.f32.mrf.mxu0  ;;  %v7603_v63 = vsel %vm1650_vm3, %v1651_v46, %v7550_v38  ;;  %v7626_v6 = vsel %vm7552_vm5, %v7611_v2, %v1655_v52  ;;  %v1658_v8 = vsel %vm1650_vm3, %v1656_v61, %v1651_v46 }
 0x123   : > { %9847 = vst [vmem:[#allocation8_spill] sm:$0xff] %v7582_v55  ;;  %v2429_v59 = vsel %vm7556_vm6, %v7593_v58, %v1750_v57  ;;  %v1458_v1 = vadd.f32 %v7526_v15, %v1457_v60  ;;  %6489 = vmatpush3.msra.mxu1 %v5511_v49  ;;  %v7619_v5 = vmax.f32 %v1463_v56, 0.0  ;;  %v1659_v11 = vrot.slane %v7582_v55, 7  ;;  %v5508_v56 = vld [vmem:[%s9716_s4 + $0x158] sm:$0xff] }
 0x124   : > { %6438 = vmatprep.mubr.f32.mxu0 %v2429_v59  ;;  %6362 = vmatmul.mubr.f32.gmra.mxu1 %v7543_v33  ;;  %v6292_v7 = vpop.f32.mrf.mxu0  ;;  %v1760_v16 = vrot.slane %v7582_v55, 1  ;;  %v1762_v18 = vrot.slane %v7576_v50, 1  ;;  %v1949_v23 = vand.u32 15, %v1861_v9  ;;  %v7652_v26 = vsel %vm7562_vm7, %v7593_v58, %v1658_v8 }
 0x125   : > { %9848 = vst [vmem:[#allocation9_spill] sm:$0xff] %v7619_v5  ;;  %6439 = vmatmul.mubr.f32.vlgmr.msra.gmra.mxu0 %v7603_v63  ;;  %v7633_v13 = vmax.f32 %v1458_v1, 0.0  ;;  %6364 = vmatprep.mubr.f32.mxu1 %v7546_v36  ;;  %v1473_v14 = vadd.f32 %v6292_v7, %v7526_v15  ;;  %v1661_v29 = vrot.slane %v7576_v50, 7  ;;  %v1660_v32 = vsel %vm1650_vm3, %v7550_v38, %v1659_v11 }
 0x126   : > { %6441 = vmatprep.mubr.f32.mxu0 %v7626_v6  ;;  %6490 = vmatprep.subr.mxu1 %v5510_v3  ;;  %v1467_v20 = vpop.f32.mrf.mxu0  ;;  %v7670_v34 = vsel %vm1751_vm4, %v1760_v16, %v1762_v18  ;;  %v1766_v37 = vrot.slane %v7619_v5, 1  ;;  %vm7685_vm9 = vcmp.eq.s32.totalorder %v1949_v23, 0  ;;  %v7694_v49 = vadd.s32 112, %v7517_v0 }
 0x127   : > { %9849 = vst [vmem:[#allocation10_spill] sm:$0xff] %v7633_v13  ;;  %6567 = vmatpush3.msra.mxu0 %v7454_v10  ;;  %v1468_v25 = vadd.f32 %v7526_v15, %v1467_v20  ;;  %6491 = vmatpush3.msra.mxu1 %v5510_v3  ;;  %v1663_v30 = vrot.slane %v7633_v13, 7  ;;  %9852 = vst [vmem:[#allocation11_spill] sm:$0xff] %v7670_v34  ;;  %v1764_v35 = vrot.slane %v7633_v13, 1  ;;  %v7677_v40 = vmax.f32 %v1473_v14, 0.0 }
 0x128   : > { %6568 = vmatprep.subr.mxu0 %v5527_v12  ;;  %6365 = vmatmul.mubr.f32.gmra.mxu1 %v7540_v31  ;;  %v6295_v10 = vpop.f32.mrf.mxu0  ;;  %v7702_v54 = vsel %vm7643_vm8, %v7670_v34, %v1660_v32  ;;  %v1665_v61 = vrot.slane %v7619_v5, 7  ;;  %v7727_v1 = vsel %vm1751_vm4, %v1757_v53, %v1752_v47  ;;  %vm7736_vm11 = vcmp.eq.s32.totalorder %v1977_v42, 0 }
 0x129   : > { %6442 = vmatmul.mubr.f32.gmra.mxu0 %v7641_v19  ;;  %9853 = vst [vmem:[#allocation12_spill] sm:$0xff] %v7677_v40  ;;  %v7679_v41 = vmax.f32 %v1468_v25, 0.0  ;;  %6367 = vmatprep.mubr.f32.mxu1 %v7582_v55  ;;  %v1483_v38 = vadd.f32 %v6295_v10, %v7526_v15  ;;  %v1664_v57 = vsel %vm1650_vm3, %v1661_v29, %v1663_v30  ;;  %v1770_v8 = vrot.slane %v7677_v40, 1 }
 0x12a   : > { %6444 = vmatprep.mubr.f32.mxu0 %v7652_v26  ;;  %6492 = vmatprep.subr.mxu1 %v5509_v28  ;;  %v1477_v44 = vpop.f32.mrf.mxu0  ;;  %v7715_v60 = vsel %vm1751_vm4, %v1764_v35, %v1766_v37  ;;  %v7743_v47 = vsel %vm1650_vm3, %v1659_v11, %v1661_v29  ;;  %v1669_v14 = vrot.slane %v7677_v40, 7  ;;  %v1991_v20 = vand.u32 15, %v7694_v49  ;;  %v5507_v11 = vld [vmem:[%s9716_s4 + $0x150] sm:$0xff] }
 0x12b   : > { %9854 = vst [vmem:[#allocation13_spill] sm:$0xff] %v7679_v41  ;;  %6569 = vmatpush3.msra.mxu0 %v5527_v12  ;;  %v7696_v51 = vmax.f32 %v1483_v38, 0.0  ;;  %v1478_v52 = vadd.f32 %v7526_v15, %v1477_v44  ;;  %6493 = vmatpush3.msra.mxu1 %v5509_v28  ;;  %9860 = vst [vmem:[#allocation15_spill] sm:$0xff] %v7715_v60  ;;  %v1667_v9 = vrot.slane %v7679_v41, 7  ;;  %v1768_v7 = vrot.slane %v7679_v41, 1 }
 0x12c   : > { %6570 = vmatprep.subr.mxu0 %v5526_v39  ;;  %6368 = vmatmul.mubr.f32.gmra.mxu1 %v7576_v50  ;;  %v6298_v59 = vpop.f32.mrf.mxu0  ;;  %v7756_v25 = vsel %vm7685_vm9, %v7715_v60, %v1664_v57  ;;  %v7775_v38 = vsel %vm1751_vm4, %v7571_v48, %v1760_v16  ;;  %v7780_v42 = vsel %vm1751_vm4, %v1762_v18, %v1764_v35  ;;  %v7799_v57 = vadd.s32 144, %v7517_v0 }
 0x12d   : > { %9859 = vst [vmem:[#allocation14_spill] sm:$0xff] %v7696_v51  ;;  %6445 = vmatmul.mubr.f32.gmra.mxu0 %v7603_v63  ;;  %v7729_v3 = vmax.f32 %v1478_v52, 0.0  ;;  %6370 = vmatprep.mubr.f32.mxu1 %v7633_v13  ;;  %v1493_v4 = vadd.f32 %v6298_v59, %v7526_v15  ;;  %v9722_v28 = vrot.slane %v7696_v51, 1  ;;  %v1668_v10 = vsel %vm1650_vm3, %v1665_v61, %v1667_v9 }
 0x12e   : > { %6447 = vmatprep.mubr.f32.mxu0 %v7702_v54  ;;  %6494 = vmatprep.subr.mxu1 %v5508_v56  ;;  %v1487_v53 = vpop.f32.mrf.mxu0  ;;  %v7788_v49 = vsel %vm1751_vm4, %v1768_v7, %v1770_v8  ;;  %v7794_v16 = vsel %vm1650_vm3, %v1663_v30, %v1665_v61  ;;  %v1673_v35 = vrot.slane %v7696_v51, 7  ;;  %v5506_v30 = vld [vmem:[%s9716_s4 + $0x148] sm:$0xff]  ;;  %vm7847_vm12 = vcmp.eq.s32.totalorder %v1991_v20, 0 }
 0x12f   : > { %9861 = vst [vmem:[#allocation16_spill] sm:$0xff] %v7729_v3  ;;  %6571 = vmatpush3.msra.mxu0 %v5526_v39  ;;  %v7750_v23 = vmax.f32 %v1493_v4, 0.0  ;;  %v1488_v24 = vadd.f32 %v7526_v15, %v1487_v53  ;;  %6495 = vmatpush3.msra.mxu1 %v5508_v56  ;;  %v1772_v32 = vrot.slane %v7729_v3, 1  ;;  %v5524_v39 = vld [vmem:[%s9716_s4 + $0x1d8] sm:$0xff]  ;;  %9866 = vst [vmem:[#allocation19_spill] sm:$0xff] %v7788_v49  ;;  %v1671_v52 = vrot.slane %v7729_v3, 7 }
 0x130   : > { %6572 = vmatprep.subr.mxu0 %v5525_v62  ;;  %6371 = vmatmul.mubr.f32.gmra.mxu1 %v7619_v5  ;;  %v6301_v29 = vpop.f32.mrf.mxu0  ;;  %v2005_v56 = vand.u32 15, %v7748_v21  ;;  %v2019_v22 = vand.u32 15, %v7799_v57 }
 0x131   : > { %9864 = vst [vmem:[#allocation17_spill] sm:$0xff] %v7750_v23  ;;  %6448 = vmatmul.mubr.f32.gmra.mxu0 %v7743_v47  ;;  %v7782_v44 = vmax.f32 %v1488_v24, 0.0  ;;  %6373 = vmatprep.mubr.f32.mxu1 %v7679_v41  ;;  %v1503_v45 = vadd.f32 %v6301_v29, %v7526_v15  ;;  %v9723_v53 = vrot.slane %v7750_v23, 1  ;;  %v7823_v29 = vsel %vm1751_vm4, %v1766_v37, %v1768_v7 }
 0x132   : > { %6450 = vmatprep.mubr.f32.mxu0 %v7756_v25  ;;  %6496 = vmatprep.subr.mxu1 %v5507_v11  ;;  %v1497_v18 = vpop.f32.mrf.mxu0  ;;  %v7837_v43 = vsel %vm1751_vm4, %v1772_v32, %v9722_v28  ;;  %v7842_v37 = vsel %vm1650_vm3, %v1667_v9, %v1669_v14  ;;  %v5505_v9 = vld [vmem:[%s9716_s4 + $0x140] sm:$0xff]  ;;  %vm7886_vm13 = vcmp.eq.s32.totalorder %v2005_v56, 0  ;;  %v7892_v17 = vsel %vm1650_vm3, %v1671_v52, %v1673_v35 }
 0x133   : > { %9865 = vst [vmem:[#allocation18_spill] sm:$0xff] %v7782_v44  ;;  %6573 = vmatpush3.msra.mxu0 %v5525_v62  ;;  %v7801_v59 = vmax.f32 %v1503_v45, 0.0  ;;  %v1498_v4 = vadd.f32 %v7526_v15, %v1497_v18  ;;  %6497 = vmatpush3.msra.mxu1 %v5507_v11  ;;  %v9721_v61 = vrot.slane %v7782_v44, 7  ;;  %v7814_v62 = vsel %vm7689_vm10, %v7788_v49, %v1668_v10  ;;  %v5523_v11 = vld [vmem:[%s9716_s4 + $0x1d0] sm:$0xff] }
 0x134   : > { %6574 = vmatprep.subr.mxu0 %v5524_v39  ;;  %6374 = vmatmul.mubr.f32.gmra.mxu1 %v7677_v40  ;;  %v6304_v21 = vpop.f32.mrf.mxu0  ;;  %v1776_v24 = vrot.slane %v7782_v44, 1  ;;  %v7826_v45 = vsel %vm1751_vm4, %v1770_v8, %v1772_v32  ;;  %v1672_v10 = vsel %vm1650_vm3, %v1669_v14, %v1671_v52  ;;  %9869 = vst [vmem:[#allocation22_spill] sm:$0xff] %v7837_v43  ;;  %9879 = vst [vmem:[#allocation27_spill] sm:$0xff] %v7892_v17  ;;  %v5504_v52 = vld [vmem:[%s9716_s4 + $0x138] sm:$0xff] }
 0x135   : > { %9867 = vst [vmem:[#allocation20_spill] sm:$0xff] %v7801_v59  ;;  %6451 = vmatmul.mubr.f32.gmra.mxu0 %v7794_v16  ;;  %v7828_v18 = vmax.f32 %v1498_v4, 0.0  ;;  %6376 = vmatprep.mubr.f32.mxu1 %v7729_v3  ;;  %v1513_v46 = vadd.f32 %v6304_v21, %v7526_v15  ;;  %v1676_v8 = vsel %vm1650_vm3, %v1673_v35, %v9721_v61  ;;  %v1677_v21 = vrot.slane %v7750_v23, 7 }
 0x136   : > { %6453 = vmatprep.mubr.f32.mxu0 %v7814_v62  ;;  %6498 = vmatprep.subr.mxu1 %v5506_v30  ;;  %v1507_v7 = vpop.f32.mrf.mxu0  ;;  %v7859_v14 = vsel %vm1751_vm4, %v1776_v24, %v9723_v53  ;;  %v5522_v53 = vld [vmem:[%s9716_s4 + $0x1c8] sm:$0xff]  ;;  %v9875_v61 = vrot.slane %v7696_v51, 1  ;;  %v9882_v4 = vrot.slane %v7801_v59, 1  ;;  %vm7934_vm14 = vcmp.eq.s32.totalorder %v2019_v22, 0 }
 0x137   : > { %9868 = vst [vmem:[#allocation21_spill] sm:$0xff] %v7828_v18  ;;  %6575 = vmatpush3.msra.mxu0 %v5524_v39  ;;  %v1508_v32 = vadd.f32 %v7526_v15, %v1507_v7  ;;  %6499 = vmatpush3.msra.mxu1 %v5506_v30  ;;  %9872 = vst [vmem:[#allocation23_spill] sm:$0xff] %v7859_v14  ;;  %v7863_v28 = vmax.f32 %v1513_v46, 0.0  ;;  %v7870_v39 = vsel %vm7736_vm11, %v7837_v43, %v1672_v10 }
 0x138   : > { %6576 = vmatprep.subr.mxu0 %v5523_v11  ;;  %6377 = vmatmul.mubr.f32.gmra.mxu1 %v7696_v51  ;;  %9874 = vst [vmem:[#allocation25_spill] sm:$0xff] %v7870_v39  ;;  %v6307_v30 = vpop.f32.mrf.mxu0  ;;  %v1780_v7 = vrot.slane %v7828_v18, 1  ;;  %v7879_v46 = vsel %vm1751_vm4, %v9875_v61, %v1776_v24  ;;  %v7897_v24 = vsel %vm7847_vm12, %v7859_v14, %v1676_v8  ;;  %v9881_v35 = vrot.slane %v7828_v18, 7 }
 0x139   : > { %9873 = vst [vmem:[#allocation24_spill] sm:$0xff] %v7863_v28  ;;  %6454 = vmatmul.mubr.f32.gmra.mxu0 %v7842_v37  ;;  %v7881_v20 = vmax.f32 %v1508_v32, 0.0  ;;  %6379 = vmatprep.mubr.f32.mxu1 %v7782_v44  ;;  %v1523_v12 = vadd.f32 %v6307_v30, %v7526_v15  ;;  %9880 = vst [vmem:[#allocation28_spill] sm:$0xff] %v7897_v24  ;;  %v1873_v32 = vadd.s32 160, %v7517_v0  ;;  %v1875_v30 = vadd.s32 176, %v7517_v0 }
 0x13a   : > { %6456 = vmatprep.mubr.f32.mxu0 %v7870_v39  ;;  %6500 = vmatprep.subr.mxu1 %v5505_v9  ;;  %v1517_v61 = vpop.f32.mrf.mxu0  ;;  %v1680_v57 = vsel %vm1650_vm3, %v1677_v21, %v9881_v35  ;;  %v7911_v8 = vsel %vm1751_vm4, %v1780_v7, %v9882_v4  ;;  %v1681_v51 = vrot.slane %v7801_v59, 7  ;;  %v1786_v3 = vrot.slane %v7863_v28, 1  ;;  %v5521_v35 = vld [vmem:[%s9716_s4 + $0x1c0] sm:$0xff] }
 0x13b   : > { %9876 = vst [vmem:[#allocation26_spill] sm:$0xff] %v7881_v20  ;;  %6577 = vmatpush3.msra.mxu0 %v5523_v11  ;;  %v1518_v56 = vadd.f32 %v7526_v15, %v1517_v61  ;;  %6501 = vmatpush3.msra.mxu1 %v5505_v9  ;;  %9883 = vst [vmem:[#allocation29_spill] sm:$0xff] %v7911_v8  ;;  %v1784_v61 = vrot.slane %v7881_v20, 1  ;;  %v9884_v4 = vrot.slane %v7750_v23, 1  ;;  %v7927_v41 = vmax.f32 %v1523_v12, 0.0 }
 0x13c   : > { %6578 = vmatprep.subr.mxu0 %v5522_v53  ;;  %6380 = vmatmul.mubr.f32.gmra.mxu1 %v7750_v23  ;;  %v6310_v11 = vpop.f32.mrf.mxu0  ;;  %v9889_v50 = vrot.slane %v7782_v44, 7  ;;  %v2033_v12 = vand.u32 15, %v1873_v32  ;;  %v9893_v32 = vrot.slane %v7881_v20, 7  ;;  %v9898_v33 = vrot.slane %v7828_v18, 7 }
 0x13d   : > { %6457 = vmatmul.mubr.f32.gmra.mxu0 %v7892_v17  ;;  %v7925_v40 = vsel %vm1751_vm4, %v9884_v4, %v1780_v7  ;;  %9885 = vst [vmem:[#allocation30_spill] sm:$0xff] %v7927_v41  ;;  %v7929_v5 = vmax.f32 %v1518_v56, 0.0  ;;  %6382 = vmatprep.mubr.f32.mxu1 %v7828_v18  ;;  %v1533_v9 = vadd.f32 %v6310_v11, %v7526_v15  ;;  %v2047_v56 = vand.u32 15, %v1875_v30 }
 0x13e   : > { %6459 = vmatprep.mubr.f32.mxu0 %v7897_v24  ;;  %v7941_v23 = vsel %vm1650_vm3, %v9889_v50, %v1677_v21  ;;  %6502 = vmatprep.subr.mxu1 %v5504_v52  ;;  %v1527_v7 = vpop.f32.mrf.mxu0  ;;  %v7944_v4 = vadd.s32 192, %v7517_v0  ;;  %v7952_v11 = vsel %vm7886_vm13, %v7911_v8, %v1680_v57  ;;  %v5503_v50 = vld [vmem:[%s9716_s4 + $0x130] sm:$0xff]  ;;  %v1685_v21 = vrot.slane %v7863_v28, 7  ;;  %v5520_v57 = vld [vmem:[%s9716_s4 + $0x1b8] sm:$0xff] }
 0x13f   : > { %9886 = vst [vmem:[#allocation31_spill] sm:$0xff] %v7929_v5  ;;  %9890 = vst [vmem:[#allocation32_spill] sm:$0xff] %v7941_v23  ;;  %6579 = vmatpush3.msra.mxu0 %v5522_v53  ;;  %v7946_v55 = vmax.f32 %v1533_v9, 0.0  ;;  %v1528_v22 = vadd.f32 %v7526_v15, %v1527_v7  ;;  %6503 = vmatpush3.msra.mxu1 %v5504_v52  ;;  %v1684_v30 = vsel %vm1650_vm3, %v1681_v51, %v9893_v32 }
 0x140   : > { %9892 = vst [vmem:[#allocation34_spill] sm:$0xff] %v7952_v11  ;;  %6580 = vmatprep.subr.mxu0 %v5521_v35  ;;  %6383 = vmatmul.mubr.f32.gmra.mxu1 %v7801_v59  ;;  %v6313_v53 = vpop.f32.mrf.mxu0  ;;  %v7964_v10 = vsel %vm1751_vm4, %v1784_v61, %v1786_v3  ;;  %v1788_v52 = vrot.slane %v7929_v5, 1  ;;  %v9895_v9 = vrot.slane %v7801_v59, 1  ;;  %v1687_v31 = vrot.slane %v7929_v5, 7 }
 0x141   : > { %9891 = vst [vmem:[#allocation33_spill] sm:$0xff] %v7946_v55  ;;  %6460 = vmatmul.mubr.f32.gmra.mxu0 %v7941_v23  ;;  %9894 = vst [vmem:[#allocation35_spill] sm:$0xff] %v7964_v10  ;;  %v7975_v44 = vmax.f32 %v1528_v22, 0.0  ;;  %6385 = vmatprep.mubr.f32.mxu1 %v7881_v20  ;;  %v1543_v32 = vadd.f32 %v6313_v53, %v7526_v15  ;;  %v1790_v36 = vrot.slane %v7927_v41, 1  ;;  %vm7987_vm15 = vcmp.eq.s32.totalorder %v2033_v12, 0 }
 0x142   : > { %v7973_v7 = vsel %vm1751_vm4, %v9895_v9, %v1784_v61  ;;  %6462 = vmatprep.mubr.f32.mxu0 %v7952_v11  ;;  %v7985_v8 = vsel %vm1650_vm3, %v9898_v33, %v1681_v51  ;;  %6504 = vmatprep.subr.mxu1 %v5503_v50  ;;  %v1537_v61 = vpop.f32.mrf.mxu0  ;;  %v1689_v9 = vrot.slane %v7927_v41, 7  ;;  %vm7992_vm1 = vcmp.eq.s32.totalorder %v2047_v56, 0  ;;  %v5502_v33 = vld [vmem:[%s9716_s4 + $0x128] sm:$0xff] }
 0x143   : > { %9896 = vst [vmem:[#allocation36_spill] sm:$0xff] %v7973_v7  ;;  %9897 = vst [vmem:[#allocation37_spill] sm:$0xff] %v7975_v44  ;;  %6581 = vmatpush3.msra.mxu0 %v5521_v35  ;;  %v7996_v53 = vmax.f32 %v1543_v32, 0.0  ;;  %v1538_v18 = vadd.f32 %v7526_v15, %v1537_v61  ;;  %6505 = vmatpush3.msra.mxu1 %v5503_v50  ;;  %v8009_v35 = vsel %vm7934_vm14, %v7964_v10, %v1684_v30  ;;  %v5519_v61 = vld [vmem:[%s9716_s4 + $0x1b0] sm:$0xff] }
 0x144   : > { %9899 = vst [vmem:[#allocation38_spill] sm:$0xff] %v7985_v8  ;;  %6582 = vmatprep.subr.mxu0 %v5520_v57  ;;  %6386 = vmatmul.mubr.f32.gmra.mxu1 %v7863_v28  ;;  %9905 = vst [vmem:[#allocation40_spill] sm:$0xff] %v8009_v35  ;;  %v6316_v56 = vpop.f32.mrf.mxu0  ;;  %v1792_v50 = vrot.slane %v7975_v44, 1  ;;  %v2061_v32 = vand.u32 15, %v7944_v4  ;;  %v8017_v12 = vsel %vm1751_vm4, %v1786_v3, %v1788_v52  ;;  %v9909_v4 = vrot.slane %v7881_v20, 7 }
 0x145   : > { %9904 = vst [vmem:[#allocation39_spill] sm:$0xff] %v7996_v53  ;;  %6463 = vmatmul.mubr.f32.gmra.mxu0 %v7985_v8  ;;  %9906 = vst [vmem:[#allocation41_spill] sm:$0xff] %v8017_v12  ;;  %v8019_v51 = vmax.f32 %v1538_v18, 0.0  ;;  %6388 = vmatprep.mubr.f32.mxu1 %v7929_v5  ;;  %v1553_v13 = vadd.f32 %v6316_v56, %v7526_v15  ;;  %v1688_v30 = vsel %vm1650_vm3, %v1685_v21, %v1687_v31 }
 0x146   : > { %6465 = vmatprep.mubr.f32.mxu0 %v8009_v35  ;;  %v8026_v28 = vsel %vm1751_vm4, %v1788_v52, %v1790_v36  ;;  %v8031_v10 = vsel %vm1650_vm3, %v9909_v4, %v1685_v21  ;;  %6506 = vmatprep.subr.mxu1 %v5502_v33  ;;  %v1547_v3 = vpop.f32.mrf.mxu0  ;;  %v9911_v18 = vrot.slane %v7975_v44, 7  ;;  %v1693_v5 = vrot.slane %v7946_v55, 7  ;;  %v5501_v52 = vld [vmem:[%s9716_s4 + $0x120] sm:$0xff] }
 0x147   : > { %9907 = vst [vmem:[#allocation42_spill] sm:$0xff] %v8019_v51  ;;  %9908 = vst [vmem:[#allocation43_spill] sm:$0xff] %v8026_v28  ;;  %v1879_v56 = vadd.s32 208, %v7517_v0  ;;  %6583 = vmatpush3.msra.mxu0 %v5520_v57  ;;  %v1548_v35 = vadd.f32 %v7526_v15, %v1547_v3  ;;  %6507 = vmatpush3.msra.mxu1 %v5502_v33  ;;  %v9912_v21 = vrot.slane %v7946_v55, 1  ;;  %v8049_v8 = vmax.f32 %v1553_v13, 0.0 }
 0x148   : > { %9910 = vst [vmem:[#allocation44_spill] sm:$0xff] %v8031_v10  ;;  %v1692_v12 = vsel %vm1650_vm3, %v1689_v9, %v9911_v18  ;;  %6584 = vmatprep.subr.mxu0 %v5519_v61  ;;  %6389 = vmatmul.mubr.f32.gmra.mxu1 %v7927_v41  ;;  %v8056_v57 = vsel %vm7987_vm15, %v8026_v28, %v1688_v30  ;;  %v6319_v33 = vpop.f32.mrf.mxu0  ;;  %v1796_v3 = vrot.slane %v8019_v51, 1  ;;  %vm8070_vm2 = vcmp.eq.s32.totalorder %v2061_v32, 0  ;;  %v5500_v32 = vld [vmem:[%s9716_s4 + $0x118] sm:$0xff] }
 0x149   : > { %v8045_v4 = vsel %vm1751_vm4, %v1792_v50, %v9912_v21  ;;  %9914 = vst [vmem:[#allocation46_spill] sm:$0xff] %v8049_v8  ;;  %6466 = vmatmul.mubr.f32.gmra.mxu0 %v8031_v10  ;;  %9915 = vst [vmem:[#allocation47_spill] sm:$0xff] %v8056_v57  ;;  %v5518_v21 = vld [vmem:[%s9716_s4 + $0x1a8] sm:$0xff]  ;;  %v8063_v18 = vsel %vm1751_vm4, %v1790_v36, %v1792_v50  ;;  %v8065_v13 = vmax.f32 %v1548_v35, 0.0  ;;  %6391 = vmatprep.mubr.f32.mxu1 %v7975_v44 }
 0x14a   : > { %9913 = vst [vmem:[#allocation45_spill] sm:$0xff] %v8045_v4  ;;  %9916 = vst [vmem:[#allocation48_spill] sm:$0xff] %v8063_v18  ;;  %6468 = vmatprep.mubr.f32.mxu0 %v8056_v57  ;;  %v1563_v22 = vadd.f32 %v6319_v33, %v7526_v15  ;;  %v8075_v20 = vsel %vm1650_vm3, %v1687_v31, %v1689_v9  ;;  %6508 = vmatprep.subr.mxu1 %v5501_v52  ;;  %v1557_v41 = vpop.f32.mrf.mxu0  ;;  %v2075_v35 = vand.u32 15, %v1879_v56 }
 0x14b   : > { %9919 = vst [vmem:[#allocation49_spill] sm:$0xff] %v8075_v20  ;;  %v8080_v36 = vsel %vm7992_vm1, %v8045_v4, %v1692_v12  ;;  %6585 = vmatpush3.msra.mxu0 %v5519_v61  ;;  %v1881_v50 = vadd.s32 224, %v7517_v0  ;;  %v1558_v33 = vadd.f32 %v7526_v15, %v1557_v41  ;;  %6509 = vmatpush3.msra.mxu1 %v5501_v52  ;;  %v9921_v31 = vrot.slane %v8019_v51, 7 }
 0x14c   : > { %9920 = vst [vmem:[#allocation50_spill] sm:$0xff] %v8080_v36  ;;  %v9922_v18 = vrot.slane %v7996_v53, 1  ;;  %v1697_v12 = vrot.slane %v7996_v53, 7  ;;  %6586 = vmatprep.subr.mxu0 %v5518_v21  ;;  %6392 = vmatmul.mubr.f32.gmra.mxu1 %v7946_v55  ;;  %v6322_v41 = vpop.f32.mrf.mxu0  ;;  %v1800_v56 = vrot.slane %v8065_v13, 1  ;;  %v1802_v52 = vrot.slane %v8049_v8, 1 }
 0x14d   : > { %v1696_v9 = vsel %vm1650_vm3, %v1693_v5, %v9921_v31  ;;  %6469 = vmatmul.mubr.f32.gmra.mxu0 %v8075_v20  ;;  %v5517_v31 = vld [vmem:[%s9716_s4 + $0x1a0] sm:$0xff]  ;;  %v8109_v57 = vmax.f32 %v1563_v22, 0.0  ;;  %v8111_v28 = vmax.f32 %v1558_v33, 0.0  ;;  %6394 = vmatprep.mubr.f32.mxu1 %v8019_v51  ;;  %v1573_v61 = vadd.f32 %v6322_v41, %v7526_v15 }
 0x14e   : > { %v8093_v59 = vsel %vm1751_vm4, %v1796_v3, %v9922_v18  ;;  %v9924_v18 = vrot.slane %v7946_v55, 1  ;;  %6471 = vmatprep.mubr.f32.mxu0 %v8080_v36  ;;  %v9927_v20 = vrot.slane %v7975_v44, 7  ;;  %6510 = vmatprep.subr.mxu1 %v5500_v32  ;;  %v1567_v55 = vpop.f32.mrf.mxu0  ;;  %vm8121_vm5 = vcmp.eq.s32.totalorder %v2075_v35, 0 }
 0x14f   : > { %9923 = vst [vmem:[#allocation51_spill] sm:$0xff] %v8093_v59  ;;  %9926 = vst [vmem:[#allocation53_spill] sm:$0xff] %v8111_v28  ;;  %v2089_v22 = vand.u32 15, %v1881_v50  ;;  %6587 = vmatpush3.msra.mxu0 %v5518_v21  ;;  %v8126_v33 = vadd.s32 240, %v7517_v0  ;;  %v1568_v41 = vadd.f32 %v7526_v15, %v1567_v55  ;;  %6511 = vmatpush3.msra.mxu1 %v5500_v32  ;;  %v1701_v35 = vrot.slane %v8049_v8, 7 }
 0x150   : > { %v8107_v4 = vsel %vm1751_vm4, %v9924_v18, %v1796_v3  ;;  %v8119_v10 = vsel %vm1650_vm3, %v9927_v20, %v1693_v5  ;;  %v8128_v18 = vmax.f32 %v1573_v61, 0.0  ;;  %v8134_v5 = vsel %vm8070_vm2, %v8093_v59, %v1696_v9  ;;  %v5499_v20 = vld [vmem:[%s9716_s4 + $0x110] sm:$0xff]  ;;  %6588 = vmatprep.subr.mxu0 %v5517_v31  ;;  %6395 = vmatmul.mubr.f32.gmra.mxu1 %v7996_v53  ;;  %v6325_v21 = vpop.f32.mrf.mxu0  ;;  %v5516_v9 = vld [vmem:[%s9716_s4 + $0x198] sm:$0xff] }
 0x151   : > { %9925 = vst [vmem:[#allocation52_spill] sm:$0xff] %v8107_v4  ;;  %9928 = vst [vmem:[#allocation54_spill] sm:$0xff] %v8119_v10  ;;  %6472 = vmatmul.mubr.f32.gmra.mxu0 %v8119_v10  ;;  %v9932_v55 = vrot.slane %v8065_v13, 7  ;;  %v8146_v30 = vsel %vm1751_vm4, %v1800_v56, %v1802_v52  ;;  %v1804_v32 = vrot.slane %v8111_v28, 1  ;;  %v9933_v61 = vrot.slane %v7996_v53, 1  ;;  %6397 = vmatprep.mubr.f32.mxu1 %v8065_v13 }
 0x152   : > { %9931 = vst [vmem:[#allocation55_spill] sm:$0xff] %v8134_v5  ;;  %v8157_v59 = vmax.f32 %v1568_v41, 0.0  ;;  %6474 = vmatprep.mubr.f32.mxu0 %v8134_v5  ;;  %v1703_v10 = vrot.slane %v8111_v28, 7  ;;  %v1806_v4 = vrot.slane %v8109_v57, 1  ;;  %6512 = vmatprep.subr.mxu1 %v5499_v20  ;;  %v1577_v36 = vpop.f32.mrf.mxu0  ;;  %vm8164_vm6 = vcmp.eq.s32.totalorder %v2089_v22, 0 }
 0x153   : > { %v1700_v50 = vsel %vm1650_vm3, %v1697_v12, %v9932_v55  ;;  %v8155_v44 = vsel %vm1751_vm4, %v9933_v61, %v1800_v56  ;;  %v1583_v55 = vadd.f32 %v6325_v21, %v7526_v15  ;;  %6589 = vmatpush3.msra.mxu0 %v5517_v31  ;;  %v1810_v56 = vrot.slane %v8128_v18, 1  ;;  %6513 = vmatpush3.msra.mxu1 %v5499_v20  ;;  %v5498_v31 = vld [vmem:[%s9716_s4 + $0x108] sm:$0xff] }
 0x154   : > { %9934 = vst [vmem:[#allocation56_spill] sm:$0xff] %v8155_v44  ;;  %v2103_v41 = vand.u32 15, %v8126_v33  ;;  %v1854_v61 = vadd.s32 8, %v7517_v0  ;;  %v9937_v21 = vrot.slane %v8019_v51, 7  ;;  %v1578_v5 = vadd.f32 %v7526_v15, %v1577_v36  ;;  %6590 = vmatprep.subr.mxu0 %v5516_v9  ;;  %6398 = vmatmul.mubr.f32.gmra.mxu1 %v8049_v8  ;;  %v5515_v15 = vld [vmem:[%s9716_s4 + $0x190] sm:$0xff] }
 0x155   : > { %v8171_v53 = vmax.f32 %v1583_v55, 0.0  ;;  %v1705_v22 = vrot.slane %v8109_v57, 7  ;;  %v8188_v33 = vsel %vm8121_vm5, %v8146_v30, %v1700_v50  ;;  %v8195_v36 = vsel %vm1751_vm4, %v1802_v52, %v1804_v32  ;;  %6400 = vmatprep.mubr.f32.mxu1 %v8111_v28  ;;  %6514 = vmatprep.subr.mxu1 %v5498_v31 }
 0x156   : > { %v8176_v44 = vsel %vm1650_vm3, %v9937_v21, %v1697_v12  ;;  %v1808_v12 = vrot.slane %v8157_v59, 1  ;;  %v8199_v20 = vsel %vm1751_vm4, %v1810_v56, %v8128_v18  ;;  %v8201_v55 = vmax.f32 %v1578_v5, 0.0  ;;  %6591 = vmatpush3.msra.mxu0 %v5516_v9  ;;  %6515 = vmatpush3.msra.mxu1 %v5498_v31 }
 0x157   : > { %6475 = vmatmul.mubr.f32.gmra.mxu0 %v8176_v44  ;;  %9938 = vst [vmem:[#allocation57_spill] sm:$0xff] %v8199_v20  ;;  %v1704_v3 = vsel %vm1650_vm3, %v1701_v35, %v1703_v10  ;;  %v8207_v50 = vsel %vm1751_vm4, %v1804_v32, %v1806_v4  ;;  %v1707_v21 = vrot.slane %v8157_v59, 7  ;;  %v9801_v20 = vrot.slane %v8171_v53, 1  ;;  %v5497_v32 = vld [vmem:[%s9716_s4 + $0x100] sm:$0xff]  ;;  %6592 = vmatprep.subr.mxu0 %v5515_v15 }
 0x158   : > { %6477 = vmatprep.mubr.f32.mxu0 %v8188_v33  ;;  %v8211_v52 = vsel %vm1751_vm4, %v1806_v4, %v1808_v12  ;;  %v9802_v5 = vrot.slane %v8171_v53, 7  ;;  %v9939_v8 = vrot.slane %v8065_v13, 7  ;;  %v1900_v51 = vand.u32 15, %v1854_v61  ;;  %6401 = vmatmul.mubr.f32.gmra.mxu1 %v8109_v57 }
 0x159   : > { %v9803_v9 = vrot.slane %v8201_v55, 1  ;;  %v8229_v4 = vsel %vm8164_vm6, %v8207_v50, %v1704_v3  ;;  %v8238_v61 = vsel %vm1751_vm4, %v9801_v20, %v1808_v12  ;;  %6403 = vmatprep.mubr.f32.mxu1 %v8157_v59  ;;  %v1708_v7 = vsel %vm1650_vm3, %v1705_v22, %v1707_v21  ;;  %6516 = vmatprep.subr.mxu1 %v5497_v32 }
 0x15a   : > { %v8218_v28 = vsel %vm1650_vm3, %v9939_v8, %v1701_v35  ;;  %9940 = vst [vmem:[#allocation58_spill] sm:$0xff] %v8229_v4  ;;  %v5514_v8 = vld [vmem:[%s9716_s4 + $0x188] sm:$0xff]  ;;  %v1856_v35 = vadd.s32 24, %v7517_v0  ;;  %v8243_v31 = vsel %vm1650_vm3, %v9802_v5, %v1707_v21  ;;  %v8249_v3 = vsel %vm1751_vm4, %v1808_v12, %v1810_v56  ;;  %6593 = vmatpush3.msra.mxu0 %v5515_v15  ;;  %v5544_v12 = vld [vmem:[%s9716_s4 + $0x278] sm:$0xff] }
 0x15b   : > { %6478 = vmatmul.mubr.f32.gmra.mxu0 %v8218_v28  ;;  %9941 = vst [vmem:[#allocation59_spill] sm:$0xff] %v8243_v31  ;;  %vm2351_vm7 = vcmp.eq.s32.totalorder %v2103_v41, 0  ;;  %v8254_v20 = vsel %vm1751_vm4, %v1810_v56, %v9803_v9  ;;  %v8257_v5 = vsel %vm1650_vm3, %v1703_v10, %v1705_v22  ;;  %6517 = vmatpush3.msra.mxu1 %v5497_v32  ;;  %v9804_v31 = vrot.slane %v8128_v18, 7  ;;  %v5513_v10 = vld [vmem:[%s9716_s4 + $0x180] sm:$0xff] }
 0x15c   : > { %6480 = vmatprep.mubr.f32.mxu0 %v8229_v4  ;;  %9942 = vst [vmem:[#allocation60_spill] sm:$0xff] %v8257_v5  ;;  %6594 = vmatprep.subr.mxu0 %v5514_v8  ;;  %v8266_v56 = vsel %vm2351_vm7, %v8249_v3, %v1708_v7  ;;  %vm2466_vm8 = vcmp.eq.s32.totalorder %v1900_v51, 15  ;;  %v1914_v41 = vand.u32 15, %v1856_v35  ;;  %v1858_v22 = vadd.s32 40, %v7517_v0  ;;  %v5543_v7 = vld [vmem:[%s9716_s4 + $0x270] sm:$0xff] }
 0x15d   : > { %6404 = vmatmul.mubr.f32.gmra.mxu1 %v8128_v18  ;;  %v9943_v15 = vrot.slane %v7537_v27, 1  ;;  %6646 = vmatprep.subr.mxu1 %v5544_v12  ;;  %v8281_v51 = vsel %vm1650_vm3, %v1707_v21, %v9804_v31  ;;  %v9956_v31 = vld [vmem:[#allocation44_spill] sm:$0xff] }
 0x15e   : > { %6518 = vmatprep.mubr.f32.mxu1 %v7593_v58  ;;  %6595 = vmatpush3.msra.mxu0 %v5514_v8  ;;  %vm2468_vm9 = vcmp.eq.s32.totalorder %v1914_v41, 15  ;;  %v1928_v9 = vand.u32 15, %v1858_v22  ;;  %v5560_v8 = vld [vmem:[%s9716_s4 + $0x2f8] sm:$0xff]  ;;  %v5542_v41 = vld [vmem:[%s9716_s4 + $0x268] sm:$0xff] }
 0x15f   : > { %6481 = vmatmul.mubr.f32.gmra.mxu0 %v8257_v5  ;;  %v1756_v32 = vsel %vm1751_vm4, %v7571_v48, %v9943_v15  ;;  %6596 = vmatprep.subr.mxu0 %v5513_v10  ;;  %v1860_v48 = vadd.s32 56, %v7517_v0  ;;  %v8296_v21 = vsel %vm2468_vm9, %v7641_v19, %v7727_v1  ;;  %v5541_v1 = vld [vmem:[%s9716_s4 + $0x260] sm:$0xff]  ;;  %v5558_v15 = vld [vmem:[%s9716_s4 + $0x2e8] sm:$0xff] }
 0x160   : > { %6483 = vmatprep.mubr.f32.mxu0 %v8266_v56  ;;  %v2574_v35 = vsel %vm2466_vm8, %v7603_v63, %v1756_v32  ;;  %6597 = vmatpush3.msra.mxu0 %v5513_v10  ;;  %vm2470_vm10 = vcmp.eq.s32.totalorder %v1928_v9, 15  ;;  %v1864_v10 = vadd.s32 88, %v7517_v0  ;;  %v5540_v32 = vld [vmem:[%s9716_s4 + $0x258] sm:$0xff] }
 0x161   : > { %6519 = vmatmul.mubr.f32.vlgmr.msra.gmra.mxu1 %v2574_v35  ;;  %6726 = vmatprep.subr.mxu0 %v5560_v8  ;;  %v1942_v22 = vand.u32 15, %v1860_v48  ;;  %v5557_v48 = vld [vmem:[%s9716_s4 + $0x2e0] sm:$0xff] }
 0x162   : > { %6521 = vmatprep.mubr.f32.mxu1 %v7611_v2  ;;  %6647 = vmatpush3.msra.mxu1 %v5544_v12  ;;  %v5559_v12 = vld [vmem:[%s9716_s4 + $0x2f0] sm:$0xff]  ;;  %v1970_v35 = vand.u32 15, %v1864_v10 }
 0x163   : > { %6484 = vmatmul.mubr.f32.gmra.mxu0 %v8281_v51  ;;  %6648 = vmatprep.subr.mxu1 %v5543_v7  ;;  %vm2472_vm11 = vcmp.eq.s32.totalorder %v1942_v22, 15  ;;  %v1868_v22 = vadd.s32 120, %v7517_v0  ;;  %v5555_v10 = vld [vmem:[%s9716_s4 + $0x2d0] sm:$0xff] }
 0x164   : > { %6598 = vmatprep.mubr.f32.mxu0 %v7626_v6  ;;  %v1862_v6 = vadd.s32 72, %v7517_v0  ;;  %6649 = vmatpush3.msra.mxu1 %v5543_v7  ;;  %v1866_v7 = vadd.s32 104, %v7517_v0  ;;  %vm2476_vm13 = vcmp.eq.s32.totalorder %v1970_v35, 15  ;;  %v1872_v35 = vadd.s32 152, %v7517_v0 }
 0x165   : > { %6522 = vmatmul.mubr.f32.gmra.mxu1 %v8296_v21  ;;  %6650 = vmatprep.subr.mxu1 %v5542_v41 }
 0x166   : > { %6524 = vmatprep.mubr.f32.mxu1 %v7593_v58  ;;  %v1956_v9 = vand.u32 15, %v1862_v6  ;;  %6651 = vmatpush3.msra.mxu1 %v5542_v41  ;;  %v1984_v41 = vand.u32 15, %v1866_v7  ;;  %v5556_v6 = vld [vmem:[%s9716_s4 + $0x2d8] sm:$0xff]  ;;  %v5554_v7 = vld [vmem:[%s9716_s4 + $0x2c8] sm:$0xff] }
 0x167   : > { %6599 = vmatmul.mubr.f32.vlgmr.msra.gmra.mxu0 %v7641_v19  ;;  %v8311_v19 = vsel %vm2470_vm10, %v7603_v63, %v7775_v38  ;;  %v8326_v38 = vsel %vm2472_vm11, %v7743_v47, %v7780_v42  ;;  %6652 = vmatprep.subr.mxu1 %v5541_v1 }
 0x168   : > { %6601 = vmatprep.mubr.f32.mxu0 %v7652_v26  ;;  %6727 = vmatpush3.msra.mxu0 %v5560_v8  ;;  %9944 = vst [vmem:[#allocation61_spill] sm:$0xff] %v8326_v38  ;;  %vm2474_vm12 = vcmp.eq.s32.totalorder %v1956_v9, 15  ;;  %v5539_v8 = vld [vmem:[%s9716_s4 + $0x250] sm:$0xff]  ;;  %vm2478_vm14 = vcmp.eq.s32.totalorder %v1984_v41, 15  ;;  %v1870_v9 = vadd.s32 136, %v7517_v0  ;;  %v1874_v41 = vadd.s32 168, %v7517_v0 }
 0x169   : > { %6728 = vmatprep.subr.mxu0 %v5559_v12  ;;  %6525 = vmatmul.mubr.f32.gmra.mxu1 %v8311_v19  ;;  %v8341_v42 = vsel %vm2474_vm12, %v7794_v16, %v7823_v29  ;;  %v8356_v29 = vsel %vm2476_vm13, %v7842_v37, %v7826_v45  ;;  %v8371_v45 = vsel %vm2478_vm14, %v7892_v17, %v7879_v46 }
 0x16a   : > { %6527 = vmatprep.mubr.f32.mxu1 %v7670_v34  ;;  %6729 = vmatpush3.msra.mxu0 %v5559_v12  ;;  %9945 = vst [vmem:[#allocation62_spill] sm:$0xff] %v8341_v42  ;;  %9946 = vst [vmem:[#allocation63_spill] sm:$0xff] %v8356_v29  ;;  %v5538_v12 = vld [vmem:[%s9716_s4 + $0x248] sm:$0xff] }
 0x16b   : > { %6602 = vmatmul.mubr.f32.gmra.mxu0 %v7603_v63  ;;  %6730 = vmatprep.subr.mxu0 %v5558_v15  ;;  %9947 = vst [vmem:[#allocation64_spill] sm:$0xff] %v8371_v45 }
 0x16c   : > { %6604 = vmatprep.mubr.f32.mxu0 %v7702_v54  ;;  %6653 = vmatpush3.msra.mxu1 %v5541_v1  ;;  %v1998_v1 = vand.u32 15, %v1868_v22  ;;  %v5553_v22 = vld [vmem:[%s9716_s4 + $0x2c0] sm:$0xff] }
 0x16d   : > { %6528 = vmatmul.mubr.f32.gmra.mxu1 %v8326_v38  ;;  %6731 = vmatpush3.msra.mxu0 %v5558_v15  ;;  %v5537_v15 = vld [vmem:[%s9716_s4 + $0x240] sm:$0xff] }
 0x16e   : > { %6530 = vmatprep.mubr.f32.mxu1 %v7715_v60  ;;  %6654 = vmatprep.subr.mxu1 %v5540_v32  ;;  %vm2480_vm15 = vcmp.eq.s32.totalorder %v1998_v1, 15 }
 0x16f   : > { %6605 = vmatmul.mubr.f32.gmra.mxu0 %v7743_v47  ;;  %6732 = vmatprep.subr.mxu0 %v5557_v48  ;;  %v8386_v46 = vsel %vm2480_vm15, %v7941_v23, %v7925_v40  ;;  %v9949_v40 = vld [vmem:[#allocation29_spill] sm:$0xff] }
 0x170   : > { %6607 = vmatprep.mubr.f32.mxu0 %v7756_v25  ;;  %6655 = vmatpush3.msra.mxu1 %v5540_v32  ;;  %v2012_v32 = vand.u32 15, %v1870_v9  ;;  %9948 = vst [vmem:[#allocation65_spill] sm:$0xff] %v8386_v46  ;;  %v5535_v9 = vld [vmem:[%s9716_s4 + $0x230] sm:$0xff] }
 0x171   : > { %6531 = vmatmul.mubr.f32.gmra.mxu1 %v8341_v42  ;;  %6733 = vmatpush3.msra.mxu0 %v5557_v48  ;;  %v5536_v48 = vld [vmem:[%s9716_s4 + $0x238] sm:$0xff] }
 0x172   : > { %6533 = vmatprep.mubr.f32.mxu1 %v7788_v49  ;;  %6656 = vmatprep.subr.mxu1 %v5539_v8  ;;  %vm2482_vm1 = vcmp.eq.s32.totalorder %v2012_v32, 15  ;;  %v1876_v32 = vadd.s32 184, %v7517_v0 }
 0x173   : > { %6608 = vmatmul.mubr.f32.gmra.mxu0 %v7794_v16  ;;  %6734 = vmatprep.subr.mxu0 %v5556_v6 }
 0x174   : > { %6610 = vmatprep.mubr.f32.mxu0 %v7814_v62  ;;  %6657 = vmatpush3.msra.mxu1 %v5539_v8  ;;  %v2026_v8 = vand.u32 15, %v1872_v35  ;;  %v9953_v35 = vld [vmem:[#allocation35_spill] sm:$0xff] }
 0x175   : > { %6534 = vmatmul.mubr.f32.gmra.mxu1 %v8356_v29  ;;  %6735 = vmatpush3.msra.mxu0 %v5556_v6  ;;  %v9950_v6 = vld [vmem:[#allocation36_spill] sm:$0xff] }
 0x176   : > { %6536 = vmatprep.mubr.f32.mxu1 %v7837_v43  ;;  %6658 = vmatprep.subr.mxu1 %v5538_v12  ;;  %vm2484_vm2 = vcmp.eq.s32.totalorder %v2026_v8, 15 }
 0x177   : > { %6611 = vmatmul.mubr.f32.gmra.mxu0 %v7842_v37  ;;  %6736 = vmatprep.subr.mxu0 %v5555_v10 }
 0x178   : > { %6613 = vmatprep.mubr.f32.mxu0 %v7870_v39  ;;  %6659 = vmatpush3.msra.mxu1 %v5538_v12  ;;  %v9951_v12 = vld [vmem:[#allocation38_spill] sm:$0xff]  ;;  %v9970_v39 = vld [vmem:[#allocation56_spill] sm:$0xff] }
 0x179   : > { %6537 = vmatmul.mubr.f32.gmra.mxu1 %v8371_v45  ;;  %6737 = vmatpush3.msra.mxu0 %v5555_v10  ;;  %v8401_v1 = vsel %vm2482_vm1, %v9951_v12, %v9950_v6  ;;  %v2040_v10 = vand.u32 15, %v1874_v41  ;;  %v9955_v6 = vld [vmem:[#allocation41_spill] sm:$0xff]  ;;  %v5534_v41 = vld [vmem:[%s9716_s4 + $0x228] sm:$0xff] }
 0x17a   : > { %6539 = vmatprep.mubr.f32.mxu1 %v7859_v14  ;;  %6660 = vmatprep.subr.mxu1 %v5537_v15  ;;  %9952 = vst [vmem:[#allocation36_spill] sm:$0xff] %v8401_v1  ;;  %v8416_v8 = vsel %vm2484_vm2, %v9956_v31, %v9955_v6  ;;  %v9959_v6 = vld [vmem:[#allocation47_spill] sm:$0xff] }
 0x17b   : > { %6614 = vmatmul.mubr.f32.gmra.mxu0 %v7892_v17  ;;  %6738 = vmatprep.subr.mxu0 %v5554_v7  ;;  %9957 = vst [vmem:[#allocation41_spill] sm:$0xff] %v8416_v8  ;;  %vm2486_vm5 = vcmp.eq.s32.totalorder %v2040_v10, 15 }
 0x17c   : > { %6616 = vmatprep.mubr.f32.mxu0 %v7897_v24  ;;  %6661 = vmatpush3.msra.mxu1 %v5537_v15  ;;  %v5552_v15 = vld [vmem:[%s9716_s4 + $0x2b8] sm:$0xff]  ;;  %v9965_v24 = vld [vmem:[#allocation52_spill] sm:$0xff] }
 0x17d   : > { %6540 = vmatmul.mubr.f32.gmra.mxu1 %v8386_v46  ;;  %6739 = vmatpush3.msra.mxu0 %v5554_v7  ;;  %v9954_v7 = vld [vmem:[#allocation40_spill] sm:$0xff] }
 0x17e   : > { %6542 = vmatprep.mubr.f32.mxu1 %v9949_v40  ;;  %6662 = vmatprep.subr.mxu1 %v5536_v48 }
 0x17f   : > { %6617 = vmatmul.mubr.f32.gmra.mxu0 %v7941_v23  ;;  %6740 = vmatprep.subr.mxu0 %v5553_v22 }
 0x180   : > { %6619 = vmatprep.mubr.f32.mxu0 %v7952_v11  ;;  %6663 = vmatpush3.msra.mxu1 %v5536_v48  ;;  %v5551_v48 = vld [vmem:[%s9716_s4 + $0x2b0] sm:$0xff] }
 0x181   : > { %6543 = vmatmul.mubr.f32.gmra.mxu1 %v8401_v1  ;;  %6741 = vmatpush3.msra.mxu0 %v5553_v22  ;;  %v9958_v22 = vld [vmem:[#allocation43_spill] sm:$0xff]  ;;  %v9960_v11 = vld [vmem:[#allocation48_spill] sm:$0xff] }
 0x182   : > { %6545 = vmatprep.mubr.f32.mxu1 %v9953_v35  ;;  %6664 = vmatprep.subr.mxu1 %v5535_v9 }
 0x183   : > { %6620 = vmatmul.mubr.f32.gmra.mxu0 %v9951_v12  ;;  %6742 = vmatprep.subr.mxu0 %v5552_v15  ;;  %v2054_v12 = vand.u32 15, %v1876_v32  ;;  %v5533_v32 = vld [vmem:[%s9716_s4 + $0x220] sm:$0xff] }
 0x184   : > { %6622 = vmatprep.mubr.f32.mxu0 %v9954_v7  ;;  %v1878_v7 = vadd.s32 200, %v7517_v0  ;;  %6665 = vmatpush3.msra.mxu1 %v5535_v9  ;;  %v5550_v9 = vld [vmem:[%s9716_s4 + $0x2a8] sm:$0xff] }
 0x185   : > { %6546 = vmatmul.mubr.f32.gmra.mxu1 %v8416_v8  ;;  %6743 = vmatpush3.msra.mxu0 %v5552_v15  ;;  %vm2488_vm6 = vcmp.eq.s32.totalorder %v2054_v12, 15  ;;  %v9964_v15 = vld [vmem:[#allocation50_spill] sm:$0xff] }
 0x186   : > { %6548 = vmatprep.mubr.f32.mxu1 %v9958_v22  ;;  %6666 = vmatprep.subr.mxu1 %v5534_v41  ;;  %v2068_v23 = vand.u32 15, %v1878_v7  ;;  %v5532_v7 = vld [vmem:[%s9716_s4 + $0x218] sm:$0xff] }
 0x187   : > { %6623 = vmatmul.mubr.f32.gmra.mxu0 %v9956_v31  ;;  %v9961_v31 = vld [vmem:[#allocation49_spill] sm:$0xff]  ;;  %6744 = vmatprep.subr.mxu0 %v5551_v48 }
 0x188   : > { %6625 = vmatprep.mubr.f32.mxu0 %v9959_v6  ;;  %v8431_v10 = vsel %vm2486_vm5, %v9961_v31, %v9960_v11  ;;  %v1880_v6 = vadd.s32 216, %v7517_v0  ;;  %v9963_v11 = vld [vmem:[#allocation45_spill] sm:$0xff]  ;;  %6667 = vmatpush3.msra.mxu1 %v5534_v41  ;;  %vm2490_vm7 = vcmp.eq.s32.totalorder %v2068_v23, 15  ;;  %v5549_v41 = vld [vmem:[%s9716_s4 + $0x2a0] sm:$0xff] }
 0x189   : > { %9962 = vst [vmem:[#allocation43_spill] sm:$0xff] %v8431_v10  ;;  %6549 = vmatmul.mubr.f32.gmra.mxu1 %v8431_v10  ;;  %6745 = vmatpush3.msra.mxu0 %v5551_v48  ;;  %v9969_v48 = vld [vmem:[#allocation55_spill] sm:$0xff]  ;;  %v8461_v23 = vsel %vm2490_vm7, %v8176_v44, %v9970_v39  ;;  %v1885_v39 = vadd.s32 256, %v7517_v0 }
 0x18a   : > { %6551 = vmatprep.mubr.f32.mxu1 %v9963_v11  ;;  %6668 = vmatprep.subr.mxu1 %v5533_v32  ;;  %v2082_v17 = vand.u32 15, %v1880_v6  ;;  %9971 = vst [vmem:[#allocation52_spill] sm:$0xff] %v8461_v23  ;;  %v5531_v6 = vld [vmem:[%s9716_s4 + $0x210] sm:$0xff] }
 0x18b   : > { %6626 = vmatmul.mubr.f32.gmra.mxu0 %v9961_v31  ;;  %v9966_v31 = vld [vmem:[#allocation54_spill] sm:$0xff]  ;;  %6746 = vmatprep.subr.mxu0 %v5550_v9 }
 0x18c   : > { %6628 = vmatprep.mubr.f32.mxu0 %v9964_v15  ;;  %v8446_v12 = vsel %vm2488_vm6, %v9966_v31, %v9965_v24  ;;  %v1882_v15 = vadd.s32 232, %v7517_v0  ;;  %v9968_v24 = vld [vmem:[#allocation51_spill] sm:$0xff]  ;;  %6669 = vmatpush3.msra.mxu1 %v5533_v32  ;;  %vm2492_vm8 = vcmp.eq.s32.totalorder %v2082_v17, 15  ;;  %v5548_v32 = vld [vmem:[%s9716_s4 + $0x298] sm:$0xff] }
 0x18d   : > { %9967 = vst [vmem:[#allocation48_spill] sm:$0xff] %v8446_v12  ;;  %6552 = vmatmul.mubr.f32.gmra.mxu1 %v8446_v12  ;;  %6747 = vmatpush3.msra.mxu0 %v5550_v9  ;;  %v8477_v17 = vsel %vm2492_vm8, %v8218_v28, %v8195_v36  ;;  %v5530_v9 = vld [vmem:[%s9716_s4 + $0x208] sm:$0xff]  ;;  %v1711_v36 = vrot.slane %v8201_v55, 7 }
 0x18e   : > { %6554 = vmatprep.mubr.f32.mxu1 %v9968_v24  ;;  %6670 = vmatprep.subr.mxu1 %v5532_v7  ;;  %9972 = vst [vmem:[#allocation51_spill] sm:$0xff] %v8477_v17 }
 0x18f   : > { %6629 = vmatmul.mubr.f32.gmra.mxu0 %v9966_v31  ;;  %6748 = vmatprep.subr.mxu0 %v5549_v41  ;;  %v2096_v31 = vand.u32 15, %v1882_v15 }
 0x190   : > { %6631 = vmatprep.mubr.f32.mxu0 %v9969_v48  ;;  %v1884_v48 = vadd.s32 248, %v7517_v0  ;;  %6671 = vmatpush3.msra.mxu1 %v5532_v7  ;;  %v5547_v7 = vld [vmem:[%s9716_s4 + $0x290] sm:$0xff] }
 0x191   : > { %6555 = vmatmul.mubr.f32.gmra.mxu1 %v8461_v23  ;;  %6749 = vmatpush3.msra.mxu0 %v5549_v41  ;;  %vm2494_vm9 = vcmp.eq.s32.totalorder %v2096_v31, 15  ;;  %v2117_v41 = vand.u32 15, %v1885_v39  ;;  %v9974_v39 = vrot.slane %v8171_v53, 1 }
 0x192   : > { %6557 = vmatprep.mubr.f32.mxu1 %v8146_v30  ;;  %6672 = vmatprep.subr.mxu1 %v5531_v6  ;;  %v2110_v15 = vand.u32 15, %v1884_v48  ;;  %v8492_v31 = vsel %vm2494_vm9, %v8257_v5, %v8211_v52  ;;  %v5529_v48 = vld [vmem:[%s9716_s4 + $0x200] sm:$0xff]  ;;  %v9973_v52 = vrot.slane %v8128_v18, 7 }
 0x193   : > { %6632 = vmatmul.mubr.f32.gmra.mxu0 %v8176_v44  ;;  %6750 = vmatprep.subr.mxu0 %v5548_v32  ;;  %vm2353_vm11 = vcmp.eq.s32.totalorder %v2117_v41, 0  ;;  %v9977_v41 = vld [vmem:[#allocation5_spill] sm:$0xff] }
 0x194   : > { %6634 = vmatprep.mubr.f32.mxu0 %v8188_v33  ;;  %6673 = vmatpush3.msra.mxu1 %v5531_v6  ;;  %vm2496_vm10 = vcmp.eq.s32.totalorder %v2110_v15, 15  ;;  %v5546_v6 = vld [vmem:[%s9716_s4 + $0x288] sm:$0xff]  ;;  %v9975_v15 = vrot.slane %v8201_v55, 1 }
 0x195   : > { %6558 = vmatmul.mubr.f32.gmra.mxu1 %v8477_v17  ;;  %6751 = vmatpush3.msra.mxu0 %v5548_v32  ;;  %v1712_v32 = vsel %vm1650_vm3, %v9973_v52, %v1711_v36  ;;  %v5576_v52 = vld [vmem:[%s9716_s4 + $0x378] sm:$0xff] }
 0x196   : > { %6560 = vmatprep.mubr.f32.mxu1 %v8207_v50  ;;  %6674 = vmatprep.subr.mxu1 %v5530_v9 }
 0x197   : > { %6635 = vmatmul.mubr.f32.gmra.mxu0 %v8218_v28  ;;  %6752 = vmatprep.subr.mxu0 %v5547_v7 }
 0x198   : > { %6637 = vmatprep.mubr.f32.mxu0 %v8229_v4  ;;  %6675 = vmatpush3.msra.mxu1 %v5530_v9  ;;  %v8516_v4 = vsel %vm2496_vm10, %v8281_v51, %v8254_v20  ;;  %v9976_v20 = vrot.slane %v8171_v53, 7 }
 0x199   : > { %6561 = vmatmul.mubr.f32.gmra.mxu1 %v8492_v31  ;;  %6753 = vmatpush3.msra.mxu0 %v5547_v7  ;;  %v5545_v7 = vld [vmem:[%s9716_s4 + $0x280] sm:$0xff] }
 0x19a   : > { %6563 = vmatprep.mubr.f32.mxu1 %v8249_v3  ;;  %6676 = vmatprep.subr.mxu1 %v5529_v48  ;;  %v8531_v9 = vsel %vm1650_vm3, %v1711_v36, %v9976_v20  ;;  %v5592_v36 = vld [vmem:[%s9716_s4 + $0x3f8] sm:$0xff]  ;;  %v9982_v20 = vld [vmem:[#allocation10_spill] sm:$0xff] }
 0x19b   : > { %6638 = vmatmul.mubr.f32.gmra.mxu0 %v8257_v5  ;;  %v8512_v5 = vsel %vm1751_vm4, %v9975_v15, %v9974_v39  ;;  %6754 = vmatprep.subr.mxu0 %v5546_v6  ;;  %v9980_v15 = vld [vmem:[#allocation8_spill] sm:$0xff] }
 0x19c   : > { %6640 = vmatprep.mubr.f32.mxu0 %v8266_v56  ;;  %v8524_v39 = vsel %vm2353_vm11, %v8512_v5, %v1712_v32  ;;  %6677 = vmatpush3.msra.mxu1 %v5529_v48  ;;  %v5575_v48 = vld [vmem:[%s9716_s4 + $0x370] sm:$0xff]  ;;  %v5574_v32 = vld [vmem:[%s9716_s4 + $0x368] sm:$0xff] }
 0x19d   : > { %6564 = vmatmul.mubr.f32.gmra.mxu1 %v8516_v4  ;;  %6806 = vmatprep.subr.mxu1 %v5576_v52 }
 0x19e   : > { %6678 = vmatprep.mubr.f32.mxu1 %v7537_v27  ;;  %6755 = vmatpush3.msra.mxu0 %v5546_v6  ;;  %v9978_v27 = vld [vmem:[#allocation6_spill] sm:$0xff]  ;;  %v9979_v6 = vld [vmem:[#allocation4_spill] sm:$0xff] }
 0x19f   : > { %6641 = vmatmul.mubr.f32.gmra.mxu0 %v8281_v51  ;;  %6756 = vmatprep.subr.mxu0 %v5545_v7 }
 0x1a0   : > { %6643 = vmatprep.mubr.f32.mxu0 %v8524_v39  ;;  %6757 = vmatpush3.msra.mxu0 %v5545_v7  ;;  %v5590_v7 = vld [vmem:[%s9716_s4 + $0x3e8] sm:$0xff] }
 0x1a1   : > { %6679 = vmatmul.mubr.f32.vlgmr.msra.gmra.mxu1 %v9977_v41  ;;  %6886 = vmatprep.subr.mxu0 %v5592_v36  ;;  %v9983_v41 = vld [vmem:[#allocation9_spill] sm:$0xff] }
 0x1a2   : > { %6681 = vmatprep.mubr.f32.mxu1 %v9978_v27  ;;  %6807 = vmatpush3.msra.mxu1 %v5576_v52  ;;  %v9981_v52 = vld [vmem:[#allocation7_spill] sm:$0xff] }
 0x1a3   : > { %6644 = vmatmul.mubr.f32.gmra.mxu0 %v8531_v9  ;;  %6808 = vmatprep.subr.mxu1 %v5575_v48 }
 0x1a4   : > { %6758 = vmatprep.mubr.f32.mxu0 %v7611_v2  ;;  %6809 = vmatpush3.msra.mxu1 %v5575_v48  ;;  %v5591_v2 = vld [vmem:[%s9716_s4 + $0x3f0] sm:$0xff]  ;;  %v5572_v48 = vld [vmem:[%s9716_s4 + $0x358] sm:$0xff] }
 0x1a5   : > { %6682 = vmatmul.mubr.f32.gmra.mxu1 %v9979_v6  ;;  %6810 = vmatprep.subr.mxu1 %v5574_v32 }
 0x1a6   : > { %6684 = vmatprep.mubr.f32.mxu1 %v9980_v15  ;;  %6811 = vmatpush3.msra.mxu1 %v5574_v32  ;;  %v5589_v32 = vld [vmem:[%s9716_s4 + $0x3e0] sm:$0xff] }
 0x1a7   : > { %6759 = vmatmul.mubr.f32.vlgmr.msra.gmra.mxu0 %v8296_v21  ;;  %v5573_v21 = vld [vmem:[%s9716_s4 + $0x360] sm:$0xff] }
 0x1a8   : > { %6761 = vmatprep.mubr.f32.mxu0 %v7593_v58  ;;  %6887 = vmatpush3.msra.mxu0 %v5592_v36  ;;  %v9984_v36 = vld [vmem:[#allocation13_spill] sm:$0xff] }
 0x1a9   : > { %6685 = vmatmul.mubr.f32.gmra.mxu1 %v9981_v52  ;;  %6888 = vmatprep.subr.mxu0 %v5591_v2 }
 0x1aa   : > { %6687 = vmatprep.mubr.f32.mxu1 %v9982_v20  ;;  %6812 = vmatprep.subr.mxu1 %v5573_v21 }
 0x1ab   : > { %6762 = vmatmul.mubr.f32.gmra.mxu0 %v8311_v19  ;;  %6813 = vmatpush3.msra.mxu1 %v5573_v21  ;;  %v5588_v21 = vld [vmem:[%s9716_s4 + $0x3d8] sm:$0xff] }
 0x1ac   : > { %6764 = vmatprep.mubr.f32.mxu0 %v7670_v34  ;;  %6889 = vmatpush3.msra.mxu0 %v5591_v2  ;;  %v9985_v2 = vld [vmem:[#allocation12_spill] sm:$0xff] }
 0x1ad   : > { %6688 = vmatmul.mubr.f32.gmra.mxu1 %v9983_v41  ;;  %6890 = vmatprep.subr.mxu0 %v5590_v7  ;;  %v9986_v34 = vld [vmem:[#allocation16_spill] sm:$0xff] }
 0x1ae   : > { %6690 = vmatprep.mubr.f32.mxu1 %v9984_v36  ;;  %6814 = vmatprep.subr.mxu1 %v5572_v48 }
 0x1af   : > { %6765 = vmatmul.mubr.f32.gmra.mxu0 %v8326_v38  ;;  %v5571_v38 = vld [vmem:[%s9716_s4 + $0x350] sm:$0xff]  ;;  %6815 = vmatpush3.msra.mxu1 %v5572_v48 }
 0x1b0   : > { %6767 = vmatprep.mubr.f32.mxu0 %v7715_v60  ;;  %6891 = vmatpush3.msra.mxu0 %v5590_v7  ;;  %v9987_v7 = vld [vmem:[#allocation14_spill] sm:$0xff]  ;;  %v5587_v48 = vld [vmem:[%s9716_s4 + $0x3d0] sm:$0xff] }
 0x1b1   : > { %6691 = vmatmul.mubr.f32.gmra.mxu1 %v9985_v2  ;;  %6892 = vmatprep.subr.mxu0 %v5589_v32  ;;  %v9988_v60 = vld [vmem:[#allocation18_spill] sm:$0xff] }
 0x1b2   : > { %6693 = vmatprep.mubr.f32.mxu1 %v9986_v34  ;;  %6816 = vmatprep.subr.mxu1 %v5571_v38 }
 0x1b3   : > { %6768 = vmatmul.mubr.f32.gmra.mxu0 %v8341_v42  ;;  %v5570_v42 = vld [vmem:[%s9716_s4 + $0x348] sm:$0xff]  ;;  %6817 = vmatpush3.msra.mxu1 %v5571_v38 }
 0x1b4   : > { %6770 = vmatprep.mubr.f32.mxu0 %v7788_v49  ;;  %6893 = vmatpush3.msra.mxu0 %v5589_v32  ;;  %v9989_v32 = vld [vmem:[#allocation17_spill] sm:$0xff]  ;;  %v5586_v38 = vld [vmem:[%s9716_s4 + $0x3c8] sm:$0xff] }
 0x1b5   : > { %6694 = vmatmul.mubr.f32.gmra.mxu1 %v9987_v7  ;;  %6894 = vmatprep.subr.mxu0 %v5588_v21  ;;  %v9990_v49 = vld [vmem:[#allocation21_spill] sm:$0xff] }
 0x1b6   : > { %6696 = vmatprep.mubr.f32.mxu1 %v9988_v60  ;;  %6818 = vmatprep.subr.mxu1 %v5570_v42 }
 0x1b7   : > { %6771 = vmatmul.mubr.f32.gmra.mxu0 %v8356_v29  ;;  %v5569_v29 = vld [vmem:[%s9716_s4 + $0x340] sm:$0xff]  ;;  %6819 = vmatpush3.msra.mxu1 %v5570_v42 }
 0x1b8   : > { %6773 = vmatprep.mubr.f32.mxu0 %v7837_v43  ;;  %6895 = vmatpush3.msra.mxu0 %v5588_v21  ;;  %v9991_v21 = vld [vmem:[#allocation20_spill] sm:$0xff]  ;;  %v9992_v43 = vld [vmem:[#allocation26_spill] sm:$0xff] }
 0x1b9   : > { %6697 = vmatmul.mubr.f32.gmra.mxu1 %v9989_v32  ;;  %6896 = vmatprep.subr.mxu0 %v5587_v48  ;;  %v5585_v42 = vld [vmem:[%s9716_s4 + $0x3c0] sm:$0xff] }
 0x1ba   : > { %6699 = vmatprep.mubr.f32.mxu1 %v9990_v49  ;;  %6820 = vmatprep.subr.mxu1 %v5569_v29 }
 0x1bb   : > { %6774 = vmatmul.mubr.f32.gmra.mxu0 %v8371_v45  ;;  %v5568_v45 = vld [vmem:[%s9716_s4 + $0x338] sm:$0xff]  ;;  %6821 = vmatpush3.msra.mxu1 %v5569_v29 }
 0x1bc   : > { %6776 = vmatprep.mubr.f32.mxu0 %v7859_v14  ;;  %6897 = vmatpush3.msra.mxu0 %v5587_v48  ;;  %v9993_v48 = vld [vmem:[#allocation24_spill] sm:$0xff]  ;;  %v9994_v14 = vld [vmem:[#allocation31_spill] sm:$0xff]  ;;  %v5584_v29 = vld [vmem:[%s9716_s4 + $0x3b8] sm:$0xff] }
 0x1bd   : > { %6700 = vmatmul.mubr.f32.gmra.mxu1 %v9991_v21  ;;  %6898 = vmatprep.subr.mxu0 %v5586_v38 }
 0x1be   : > { %6702 = vmatprep.mubr.f32.mxu1 %v9992_v43  ;;  %6822 = vmatprep.subr.mxu1 %v5568_v45 }
 0x1bf   : > { %6777 = vmatmul.mubr.f32.gmra.mxu0 %v8386_v46  ;;  %v5567_v46 = vld [vmem:[%s9716_s4 + $0x330] sm:$0xff]  ;;  %6823 = vmatpush3.msra.mxu1 %v5568_v45 }
 0x1c0   : > { %6779 = vmatprep.mubr.f32.mxu0 %v9949_v40  ;;  %6899 = vmatpush3.msra.mxu0 %v5586_v38  ;;  %v9995_v38 = vld [vmem:[#allocation30_spill] sm:$0xff]  ;;  %v9996_v40 = vld [vmem:[#allocation37_spill] sm:$0xff]  ;;  %v5583_v45 = vld [vmem:[%s9716_s4 + $0x3b0] sm:$0xff] }
 0x1c1   : > { %6703 = vmatmul.mubr.f32.gmra.mxu1 %v9993_v48  ;;  %6900 = vmatprep.subr.mxu0 %v5585_v42 }
 0x1c2   : > { %6705 = vmatprep.mubr.f32.mxu1 %v9994_v14  ;;  %6824 = vmatprep.subr.mxu1 %v5567_v46 }
 0x1c3   : > { %6780 = vmatmul.mubr.f32.gmra.mxu0 %v8401_v1  ;;  %v5566_v1 = vld [vmem:[%s9716_s4 + $0x328] sm:$0xff]  ;;  %6825 = vmatpush3.msra.mxu1 %v5567_v46 }
 0x1c4   : > { %6782 = vmatprep.mubr.f32.mxu0 %v9953_v35  ;;  %6901 = vmatpush3.msra.mxu0 %v5585_v42  ;;  %v9997_v42 = vld [vmem:[#allocation33_spill] sm:$0xff]  ;;  %v9998_v35 = vld [vmem:[#allocation42_spill] sm:$0xff]  ;;  %v5582_v46 = vld [vmem:[%s9716_s4 + $0x3a8] sm:$0xff] }
 0x1c5   : > { %6706 = vmatmul.mubr.f32.gmra.mxu1 %v9995_v38  ;;  %6902 = vmatprep.subr.mxu0 %v5584_v29 }
 0x1c6   : > { %6708 = vmatprep.mubr.f32.mxu1 %v9996_v40  ;;  %6826 = vmatprep.subr.mxu1 %v5566_v1 }
 0x1c7   : > { %6783 = vmatmul.mubr.f32.gmra.mxu0 %v8416_v8  ;;  %v5565_v8 = vld [vmem:[%s9716_s4 + $0x320] sm:$0xff]  ;;  %6827 = vmatpush3.msra.mxu1 %v5566_v1 }
 0x1c8   : > { %6785 = vmatprep.mubr.f32.mxu0 %v9958_v22  ;;  %6903 = vmatpush3.msra.mxu0 %v5584_v29  ;;  %v9999_v29 = vld [vmem:[#allocation39_spill] sm:$0xff]  ;;  %v5581_v1 = vld [vmem:[%s9716_s4 + $0x3a0] sm:$0xff] }
 0x1c9   : > { %6709 = vmatmul.mubr.f32.gmra.mxu1 %v9997_v42  ;;  %6904 = vmatprep.subr.mxu0 %v5583_v45 }
 0x1ca   : > { %6711 = vmatprep.mubr.f32.mxu1 %v9998_v35  ;;  %6828 = vmatprep.subr.mxu1 %v5565_v8 }
 0x1cb   : > { %6786 = vmatmul.mubr.f32.gmra.mxu0 %v8431_v10  ;;  %v5564_v10 = vld [vmem:[%s9716_s4 + $0x318] sm:$0xff]  ;;  %6829 = vmatpush3.msra.mxu1 %v5565_v8 }
 0x1cc   : > { %6788 = vmatprep.mubr.f32.mxu0 %v9963_v11  ;;  %6905 = vmatpush3.msra.mxu0 %v5583_v45  ;;  %v10000_v45 = vld [vmem:[#allocation46_spill] sm:$0xff]  ;;  %v10001_v11 = vld [vmem:[#allocation53_spill] sm:$0xff] }
 0x1cd   : > { %6712 = vmatmul.mubr.f32.gmra.mxu1 %v9999_v29  ;;  %6906 = vmatprep.subr.mxu0 %v5582_v46  ;;  %v5580_v8 = vld [vmem:[%s9716_s4 + $0x398] sm:$0xff] }
 0x1ce   : > { %6714 = vmatprep.mubr.f32.mxu1 %v8065_v13  ;;  %6830 = vmatprep.subr.mxu1 %v5564_v10 }
 0x1cf   : > { %6789 = vmatmul.mubr.f32.gmra.mxu0 %v8446_v12  ;;  %v5563_v12 = vld [vmem:[%s9716_s4 + $0x310] sm:$0xff]  ;;  %6831 = vmatpush3.msra.mxu1 %v5564_v10 }
 0x1d0   : > { %6791 = vmatprep.mubr.f32.mxu0 %v9968_v24  ;;  %6907 = vmatpush3.msra.mxu0 %v5582_v46  ;;  %v5562_v46 = vld [vmem:[%s9716_s4 + $0x308] sm:$0xff]  ;;  %v5579_v10 = vld [vmem:[%s9716_s4 + $0x390] sm:$0xff] }
 0x1d1   : > { %6715 = vmatmul.mubr.f32.gmra.mxu1 %v10000_v45  ;;  %6908 = vmatprep.subr.mxu0 %v5581_v1 }
 0x1d2   : > { %6717 = vmatprep.mubr.f32.mxu1 %v10001_v11  ;;  %6832 = vmatprep.subr.mxu1 %v5563_v12 }
 0x1d3   : > { %6792 = vmatmul.mubr.f32.gmra.mxu0 %v8461_v23  ;;  %v1886_v23 = vadd.s32 264, %v7517_v0  ;;  %6833 = vmatpush3.msra.mxu1 %v5563_v12  ;;  %v5578_v12 = vld [vmem:[%s9716_s4 + $0x388] sm:$0xff] }
 0x1d4   : > { %6794 = vmatprep.mubr.f32.mxu0 %v8146_v30  ;;  %6909 = vmatpush3.msra.mxu0 %v5581_v1  ;;  %v5561_v1 = vld [vmem:[%s9716_s4 + $0x300] sm:$0xff] }
 0x1d5   : > { %6718 = vmatmul.mubr.f32.gmra.mxu1 %v8109_v57  ;;  %6910 = vmatprep.subr.mxu0 %v5580_v8 }
 0x1d6   : > { %6720 = vmatprep.mubr.f32.mxu1 %v8157_v59  ;;  %6834 = vmatprep.subr.mxu1 %v5562_v46 }
 0x1d7   : > { %6795 = vmatmul.mubr.f32.gmra.mxu0 %v8477_v17  ;;  %v2124_v17 = vand.u32 15, %v1886_v23  ;;  %6835 = vmatpush3.msra.mxu1 %v5562_v46  ;;  %v5608_v23 = vld [vmem:[%s9716_s4 + $0x478] sm:$0xff] }
 0x1d8   : > { %6797 = vmatprep.mubr.f32.mxu0 %v8207_v50  ;;  %6911 = vmatpush3.msra.mxu0 %v5580_v8 }
 0x1d9   : > { %6721 = vmatmul.mubr.f32.gmra.mxu1 %v8128_v18  ;;  %6912 = vmatprep.subr.mxu0 %v5579_v10  ;;  %vm2498_vm3 = vcmp.eq.s32.totalorder %v2124_v17, 15  ;;  %v5577_v17 = vld [vmem:[%s9716_s4 + $0x380] sm:$0xff] }
 0x1da   : > { %6723 = vmatprep.mubr.f32.mxu1 %v8201_v55  ;;  %6836 = vmatprep.subr.mxu1 %v5561_v1  ;;  %v8696_v8 = vsel %vm2498_vm3, %v8531_v9, %v8238_v61 }
 0x1db   : > { %6798 = vmatmul.mubr.f32.gmra.mxu0 %v8492_v31  ;;  %6837 = vmatpush3.msra.mxu1 %v5561_v1 }
 0x1dc   : > { %6800 = vmatprep.mubr.f32.mxu0 %v8249_v3  ;;  %6913 = vmatpush3.msra.mxu0 %v5579_v10 }
 0x1dd   : > { %6724 = vmatmul.mubr.f32.gmra.mxu1 %v8171_v53  ;;  %6914 = vmatprep.subr.mxu0 %v5578_v12 }
 0x1de   : > { %6838 = vmatprep.mubr.f32.mxu1 %v7652_v26  ;;  %6966 = vmatprep.subr.mxu1 %v5608_v23  ;;  %v5607_v26 = vld [vmem:[%s9716_s4 + $0x470] sm:$0xff] }
 0x1df   : > { %6801 = vmatmul.mubr.f32.gmra.mxu0 %v8516_v4 }
 0x1e0   : > { %6803 = vmatprep.mubr.f32.mxu0 %v8512_v5  ;;  %6915 = vmatpush3.msra.mxu0 %v5578_v12  ;;  %v6360_v46 = vpop.f32.mrf.mxu1 }
 0x1e1   : > { %6839 = vmatmul.mubr.f32.vlgmr.msra.gmra.mxu1 %v7603_v63  ;;  %6916 = vmatprep.subr.mxu0 %v5577_v17  ;;  %v5606_v63 = vld [vmem:[%s9716_s4 + $0x468] sm:$0xff] }
 0x1e2   : > { %6841 = vmatprep.mubr.f32.mxu1 %v7702_v54  ;;  %6967 = vmatpush3.msra.mxu1 %v5608_v23  ;;  %v2708_v61 = vpop.f32.mrf.mxu1 }
 0x1e3   : > { %6804 = vmatmul.mubr.f32.gmra.mxu0 %v8696_v8  ;;  %6968 = vmatprep.subr.mxu1 %v5607_v26 }
 0x1e4   : > { %6918 = vmatprep.mubr.f32.mxu0 %v9978_v27  ;;  %6917 = vmatpush3.msra.mxu0 %v5577_v17  ;;  %v6363_v10 = vpop.f32.mrf.mxu1 }
 0x1e5   : > { %v6440_v1 = vpop.f32.mrf.mxu0  ;;  %6842 = vmatmul.mubr.f32.gmra.mxu1 %v7743_v47 }
 0x1e6   : > { %v8713_v12 = vadd.f32 %v6440_v1, %v6360_v46  ;;  %6844 = vmatprep.mubr.f32.mxu1 %v7756_v25  ;;  %6969 = vmatpush3.msra.mxu1 %v5607_v26  ;;  %v2718_v54 = vpop.f32.mrf.mxu1 }
 0x1e7   : > { %6919 = vmatmul.mubr.f32.vlgmr.msra.gmra.mxu0 %v9979_v6  ;;  %v2933_v27 = vpop.f32.mrf.mxu0  ;;  %6970 = vmatprep.subr.mxu1 %v5606_v63  ;;  %v5605_v6 = vld [vmem:[%s9716_s4 + $0x460] sm:$0xff] }
 0x1e8   : > { %6921 = vmatprep.mubr.f32.mxu0 %v9980_v15  ;;  %v8717_v23 = vadd.f32 %v2933_v27, %v2708_v61  ;;  %v6366_v17 = vpop.f32.mrf.mxu1  ;;  %6971 = vmatpush3.msra.mxu1 %v5606_v63  ;;  %v10003_v27 = vld [vmem:[#allocation27_spill] sm:$0xff] }
 0x1e9   : > { %v6443_v47 = vpop.f32.mrf.mxu0  ;;  %6845 = vmatmul.mubr.f32.gmra.mxu1 %v7794_v16  ;;  %6972 = vmatprep.subr.mxu1 %v5605_v6 }
 0x1ea   : > { %v8724_v46 = vadd.f32 %v6443_v47, %v6363_v10  ;;  %6847 = vmatprep.mubr.f32.mxu1 %v7814_v62  ;;  %v2728_v25 = vpop.f32.mrf.mxu1  ;;  %v10002_v62 = vld [vmem:[#allocation25_spill] sm:$0xff]  ;;  %6973 = vmatpush3.msra.mxu1 %v5605_v6  ;;  %v10004_v47 = vld [vmem:[#allocation28_spill] sm:$0xff] }
 0x1eb   : > { %6922 = vmatmul.mubr.f32.gmra.mxu0 %v9981_v52  ;;  %v2943_v15 = vpop.f32.mrf.mxu0  ;;  %v5604_v52 = vld [vmem:[%s9716_s4 + $0x458] sm:$0xff] }
 0x1ec   : > { %6924 = vmatprep.mubr.f32.mxu0 %v9982_v20  ;;  %v8728_v26 = vadd.f32 %v2943_v15, %v2718_v54  ;;  %v6369_v61 = vpop.f32.mrf.mxu1  ;;  %6974 = vmatprep.subr.mxu1 %v5604_v52 }
 0x1ed   : > { %v6446_v16 = vpop.f32.mrf.mxu0  ;;  %6848 = vmatmul.mubr.f32.gmra.mxu1 %v7842_v37 }
 0x1ee   : > { %v8735_v10 = vadd.f32 %v6446_v16, %v6366_v17  ;;  %6850 = vmatprep.mubr.f32.mxu1 %v10002_v62  ;;  %v2738_v20 = vpop.f32.mrf.mxu1  ;;  %6975 = vmatpush3.msra.mxu1 %v5604_v52  ;;  %v10005_v62 = vld [vmem:[#allocation32_spill] sm:$0xff] }
 0x1ef   : > { %6925 = vmatmul.mubr.f32.gmra.mxu0 %v9983_v41  ;;  %v2953_v1 = vpop.f32.mrf.mxu0  ;;  %v5603_v41 = vld [vmem:[%s9716_s4 + $0x450] sm:$0xff] }
 0x1f0   : > { %6927 = vmatprep.mubr.f32.mxu0 %v9984_v36  ;;  %v8739_v63 = vadd.f32 %v2953_v1, %v2728_v25  ;;  %v6372_v54 = vpop.f32.mrf.mxu1  ;;  %6976 = vmatprep.subr.mxu1 %v5603_v41  ;;  %v10006_v1 = vld [vmem:[#allocation34_spill] sm:$0xff] }
 0x1f1   : > { %v6449_v37 = vpop.f32.mrf.mxu0  ;;  %6851 = vmatmul.mubr.f32.gmra.mxu1 %v10003_v27 }
 0x1f2   : > { %v8746_v17 = vadd.f32 %v6449_v37, %v6369_v61  ;;  %6853 = vmatprep.mubr.f32.mxu1 %v10004_v47  ;;  %v2748_v36 = vpop.f32.mrf.mxu1  ;;  %6977 = vmatpush3.msra.mxu1 %v5603_v41  ;;  %v10007_v47 = vld [vmem:[#allocation38_spill] sm:$0xff] }
 0x1f3   : > { %6928 = vmatmul.mubr.f32.gmra.mxu0 %v9985_v2  ;;  %v2963_v6 = vpop.f32.mrf.mxu0  ;;  %v5602_v2 = vld [vmem:[%s9716_s4 + $0x448] sm:$0xff] }
 0x1f4   : > { %6930 = vmatprep.mubr.f32.mxu0 %v9986_v34  ;;  %v8750_v25 = vadd.f32 %v2963_v6, %v2738_v20  ;;  %v6375_v15 = vpop.f32.mrf.mxu1  ;;  %6978 = vmatprep.subr.mxu1 %v5602_v2  ;;  %v10008_v6 = vld [vmem:[#allocation40_spill] sm:$0xff] }
 0x1f5   : > { %v6452_v16 = vpop.f32.mrf.mxu0  ;;  %6854 = vmatmul.mubr.f32.gmra.mxu1 %v10005_v62 }
 0x1f6   : > { %v8757_v61 = vadd.f32 %v6452_v16, %v6372_v54  ;;  %6856 = vmatprep.mubr.f32.mxu1 %v10006_v1  ;;  %v2758_v34 = vpop.f32.mrf.mxu1  ;;  %6979 = vmatpush3.msra.mxu1 %v5602_v2  ;;  %v10009_v1 = vld [vmem:[#allocation44_spill] sm:$0xff] }
 0x1f7   : > { %6931 = vmatmul.mubr.f32.gmra.mxu0 %v9987_v7  ;;  %v2973_v52 = vpop.f32.mrf.mxu0  ;;  %v5601_v7 = vld [vmem:[%s9716_s4 + $0x440] sm:$0xff] }
 0x1f8   : > { %6933 = vmatprep.mubr.f32.mxu0 %v9988_v60  ;;  %v8761_v20 = vadd.f32 %v2973_v52, %v2748_v36  ;;  %v6378_v37 = vpop.f32.mrf.mxu1  ;;  %6980 = vmatprep.subr.mxu1 %v5601_v7  ;;  %v10010_v52 = vld [vmem:[#allocation47_spill] sm:$0xff] }
 0x1f9   : > { %v6455_v27 = vpop.f32.mrf.mxu0  ;;  %6857 = vmatmul.mubr.f32.gmra.mxu1 %v10007_v47 }
 0x1fa   : > { %v8768_v54 = vadd.f32 %v6455_v27, %v6375_v15  ;;  %6859 = vmatprep.mubr.f32.mxu1 %v10008_v6  ;;  %v2768_v60 = vpop.f32.mrf.mxu1  ;;  %6981 = vmatpush3.msra.mxu1 %v5601_v7  ;;  %v10011_v6 = vld [vmem:[#allocation49_spill] sm:$0xff] }
 0x1fb   : > { %6934 = vmatmul.mubr.f32.gmra.mxu0 %v9989_v32  ;;  %v2983_v41 = vpop.f32.mrf.mxu0  ;;  %v5600_v32 = vld [vmem:[%s9716_s4 + $0x438] sm:$0xff] }
 0x1fc   : > { %6936 = vmatprep.mubr.f32.mxu0 %v9990_v49  ;;  %v8772_v36 = vadd.f32 %v2983_v41, %v2758_v34  ;;  %v6381_v16 = vpop.f32.mrf.mxu1  ;;  %6982 = vmatprep.subr.mxu1 %v5600_v32  ;;  %v10012_v41 = vld [vmem:[#allocation50_spill] sm:$0xff] }
 0x1fd   : > { %v6458_v62 = vpop.f32.mrf.mxu0  ;;  %6860 = vmatmul.mubr.f32.gmra.mxu1 %v10009_v1 }
 0x1fe   : > { %v8779_v15 = vadd.f32 %v6458_v62, %v6378_v37  ;;  %6862 = vmatprep.mubr.f32.mxu1 %v10010_v52  ;;  %v2778_v49 = vpop.f32.mrf.mxu1  ;;  %6983 = vmatpush3.msra.mxu1 %v5600_v32  ;;  %v10013_v52 = vld [vmem:[#allocation54_spill] sm:$0xff] }
 0x1ff   : > { %6937 = vmatmul.mubr.f32.gmra.mxu0 %v9991_v21  ;;  %v2993_v2 = vpop.f32.mrf.mxu0  ;;  %v5599_v21 = vld [vmem:[%s9716_s4 + $0x430] sm:$0xff] }
 0x200   : > { %6939 = vmatprep.mubr.f32.mxu0 %v9992_v43  ;;  %v8783_v34 = vadd.f32 %v2993_v2, %v2768_v60  ;;  %v6384_v27 = vpop.f32.mrf.mxu1  ;;  %6984 = vmatprep.subr.mxu1 %v5599_v21  ;;  %v10014_v2 = vld [vmem:[#allocation55_spill] sm:$0xff] }
 0x201   : > { %v6461_v47 = vpop.f32.mrf.mxu0  ;;  %6863 = vmatmul.mubr.f32.gmra.mxu1 %v10011_v6 }
 0x202   : > { %v8790_v37 = vadd.f32 %v6461_v47, %v6381_v16  ;;  %6865 = vmatprep.mubr.f32.mxu1 %v10012_v41  ;;  %v2788_v43 = vpop.f32.mrf.mxu1  ;;  %6985 = vmatpush3.msra.mxu1 %v5599_v21 }
 0x203   : > { %6940 = vmatmul.mubr.f32.gmra.mxu0 %v9993_v48  ;;  %v3003_v7 = vpop.f32.mrf.mxu0  ;;  %v5598_v48 = vld [vmem:[%s9716_s4 + $0x428] sm:$0xff] }
 0x204   : > { %6942 = vmatprep.mubr.f32.mxu0 %v9994_v14  ;;  %v8794_v60 = vadd.f32 %v3003_v7, %v2778_v49  ;;  %v6387_v62 = vpop.f32.mrf.mxu1  ;;  %6986 = vmatprep.subr.mxu1 %v5598_v48 }
 0x205   : > { %v6464_v1 = vpop.f32.mrf.mxu0  ;;  %6866 = vmatmul.mubr.f32.gmra.mxu1 %v10013_v52 }
 0x206   : > { %v8801_v16 = vadd.f32 %v6464_v1, %v6384_v27  ;;  %6868 = vmatprep.mubr.f32.mxu1 %v10014_v2  ;;  %v2798_v14 = vpop.f32.mrf.mxu1  ;;  %6987 = vmatpush3.msra.mxu1 %v5598_v48  ;;  %v10016_v48 = vld [vmem:[#allocation60_spill] sm:$0xff] }
 0x207   : > { %6943 = vmatmul.mubr.f32.gmra.mxu0 %v9995_v38  ;;  %v3013_v32 = vpop.f32.mrf.mxu0  ;;  %v5597_v38 = vld [vmem:[%s9716_s4 + $0x420] sm:$0xff]  ;;  %v5595_v2 = vld [vmem:[%s9716_s4 + $0x410] sm:$0xff] }
 0x208   : > { %6945 = vmatprep.mubr.f32.mxu0 %v9996_v40  ;;  %v8805_v49 = vadd.f32 %v3013_v32, %v2788_v43  ;;  %v6390_v47 = vpop.f32.mrf.mxu1  ;;  %6988 = vmatprep.subr.mxu1 %v5597_v38 }
 0x209   : > { %v6467_v6 = vpop.f32.mrf.mxu0  ;;  %6869 = vmatmul.mubr.f32.gmra.mxu1 %v8176_v44 }
 0x20a   : > { %v8812_v27 = vadd.f32 %v6467_v6, %v6387_v62  ;;  %6871 = vmatprep.mubr.f32.mxu1 %v8188_v33  ;;  %v2808_v40 = vpop.f32.mrf.mxu1  ;;  %v10015_v33 = vld [vmem:[#allocation58_spill] sm:$0xff]  ;;  %6989 = vmatpush3.msra.mxu1 %v5597_v38 }
 0x20b   : > { %6946 = vmatmul.mubr.f32.gmra.mxu0 %v9997_v42  ;;  %v3023_v21 = vpop.f32.mrf.mxu0  ;;  %v5596_v42 = vld [vmem:[%s9716_s4 + $0x418] sm:$0xff] }
 0x20c   : > { %6948 = vmatprep.mubr.f32.mxu0 %v9998_v35  ;;  %v8816_v41 = vadd.f32 %v3023_v21, %v2798_v14  ;;  %v6393_v43 = vpop.f32.mrf.mxu1  ;;  %v1887_v35 = vadd.s32 272, %v7517_v0  ;;  %6990 = vmatprep.subr.mxu1 %v5596_v42 }
 0x20d   : > { %v6470_v44 = vpop.f32.mrf.mxu0  ;;  %6872 = vmatmul.mubr.f32.gmra.mxu1 %v8218_v28 }
 0x20e   : > { %v8823_v7 = vadd.f32 %v6470_v44, %v6390_v47  ;;  %6874 = vmatprep.mubr.f32.mxu1 %v10015_v33  ;;  %v2818_v62 = vpop.f32.mrf.mxu1  ;;  %6991 = vmatpush3.msra.mxu1 %v5596_v42 }
 0x20f   : > { %6949 = vmatmul.mubr.f32.gmra.mxu0 %v9999_v29  ;;  %v3033_v1 = vpop.f32.mrf.mxu0  ;;  %6992 = vmatprep.subr.mxu1 %v5595_v2 }
 0x210   : > { %6951 = vmatprep.mubr.f32.mxu0 %v8065_v13  ;;  %v8828_v52 = vadd.f32 %v3033_v1, %v2808_v40  ;;  %v6396_v28 = vpop.f32.mrf.mxu1  ;;  %v2131_v13 = vand.u32 15, %v1887_v35  ;;  %6993 = vmatpush3.msra.mxu1 %v5595_v2 }
 0x211   : > { %v6473_v29 = vpop.f32.mrf.mxu0  ;;  %6875 = vmatmul.mubr.f32.gmra.mxu1 %v10016_v48 }
 0x212   : > { %v8835_v14 = vadd.f32 %v6473_v29, %v6393_v43  ;;  %6877 = vmatprep.mubr.f32.mxu1 %v8266_v56  ;;  %v2828_v32 = vpop.f32.mrf.mxu1  ;;  %vm2355_vm4 = vcmp.eq.s32.totalorder %v2131_v13, 0 }
 0x213   : > { %6952 = vmatmul.mubr.f32.gmra.mxu0 %v10000_v45  ;;  %v3043_v47 = vpop.f32.mrf.mxu0  ;;  %v5594_v45 = vld [vmem:[%s9716_s4 + $0x408] sm:$0xff] }
 0x214   : > { %6954 = vmatprep.mubr.f32.mxu0 %v10001_v11  ;;  %v8839_v6 = vadd.f32 %v3043_v47, %v2818_v62  ;;  %v6399_v38 = vpop.f32.mrf.mxu1  ;;  %6994 = vmatprep.subr.mxu1 %v5594_v45 }
 0x215   : > { %6878 = vmatmul.mubr.f32.gmra.mxu1 %v8281_v51 }
 0x216   : > { %6880 = vmatprep.mubr.f32.mxu1 %v8524_v39  ;;  %v2838_v11 = vpop.f32.mrf.mxu1  ;;  %v5593_v39 = vld [vmem:[%s9716_s4 + $0x400] sm:$0xff]  ;;  %6995 = vmatpush3.msra.mxu1 %v5594_v45 }
 0x217   : > { %v6476_v40 = vpop.f32.mrf.mxu0  ;;  %6955 = vmatmul.mubr.f32.gmra.mxu0 %v8109_v57  ;;  %v10017_v57 = vld [vmem:[#allocation59_spill] sm:$0xff]  ;;  %6996 = vmatprep.subr.mxu1 %v5593_v39 }
 0x218   : > { %v8846_v56 = vadd.f32 %v6476_v40, %v6396_v28  ;;  %6957 = vmatprep.mubr.f32.mxu0 %v8157_v59  ;;  %v6402_v44 = vpop.f32.mrf.mxu1  ;;  %v2463_v33 = vsel %vm2355_vm4, %v8249_v3, %v10017_v57  ;;  %6997 = vmatpush3.msra.mxu1 %v5593_v39  ;;  %v10018_v40 = vld [vmem:[#allocation11_spill] sm:$0xff] }
 0x219   : > { %v3053_v21 = vpop.f32.mrf.mxu0  ;;  %6881 = vmatmul.mubr.f32.gmra.mxu1 %v8531_v9 }
 0x21a   : > { %v8850_v43 = vadd.f32 %v3053_v21, %v2828_v32  ;;  %6883 = vmatprep.mubr.f32.mxu1 %v2463_v33  ;;  %v2848_v62 = vpop.f32.mrf.mxu1 }
 0x21b   : > { %v6479_v42 = vpop.f32.mrf.mxu0  ;;  %6958 = vmatmul.mubr.f32.gmra.mxu0 %v8128_v18 }
 0x21c   : > { %v8859_v35 = vadd.f32 %v6479_v42, %v6399_v38  ;;  %6960 = vmatprep.mubr.f32.mxu0 %v8201_v55  ;;  %v10019_v42 = vld [vmem:[#allocation61_spill] sm:$0xff] }
 0x21d   : > { %v3063_v1 = vpop.f32.mrf.mxu0  ;;  %v6405_v9 = vpop.f32.mrf.mxu1  ;;  %6884 = vmatmul.mubr.f32.gmra.mxu1 %v8281_v51 }
 0x21e   : > { %v8862_v28 = vadd.f32 %v3063_v1, %v2838_v11  ;;  %6998 = vmatprep.mubr.f32.mxu1 %v7593_v58 }
 0x21f   : > { %v6482_v29 = vpop.f32.mrf.mxu0  ;;  %6961 = vmatmul.mubr.f32.gmra.mxu0 %v8171_v53  ;;  %v2858_v55 = vpop.f32.mrf.mxu1 }
 0x220   : > { %v8866_v48 = vadd.f32 %v6482_v29, %v6402_v44  ;;  %6963 = vmatprep.mubr.f32.mxu0 %v8157_v59  ;;  %v10021_v29 = vld [vmem:[#allocation62_spill] sm:$0xff] }
 0x221   : > { %v3073_v2 = vpop.f32.mrf.mxu0  ;;  %v6520_v47 = vpop.f32.mrf.mxu1  ;;  %6999 = vmatmul.mubr.f32.vlgmr.msra.gmra.mxu1 %v8311_v19  ;;  %v10020_v19 = vld [vmem:[#allocation15_spill] sm:$0xff] }
 0x222   : > { %v8870_v13 = vadd.f32 %v3073_v2, %v2848_v62  ;;  %v3335_v53 = vadd.f32 %v6520_v47, %v8713_v12  ;;  %7001 = vmatprep.mubr.f32.mxu1 %v10018_v40  ;;  %v10022_v2 = vld [vmem:[#allocation19_spill] sm:$0xff] }
 0x223   : > { %v6485_v32 = vpop.f32.mrf.mxu0  ;;  %6964 = vmatmul.mubr.f32.gmra.mxu0 %v8128_v18  ;;  %v3175_v45 = vpop.f32.mrf.mxu1 }
 0x224   : > { %v8874_v38 = vadd.f32 %v6485_v32, %v6405_v9  ;;  %v3334_v58 = vadd.f32 %v3175_v45, %v8717_v23 }
 0x225   : > { %v3083_v59 = vpop.f32.mrf.mxu0  ;;  %v6523_v21 = vpop.f32.mrf.mxu1  ;;  %7002 = vmatmul.mubr.f32.gmra.mxu1 %v10019_v42 }
 0x226   : > { %v8878_v11 = vadd.f32 %v3083_v59, %v2858_v55  ;;  %v3337_v18 = vadd.f32 %v6523_v21, %v8724_v46  ;;  %7004 = vmatprep.mubr.f32.mxu1 %v10020_v19  ;;  %v10023_v59 = vld [vmem:[#allocation63_spill] sm:$0xff]  ;;  %v10024_v21 = vld [vmem:[#allocation22_spill] sm:$0xff] }
 0x227   : > { %v6600_v44 = vpop.f32.mrf.mxu0  ;;  %v3185_v33 = vpop.f32.mrf.mxu1 }
 0x228   : > { %v8883_v57 = vadd.f32 %v6600_v44, %v3335_v53  ;;  %v3336_v39 = vadd.f32 %v3185_v33, %v8728_v26  ;;  %v10025_v33 = vld [vmem:[#allocation64_spill] sm:$0xff] }
 0x229   : > { %v3449_v12 = vpop.f32.mrf.mxu0  ;;  %v6526_v1 = vpop.f32.mrf.mxu1  ;;  %7005 = vmatmul.mubr.f32.gmra.mxu1 %v10021_v29 }
 0x22a   : > { %v8887_v62 = vadd.f32 %v3449_v12, %v3334_v58  ;;  %v3339_v23 = vadd.f32 %v6526_v1, %v8735_v10  ;;  %7007 = vmatprep.mubr.f32.mxu1 %v10022_v2  ;;  %v10026_v1 = vld [vmem:[#allocation23_spill] sm:$0xff] }
 0x22b   : > { %v6603_v9 = vpop.f32.mrf.mxu0  ;;  %v3195_v46 = vpop.f32.mrf.mxu1 }
 0x22c   : > { %v8891_v55 = vadd.f32 %v6603_v9, %v3337_v18  ;;  %v3338_v47 = vadd.f32 %v3195_v46, %v8739_v63  ;;  %v10027_v46 = vld [vmem:[#allocation65_spill] sm:$0xff] }
 0x22d   : > { %v3459_v32 = vpop.f32.mrf.mxu0  ;;  %v6529_v40 = vpop.f32.mrf.mxu1  ;;  %7008 = vmatmul.mubr.f32.gmra.mxu1 %v10023_v59 }
 0x22e   : > { %v8895_v53 = vadd.f32 %v3459_v32, %v3336_v39  ;;  %v3341_v45 = vadd.f32 %v6529_v40, %v8746_v17  ;;  %7010 = vmatprep.mubr.f32.mxu1 %v10024_v21  ;;  %v10028_v40 = vld [vmem:[#allocation29_spill] sm:$0xff] }
 0x22f   : > { %v6606_v26 = vpop.f32.mrf.mxu0  ;;  %v3205_v10 = vpop.f32.mrf.mxu1 }
 0x230   : > { %v8899_v58 = vadd.f32 %v6606_v26, %v3339_v23  ;;  %v3340_v42 = vadd.f32 %v3205_v10, %v8750_v25  ;;  %v10029_v10 = vld [vmem:[#allocation36_spill] sm:$0xff] }
 0x231   : > { %v3469_v44 = vpop.f32.mrf.mxu0  ;;  %v6532_v19 = vpop.f32.mrf.mxu1  ;;  %7011 = vmatmul.mubr.f32.gmra.mxu1 %v10025_v33 }
 0x232   : > { %v8903_v18 = vadd.f32 %v3469_v44, %v3338_v47  ;;  %v3343_v12 = vadd.f32 %v6532_v19, %v8757_v61  ;;  %7013 = vmatprep.mubr.f32.mxu1 %v10026_v1  ;;  %v10030_v19 = vld [vmem:[#allocation35_spill] sm:$0xff] }
 0x233   : > { %v6609_v63 = vpop.f32.mrf.mxu0  ;;  %v3215_v17 = vpop.f32.mrf.mxu1 }
 0x234   : > { %v8907_v39 = vadd.f32 %v6609_v63, %v3341_v45  ;;  %v3342_v29 = vadd.f32 %v3215_v17, %v8761_v20  ;;  %v10031_v17 = vld [vmem:[#allocation41_spill] sm:$0xff] }
 0x235   : > { %v3479_v9 = vpop.f32.mrf.mxu0  ;;  %v6535_v2 = vpop.f32.mrf.mxu1  ;;  %7014 = vmatmul.mubr.f32.gmra.mxu1 %v10027_v46 }
 0x236   : > { %v8911_v23 = vadd.f32 %v3479_v9, %v3340_v42  ;;  %v3345_v32 = vadd.f32 %v6535_v2, %v8768_v54  ;;  %7016 = vmatprep.mubr.f32.mxu1 %v10028_v40  ;;  %v10032_v40 = vld [vmem:[#allocation43_spill] sm:$0xff] }
 0x237   : > { %v6612_v25 = vpop.f32.mrf.mxu0  ;;  %v3225_v61 = vpop.f32.mrf.mxu1 }
 0x238   : > { %v8915_v47 = vadd.f32 %v6612_v25, %v3343_v12  ;;  %v3344_v59 = vadd.f32 %v3225_v61, %v8772_v36 }
 0x239   : > { %v3489_v26 = vpop.f32.mrf.mxu0  ;;  %v6538_v21 = vpop.f32.mrf.mxu1  ;;  %7017 = vmatmul.mubr.f32.gmra.mxu1 %v10029_v10 }
 0x23a   : > { %v8919_v45 = vadd.f32 %v3489_v26, %v3342_v29  ;;  %v3347_v44 = vadd.f32 %v6538_v21, %v8779_v15  ;;  %7019 = vmatprep.mubr.f32.mxu1 %v10030_v19 }
 0x23b   : > { %v6615_v20 = vpop.f32.mrf.mxu0  ;;  %v3235_v54 = vpop.f32.mrf.mxu1 }
 0x23c   : > { %v8923_v42 = vadd.f32 %v6615_v20, %v3345_v32  ;;  %v3346_v33 = vadd.f32 %v3235_v54, %v8783_v34 }
 0x23d   : > { %v3499_v63 = vpop.f32.mrf.mxu0  ;;  %v6541_v1 = vpop.f32.mrf.mxu1  ;;  %7020 = vmatmul.mubr.f32.gmra.mxu1 %v10031_v17  ;;  %v10035_v17 = vld [vmem:[#allocation52_spill] sm:$0xff] }
 0x23e   : > { %v8927_v12 = vadd.f32 %v3499_v63, %v3344_v59  ;;  %v3349_v9 = vadd.f32 %v6541_v1, %v8790_v37  ;;  %7022 = vmatprep.mubr.f32.mxu1 %v9958_v22  ;;  %v10033_v59 = vld [vmem:[#allocation45_spill] sm:$0xff] }
 0x23f   : > { %v6618_v36 = vpop.f32.mrf.mxu0  ;;  %v3245_v15 = vpop.f32.mrf.mxu1 }
 0x240   : > { %v8931_v29 = vadd.f32 %v6618_v36, %v3347_v44  ;;  %v3348_v25 = vadd.f32 %v3245_v15, %v8794_v60  ;;  %v10034_v44 = vld [vmem:[#allocation48_spill] sm:$0xff] }
 0x241   : > { %v3509_v2 = vpop.f32.mrf.mxu0  ;;  %v6544_v32 = vpop.f32.mrf.mxu1  ;;  %7023 = vmatmul.mubr.f32.gmra.mxu1 %v10032_v40 }
 0x242   : > { %v8935_v46 = vadd.f32 %v3509_v2, %v3346_v33  ;;  %v3351_v61 = vadd.f32 %v6544_v32, %v8801_v16  ;;  %7025 = vmatprep.mubr.f32.mxu1 %v10033_v59 }
 0x243   : > { %v6621_v34 = vpop.f32.mrf.mxu0  ;;  %v3255_v37 = vpop.f32.mrf.mxu1 }
 0x244   : > { %v8939_v26 = vadd.f32 %v6621_v34, %v3349_v9  ;;  %v3350_v22 = vadd.f32 %v3255_v37, %v8805_v49  ;;  %v10036_v34 = vld [vmem:[#allocation51_spill] sm:$0xff] }
 0x245   : > { %v3519_v21 = vpop.f32.mrf.mxu0  ;;  %v6547_v10 = vpop.f32.mrf.mxu1  ;;  %7026 = vmatmul.mubr.f32.gmra.mxu1 %v10034_v44 }
 0x246   : > { %v8943_v20 = vadd.f32 %v3519_v21, %v3348_v25  ;;  %v3353_v19 = vadd.f32 %v6547_v10, %v8812_v27  ;;  %7028 = vmatprep.mubr.f32.mxu1 %v9968_v24 }
 0x247   : > { %v6624_v60 = vpop.f32.mrf.mxu0  ;;  %v3265_v16 = vpop.f32.mrf.mxu1 }
 0x248   : > { %v8947_v54 = vadd.f32 %v6624_v60, %v3351_v61  ;;  %v3352_v33 = vadd.f32 %v3265_v16, %v8816_v41 }
 0x249   : > { %v3529_v63 = vpop.f32.mrf.mxu0  ;;  %v6550_v36 = vpop.f32.mrf.mxu1  ;;  %7029 = vmatmul.mubr.f32.gmra.mxu1 %v10035_v17 }
 0x24a   : > { %v8951_v1 = vadd.f32 %v3529_v63, %v3350_v22  ;;  %v3355_v9 = vadd.f32 %v6550_v36, %v8823_v7  ;;  %7031 = vmatprep.mubr.f32.mxu1 %v8146_v30  ;;  %v1888_v22 = vadd.s32 280, %v7517_v0 }
 0x24b   : > { %v6627_v49 = vpop.f32.mrf.mxu0  ;;  %v3275_v27 = vpop.f32.mrf.mxu1 }
 0x24c   : > { %v8955_v15 = vadd.f32 %v6627_v49, %v3353_v19  ;;  %v3354_v24 = vadd.f32 %v3275_v27, %v8828_v52  ;;  %v2138_v63 = vand.u32 15, %v1888_v22 }
 0x24d   : > { %v3539_v2 = vpop.f32.mrf.mxu0  ;;  %v6553_v32 = vpop.f32.mrf.mxu1  ;;  %7032 = vmatmul.mubr.f32.gmra.mxu1 %v10036_v34 }
 0x24e   : > { %v8959_v25 = vadd.f32 %v3539_v2, %v3352_v33  ;;  %v3357_v40 = vadd.f32 %v6553_v32, %v8835_v14  ;;  %7034 = vmatprep.mubr.f32.mxu1 %v8207_v50  ;;  %vm2500_vm12 = vcmp.eq.s32.totalorder %v2138_v63, 15 }
 0x24f   : > { %v6630_v41 = vpop.f32.mrf.mxu0  ;;  %v3285_v7 = vpop.f32.mrf.mxu1 }
 0x250   : > { %v8963_v61 = vadd.f32 %v6630_v41, %v3355_v9  ;;  %v3356_v30 = vadd.f32 %v3285_v7, %v8839_v6 }
 0x251   : > { %v3549_v59 = vpop.f32.mrf.mxu0  ;;  %v6556_v21 = vpop.f32.mrf.mxu1  ;;  %7035 = vmatmul.mubr.f32.gmra.mxu1 %v8492_v31 }
 0x252   : > { %v8967_v37 = vadd.f32 %v3549_v59, %v3354_v24  ;;  %v3359_v10 = vadd.f32 %v6556_v21, %v8846_v56  ;;  %7037 = vmatprep.mubr.f32.mxu1 %v8249_v3 }
 0x253   : > { %v6633_v52 = vpop.f32.mrf.mxu0  ;;  %v3295_v14 = vpop.f32.mrf.mxu1 }
 0x254   : > { %v8972_v60 = vadd.f32 %v6633_v52, %v3357_v40  ;;  %v3358_v44 = vadd.f32 %v3295_v14, %v8850_v43 }
 0x255   : > { %v3559_v50 = vpop.f32.mrf.mxu0  ;;  %v6559_v6 = vpop.f32.mrf.mxu1  ;;  %7038 = vmatmul.mubr.f32.gmra.mxu1 %v8516_v4 }
 0x256   : > { %v8976_v19 = vadd.f32 %v3559_v50, %v3356_v30  ;;  %v3361_v31 = vadd.f32 %v6559_v6, %v8859_v35  ;;  %7040 = vmatprep.mubr.f32.mxu1 %v8512_v5 }
 0x257   : > { %v6636_v16 = vpop.f32.mrf.mxu0  ;;  %v3305_v56 = vpop.f32.mrf.mxu1 }
 0x258   : > { %v8980_v0 = vadd.f32 %v6636_v16, %v3359_v10  ;;  %v3360_v36 = vadd.f32 %v3305_v56, %v8862_v28  ;;  %v10037_v28 = vld [vmem:[#allocation57_spill] sm:$0xff] }
 0x259   : > { %v3569_v33 = vpop.f32.mrf.mxu0  ;;  %v6562_v43 = vpop.f32.mrf.mxu1  ;;  %7041 = vmatmul.mubr.f32.gmra.mxu1 %v8696_v8  ;;  %v2608_v24 = vsel %vm2500_vm12, %v8281_v51, %v10037_v28 }
 0x25a   : > { %v8984_v49 = vadd.f32 %v3569_v33, %v3358_v44  ;;  %v3363_v4 = vadd.f32 %v6562_v43, %v8866_v48  ;;  %7043 = vmatprep.mubr.f32.mxu1 %v8249_v3 }
 0x25b   : > { %v6639_v17 = vpop.f32.mrf.mxu0  ;;  %v3315_v35 = vpop.f32.mrf.mxu1 }
 0x25c   : > { %v8988_v9 = vadd.f32 %v6639_v17, %v3361_v31  ;;  %v3362_v5 = vadd.f32 %v3315_v35, %v8870_v13 }
 0x25d   : > { %v3579_v27 = vpop.f32.mrf.mxu0  ;;  %v6565_v32 = vpop.f32.mrf.mxu1  ;;  %7044 = vmatmul.mubr.f32.gmra.mxu1 %v2608_v24 }
 0x25e   : > { %v8992_v2 = vadd.f32 %v3579_v27, %v3360_v36  ;;  %v3365_v8 = vadd.f32 %v6565_v32, %v8874_v38 }
 0x25f   : > { %v6642_v41 = vpop.f32.mrf.mxu0  ;;  %v3325_v48 = vpop.f32.mrf.mxu1 }
 0x260   : > { %v8997_v34 = vadd.f32 %v6642_v41, %v3363_v4  ;;  %v3364_v3 = vadd.f32 %v3325_v48, %v8878_v11 }
 0x261   : > { %v3589_v40 = vpop.f32.mrf.mxu0  ;;  %v6680_v13 = vpop.f32.mrf.mxu1 }
 0x262   : > { %v9000_v7 = vadd.f32 %v3589_v40, %v3362_v5  ;;  %v9005_v21 = vadd.f32 %v6680_v13, %v8883_v57 }
 0x263   : > { %v6645_v59 = vpop.f32.mrf.mxu0  ;;  %v3723_v52 = vpop.f32.mrf.mxu1 }
 0x264   : > { %v9002_v30 = vadd.f32 %v6645_v59, %v3365_v8  ;;  %v9010_v38 = vadd.f32 %v3723_v52, %v8887_v62 }
 0x265   : > { %v3599_v51 = vpop.f32.mrf.mxu0  ;;  %v6683_v10 = vpop.f32.mrf.mxu1 }
 0x266   : > { %v9007_v22 = vadd.f32 %v3599_v51, %v3364_v3  ;;  %v9015_v11 = vadd.f32 %v6683_v10, %v8891_v55 }
 0x267   : > { %v9012_v14 = vpop.f32.mrf.mxu0  ;;  %v3733_v50 = vpop.f32.mrf.mxu1 }
 0x268   : > { %v9020_v6 = vadd.f32 %v3733_v50, %v8895_v53 }
 0x269   : > { %v9017_v44 = vpop.f32.mrf.mxu0  ;;  %v6686_v57 = vpop.f32.mrf.mxu1 }
 0x26a   : > { %v3887_v63 = vadd.f32 %v6686_v57, %v8899_v58 }
 0x26b   : > { %v9022_v16 = vpop.f32.mrf.mxu0  ;;  %v3743_v31 = vpop.f32.mrf.mxu1 }
 0x26c   : > { %v9028_v56 = vadd.f32 %v3743_v31, %v8903_v18 }
 0x26d   : > { %v9025_v62 = vpop.f32.mrf.mxu0  ;;  %v6689_v33 = vpop.f32.mrf.mxu1 }
 0x26e   : > { %v3889_v36 = vadd.f32 %v6689_v33, %v8907_v39 }
 0x26f   : > { %v6766_v55 = vpop.f32.mrf.mxu0  ;;  %v3753_v17 = vpop.f32.mrf.mxu1 }
 0x270   : > { %v9031_v43 = vadd.f32 %v6766_v55, %v3887_v63  ;;  %v9036_v4 = vadd.f32 %v3753_v17, %v8911_v23 }
 0x271   : > { %v9033_v53 = vpop.f32.mrf.mxu0  ;;  %v6692_v35 = vpop.f32.mrf.mxu1 }
 0x272   : > { %v3891_v27 = vadd.f32 %v6692_v35, %v8915_v47 }
 0x273   : > { %v6769_v58 = vpop.f32.mrf.mxu0  ;;  %v3763_v18 = vpop.f32.mrf.mxu1 }
 0x274   : > { %v9039_v5 = vadd.f32 %v6769_v58, %v3889_v36  ;;  %v9044_v24 = vadd.f32 %v3763_v18, %v8919_v45 }
 0x275   : > { %v9041_v28 = vpop.f32.mrf.mxu0  ;;  %v6695_v39 = vpop.f32.mrf.mxu1 }
 0x276   : > { %v3893_v41 = vadd.f32 %v6695_v39, %v8923_v42 }
 0x277   : > { %v6772_v32 = vpop.f32.mrf.mxu0  ;;  %v3773_v23 = vpop.f32.mrf.mxu1 }
 0x278   : > { %v9047_v8 = vadd.f32 %v6772_v32, %v3891_v27  ;;  %v9052_v40 = vadd.f32 %v3773_v23, %v8927_v12 }
 0x279   : > { %v9049_v48 = vpop.f32.mrf.mxu0  ;;  %v6698_v47 = vpop.f32.mrf.mxu1 }
 0x27a   : > { %v3895_v59 = vadd.f32 %v6698_v47, %v8931_v29 }
 0x27b   : > { %v6775_v3 = vpop.f32.mrf.mxu0  ;;  %v3783_v45 = vpop.f32.mrf.mxu1 }
 0x27c   : > { %v9055_v13 = vadd.f32 %v6775_v3, %v3893_v41  ;;  %v9060_v52 = vadd.f32 %v3783_v45, %v8935_v46 }
 0x27d   : > { %v9057_v51 = vpop.f32.mrf.mxu0  ;;  %v6701_v42 = vpop.f32.mrf.mxu1 }
 0x27e   : > { %v3897_v50 = vadd.f32 %v6701_v42, %v8939_v26 }
 0x27f   : > { %v6778_v10 = vpop.f32.mrf.mxu0  ;;  %v3793_v12 = vpop.f32.mrf.mxu1 }
 0x280   : > { %v9063_v57 = vadd.f32 %v6778_v10, %v3895_v59  ;;  %v9068_v31 = vadd.f32 %v3793_v12, %v8943_v20 }
 0x281   : > { %v9065_v63 = vpop.f32.mrf.mxu0  ;;  %v6704_v29 = vpop.f32.mrf.mxu1 }
 0x282   : > { %10038 = vst [vmem:[#allocation56_spill] sm:$0xff] %v9068_v31  ;;  %v3899_v55 = vadd.f32 %v6704_v29, %v8947_v54 }
 0x283   : > { %v6781_v33 = vpop.f32.mrf.mxu0  ;;  %v3803_v46 = vpop.f32.mrf.mxu1 }
 0x284   : > { %v9071_v36 = vadd.f32 %v6781_v33, %v3897_v50  ;;  %v9076_v35 = vadd.f32 %v3803_v46, %v8951_v1 }
 0x285   : > { %v9073_v17 = vpop.f32.mrf.mxu0  ;;  %v6707_v26 = vpop.f32.mrf.mxu1 }
 0x286   : > { %10039 = vst [vmem:[#allocation5_spill] sm:$0xff] %v9073_v17  ;;  %10040 = vst [vmem:[#allocation6_spill] sm:$0xff] %v9076_v35  ;;  %v3901_v27 = vadd.f32 %v6707_v26, %v8955_v15 }
 0x287   : > { %v6784_v58 = vpop.f32.mrf.mxu0  ;;  %v3813_v20 = vpop.f32.mrf.mxu1 }
 0x288   : > { %v9079_v18 = vadd.f32 %v6784_v58, %v3899_v55  ;;  %v9084_v32 = vadd.f32 %v3813_v20, %v8959_v25 }
 0x289   : > { %v9081_v39 = vpop.f32.mrf.mxu0  ;;  %v6710_v54 = vpop.f32.mrf.mxu1 }
 0x28a   : > { %10041 = vst [vmem:[#allocation4_spill] sm:$0xff] %v9081_v39  ;;  %10042 = vst [vmem:[#allocation8_spill] sm:$0xff] %v9084_v32  ;;  %v3903_v23 = vadd.f32 %v6710_v54, %v8963_v61 }
 0x28b   : > { %v6787_v41 = vpop.f32.mrf.mxu0  ;;  %v3823_v1 = vpop.f32.mrf.mxu1 }
 0x28c   : > { %v9087_v47 = vadd.f32 %v6787_v41, %v3901_v27  ;;  %v9092_v59 = vadd.f32 %v3823_v1, %v8967_v37 }
 0x28d   : > { %v9089_v3 = vpop.f32.mrf.mxu0  ;;  %v6713_v15 = vpop.f32.mrf.mxu1 }
 0x28e   : > { %10043 = vst [vmem:[#allocation7_spill] sm:$0xff] %v9089_v3  ;;  %10044 = vst [vmem:[#allocation10_spill] sm:$0xff] %v9092_v59  ;;  %v3905_v42 = vadd.f32 %v6713_v15, %v8972_v60 }
 0x28f   : > { %v6790_v45 = vpop.f32.mrf.mxu0  ;;  %v3833_v25 = vpop.f32.mrf.mxu1 }
 0x290   : > { %v9095_v10 = vadd.f32 %v6790_v45, %v3903_v23  ;;  %v9100_v12 = vadd.f32 %v3833_v25, %v8976_v19 }
 0x291   : > { %v9097_v50 = vpop.f32.mrf.mxu0  ;;  %v6716_v61 = vpop.f32.mrf.mxu1 }
 0x292   : > { %10045 = vst [vmem:[#allocation9_spill] sm:$0xff] %v9097_v50  ;;  %10046 = vst [vmem:[#allocation13_spill] sm:$0xff] %v9100_v12  ;;  %v3907_v33 = vadd.f32 %v6716_v61, %v8980_v0 }
 0x293   : > { %v6793_v29 = vpop.f32.mrf.mxu0  ;;  %v3843_v37 = vpop.f32.mrf.mxu1 }
 0x294   : > { %v9103_v55 = vadd.f32 %v6793_v29, %v3905_v42  ;;  %v9108_v26 = vadd.f32 %v3843_v37, %v8984_v49 }
 0x295   : > { %v9105_v46 = vpop.f32.mrf.mxu0  ;;  %v6719_v60 = vpop.f32.mrf.mxu1 }
 0x296   : > { %10047 = vst [vmem:[#allocation12_spill] sm:$0xff] %v9105_v46  ;;  %10048 = vst [vmem:[#allocation16_spill] sm:$0xff] %v9108_v26  ;;  %v3909_v27 = vadd.f32 %v6719_v60, %v8988_v9 }
 0x297   : > { %v6796_v58 = vpop.f32.mrf.mxu0  ;;  %v3853_v19 = vpop.f32.mrf.mxu1 }
 0x298   : > { %v9111_v20 = vadd.f32 %v6796_v58, %v3907_v33  ;;  %v9116_v41 = vadd.f32 %v3853_v19, %v8992_v2 }
 0x299   : > { %v9113_v54 = vpop.f32.mrf.mxu0  ;;  %v6722_v0 = vpop.f32.mrf.mxu1 }
 0x29a   : > { %10049 = vst [vmem:[#allocation14_spill] sm:$0xff] %v9113_v54  ;;  %10050 = vst [vmem:[#allocation18_spill] sm:$0xff] %v9116_v41  ;;  %v3911_v1 = vadd.f32 %v6722_v0, %v8997_v34  ;;  %v10057_v54 = vld [vmem:[#allocation3_spill] sm:$0xff] }
 0x29b   : > { %v6799_v23 = vpop.f32.mrf.mxu0  ;;  %v3863_v49 = vpop.f32.mrf.mxu1  ;;  %v1142_v26 = vrot.slane %v10057_v54, 4 }
 0x29c   : > { %v9119_v15 = vadd.f32 %v6799_v23, %v3909_v27  ;;  %v9124_v42 = vadd.f32 %v3863_v49, %v9000_v7 }
 0x29d   : > { %v9121_v45 = vpop.f32.mrf.mxu0  ;;  %v6725_v9 = vpop.f32.mrf.mxu1  ;;  %v1143_v59 = vadd.f32 %v1142_v26, %v10057_v54 }
 0x29e   : > { %10051 = vst [vmem:[#allocation17_spill] sm:$0xff] %v9121_v45  ;;  %10052 = vst [vmem:[#allocation21_spill] sm:$0xff] %v9124_v42  ;;  %v3913_v61 = vadd.f32 %v6725_v9, %v9002_v30 }
 0x29f   : > { %v6802_v25 = vpop.f32.mrf.mxu0  ;;  %v3873_v2 = vpop.f32.mrf.mxu1  ;;  %v1144_v32 = vrot.slane %v1143_v59, 2 }
 0x2a0   : > { %v9127_v29 = vadd.f32 %v6802_v25, %v3911_v1  ;;  %v9132_v37 = vadd.f32 %v3873_v2, %v9007_v22 }
 0x2a1   : > { %v9129_v33 = vpop.f32.mrf.mxu0  ;;  %v9134_v60 = vpop.f32.mrf.mxu1  ;;  %v1145_v26 = vadd.f32 %v1144_v32, %v1143_v59 }
 0x2a2   : > { %10053 = vst [vmem:[#allocation20_spill] sm:$0xff] %v9129_v33  ;;  %10054 = vst [vmem:[#allocation26_spill] sm:$0xff] %v9132_v37  ;;  %v10056_v37 = vld [vmem:[#allocation2_spill] sm:$0xff] }
 0x2a3   : > { %v6805_v34 = vpop.f32.mrf.mxu0  ;;  %v9140_v7 = vpop.f32.mrf.mxu1  ;;  %v720_v33 = vrot.slane %v10056_v37, 4 }
 0x2a4   : > { %v9136_v58 = vadd.f32 %v6805_v34, %v3913_v61 }
 0x2a5   : > { %v9138_v27 = vpop.f32.mrf.mxu0  ;;  %v9142_v19 = vpop.f32.mrf.mxu1  ;;  %v721_v41 = vadd.f32 %v720_v33, %v10056_v37 }
 0x2a6   : > { %10055 = vst [vmem:[#allocation24_spill] sm:$0xff] %v9138_v27 }
 0x2a7   : > { %v9144_v30 = vpop.f32.mrf.mxu0  ;;  %v9146_v0 = vpop.f32.mrf.mxu1  ;;  %v722_v50 = vrot.slane %v721_v41, 2 }
 0x2a9   : > { %v9148_v23 = vpop.f32.mrf.mxu0  ;;  %v6846_v1 = vpop.f32.mrf.mxu1  ;;  %v723_v37 = vadd.f32 %v722_v50, %v721_v41  ;;  %v1146_v41 = vrot.slane %v1145_v26, 1 }
 0x2aa   : > { %v9153_v49 = vadd.f32 %v6846_v1, %v9031_v43 }
 0x2ab   : > { %v9150_v22 = vpop.f32.mrf.mxu0  ;;  %v9155_v9 = vpop.f32.mrf.mxu1  ;;  %v724_v17 = vrot.slane %v723_v37, 1  ;;  %v1147_v59 = vadd.f32 %v1146_v41, %v1145_v26 }
 0x2ad   : > { %v9157_v25 = vpop.f32.mrf.mxu0  ;;  %v6849_v61 = vpop.f32.mrf.mxu1  ;;  %v9205_v50 = vadd.f32 %v724_v17, %v723_v37 }
 0x2ae   : > { %v9160_v2 = vadd.f32 %v6849_v61, %v9039_v5 }
 0x2af   : > { %v9162_v34 = vpop.f32.mrf.mxu0  ;;  %v9164_v27 = vpop.f32.mrf.mxu1  ;;  %v1148_v32 = vmul.f32 %v9205_v50, %v9205_v50 }
 0x2b1   : > { %v6852_v42 = vpop.f32.mrf.mxu1  ;;  %v9167_v45 = vpop.f32.mrf.mxu0  ;;  %v1149_v37 = vsub.f32 %v1147_v59, %v1148_v32 }
 0x2b2   : > { %v9170_v43 = vadd.f32 %v6852_v42, %v9047_v8 }
 0x2b3   : > { %v9172_v1 = vpop.f32.mrf.mxu1  ;;  %v9176_v61 = vpop.f32.mrf.mxu0 }
 0x2b5   : > { %v6855_v5 = vpop.f32.mrf.mxu1  ;;  %v9184_v8 = vpop.f32.mrf.mxu0 }
 0x2b6   : > { %v9179_v46 = vadd.f32 %v6855_v5, %v9055_v13 }
 0x2b7   : > { %v9181_v12 = vpop.f32.mrf.mxu1  ;;  %v9191_v35 = vpop.f32.mrf.mxu0 }
 0x2b9   : > { %v6858_v3 = vpop.f32.mrf.mxu1  ;;  %v9198_v31 = vpop.f32.mrf.mxu0 }
 0x2ba   : > { %v9187_v42 = vadd.f32 %v6858_v3, %v9063_v57 }
 0x2bb   : > { %v9189_v33 = vpop.f32.mrf.mxu1 }
 0x2bc   : > { %10058 = vst [vmem:[#allocation31_spill] sm:$0xff] %v9187_v42  ;;  %10059 = vst [vmem:[#allocation30_spill] sm:$0xff] %v9189_v33  ;;  %v9207_v33 = vpop.f32.mrf.mxu0 }
 0x2bd   : > { %v6861_v39 = vpop.f32.mrf.mxu1 }
 0x2be   : > { %v9194_v13 = vadd.f32 %v6861_v39, %v9071_v36 }
 0x2bf   : > { %v9196_v5 = vpop.f32.mrf.mxu1 }
 0x2c0   : > { %10060 = vst [vmem:[#allocation37_spill] sm:$0xff] %v9194_v13 }
 0x2c1   : > { %v6864_v54 = vpop.f32.mrf.mxu1 }
 0x2c2   : > { %v9201_v57 = vadd.f32 %v6864_v54, %v9079_v18  ;;  %v9216_v18 = vpop.f32.mrf.mxu0 }
 0x2c3   : > { %v9203_v3 = vpop.f32.mrf.mxu1 }
 0x2c4   : > { %10061 = vst [vmem:[#allocation33_spill] sm:$0xff] %v9201_v57  ;;  %10062 = vst [vmem:[#allocation42_spill] sm:$0xff] %v9203_v3  ;;  %v9223_v3 = vpop.f32.mrf.mxu0 }
 0x2c5   : > { %v6867_v42 = vpop.f32.mrf.mxu1 }
 0x2c6   : > { %v9210_v36 = vadd.f32 %v6867_v42, %v9087_v47  ;;  %v9230_v26 = vpop.f32.mrf.mxu0 }
 0x2c7   : > { %v9212_v39 = vpop.f32.mrf.mxu1 }
 0x2c8   : > { %10063 = vst [vmem:[#allocation39_spill] sm:$0xff] %v9210_v36  ;;  %10064 = vst [vmem:[#allocation46_spill] sm:$0xff] %v9212_v39  ;;  %v1182_v36 = vadd.f32 1e-05, %v1149_v37  ;;  %v9237_v32 = vpop.f32.mrf.mxu0 }
 0x2c9   : > { %v6870_v13 = vpop.f32.mrf.mxu1 }
 0x2ca   : > { %v9219_v54 = vadd.f32 %v6870_v13, %v9095_v10  ;;  %7055 = vrsqrt.f32 %v1182_v36 }
 0x2cb   : > { %v9221_v17 = vpop.f32.mrf.mxu1 }
 0x2cd   : > { %v6873_v57 = vpop.f32.mrf.mxu1 }
 0x2ce   : > { %v9226_v47 = vadd.f32 %v6873_v57, %v9103_v55 }
 0x2cf   : > { %v9228_v42 = vpop.f32.mrf.mxu1 }
 0x2d0   : > { %10065 = vst [vmem:[#allocation53_spill] sm:$0xff] %v9226_v47  ;;  %10066 = vst [vmem:[#allocation25_spill] sm:$0xff] %v9228_v42  ;;  %v9244_v47 = vpop.f32.mrf.mxu0 }
 0x2d1   : > { %v6876_v39 = vpop.f32.mrf.mxu1 }
 0x2d2   : > { %v9233_v41 = vadd.f32 %v6876_v39, %v9111_v20  ;;  %v4157_v20 = vadd.f32 %v9012_v14, %v9005_v21  ;;  %v4156_v39 = vadd.f32 %v9017_v44, %v9010_v38  ;;  %v9270_v38 = vld [vmem:[%s9717_s5] ss:$0 sm:$0xff] }
 0x2d3   : > { %v9235_v10 = vpop.f32.mrf.mxu1 }
 0x2d5   : > { %v6879_v13 = vpop.f32.mrf.mxu1 }
 0x2d6   : > { %v9240_v59 = vadd.f32 %v6879_v13, %v9119_v15  ;;  %v4431_v15 = vadd.f32 %v9134_v60, %v4157_v20  ;;  %v9256_v13 = vpop.f32.mrf.mxu0  ;;  %v4158_v60 = vadd.f32 %v9025_v62, %v9020_v6  ;;  %v7057_v20 = vld [vmem:[%s7164_s14 + $0x8] sm:$0xff]  ;;  %v4160_v6 = vadd.f32 %v9033_v53, %v9028_v56 }
 0x2d7   : > { %v9242_v55 = vpop.f32.mrf.mxu1  ;;  %v9272_v44 = vpop.eup %7055  ;;  %v4709_v53 = vadd.f32 %v9162_v34, %v9153_v49  ;;  %v7060_v34 = vld [vmem:[%s7164_s14 + $0x10] sm:$0xff] }
 0x2d8   : > { %10067 = vst [vmem:[#allocation27_spill] sm:$0xff] %v9240_v59  ;;  %10068 = vst [vmem:[#allocation28_spill] sm:$0xff] %v9242_v55  ;;  %v4705_v21 = vadd.f32 %v9144_v30, %v4431_v15  ;;  %v4434_v56 = vadd.f32 %v9155_v9, %v4160_v6 }
 0x2d9   : > { %v6882_v57 = vpop.f32.mrf.mxu1 }
 0x2da   : > { %v9247_v37 = vadd.f32 %v6882_v57, %v9127_v29  ;;  %v4159_v29 = vadd.f32 %v9022_v16, %v9015_v11  ;;  %v4430_v57 = vadd.f32 %v9140_v7, %v4156_v39  ;;  %v9278_v16 = vpop.f32.mrf.mxu0  ;;  %v4432_v39 = vadd.f32 %v9146_v0, %v4158_v60 }
 0x2db   : > { %v9249_v42 = vpop.f32.mrf.mxu1  ;;  %v4708_v9 = vadd.f32 %v9167_v45, %v4434_v56 }
 0x2dc   : > { %v4704_v11 = vadd.f32 %v9148_v23, %v4430_v57  ;;  %v7058_v23 = vld [vmem:[%s7164_s14] sm:$0xff]  ;;  %v4706_v57 = vadd.f32 %v9157_v25, %v4432_v39  ;;  %v1152_v39 = vsub.f32 %v7060_v34, %v9205_v50 }
 0x2dd   : > { %v6885_v36 = vpop.f32.mrf.mxu1 }
 0x2de   : > { %v9259_v59 = vadd.f32 %v6885_v36, %v9136_v58  ;;  %v4433_v58 = vadd.f32 %v9142_v19, %v4159_v29  ;;  %v1151_v36 = vsub.f32 %v7057_v20, %v9205_v50  ;;  %v1150_v29 = vsub.f32 %v7058_v23, %v9205_v50 }
 0x2df   : > { %v9261_v55 = vpop.f32.mrf.mxu1 }
 0x2e0   : > { %10069 = vst [vmem:[#allocation32_spill] sm:$0xff] %v9259_v59  ;;  %10070 = vst [vmem:[#allocation34_spill] sm:$0xff] %v9261_v55  ;;  %v4707_v15 = vadd.f32 %v9150_v22, %v4433_v58  ;;  %v1185_v19 = vmul.f32 %v9272_v44, %v1151_v36  ;;  %v1184_v58 = vmul.f32 %v9272_v44, %v1150_v29 }
 0x2e1   : > { %v7000_v14 = vpop.f32.mrf.mxu1  ;;  %v1186_v29 = vmul.f32 %v9272_v44, %v1152_v39 }
 0x2e2   : > { %v4979_v7 = vadd.f32 %v7000_v14, %v4705_v21  ;;  %v9291_v21 = vpop.f32.mrf.mxu0 }
 0x2e3   : > { %v4819_v30 = vpop.f32.mrf.mxu1 }
 0x2e4   : > { %v4978_v59 = vadd.f32 %v4819_v30, %v4704_v11  ;;  %v5018_v55 = vadd.f32 %v9270_v38, %v4979_v7  ;;  %v7059_v11 = vld [vmem:[%s7164_s14 + $0x18] sm:$0xff] }
 0x2e5   : > { %v7003_v62 = vpop.f32.mrf.mxu1  ;;  %v1153_v25 = vsub.f32 %v7059_v11, %v9205_v50 }
 0x2e6   : > { %v5017_v0 = vadd.f32 %v9270_v38, %v4978_v59  ;;  %v4981_v22 = vadd.f32 %v7003_v62, %v4707_v15  ;;  %5147 = vrot.lane.b32.xlu0 %v5018_v55, %s7097_s21  ;;  %v5050_v14 = vadd.f32 1.0, %v5018_v55  ;;  %v4162_v55 = vadd.f32 %v9041_v28, %v9036_v4  ;;  %v9310_v15 = vpop.f32.mrf.mxu0 }
 0x2e7   : > { %v4829_v60 = vpop.f32.mrf.mxu1  ;;  %v1187_v49 = vmul.f32 %v9272_v44, %v1153_v25 }
 0x2e8   : > { %v4980_v7 = vadd.f32 %v4829_v60, %v4706_v57  ;;  %v5020_v59 = vadd.f32 %v9270_v38, %v4981_v22  ;;  %v9302_v30 = vmul.f32 %v5050_v14, %v1185_v19  ;;  %v5049_v20 = vadd.f32 1.0, %v5017_v0  ;;  %v7061_v57 = vld [vmem:[%s7164_s14 + $0x28] sm:$0xff]  ;;  %v9332_v25 = vpop.f32.mrf.mxu0 }
 0x2e9   : > { %v7006_v36 = vpop.f32.mrf.mxu1  ;;  %v4436_v45 = vadd.f32 %v9164_v27, %v4162_v55  ;;  %v4711_v19 = vadd.f32 %v9176_v61, %v9160_v2  ;;  %v1155_v22 = vsub.f32 %v7061_v57, %v9205_v50  ;;  %v4164_v60 = vadd.f32 %v9049_v48, %v9044_v24  ;;  %v7062_v2 = vld [vmem:[%s7164_s14 + $0x20] sm:$0xff] }
 0x2ea   : > { %v5019_v6 = vadd.f32 %v9270_v38, %v4980_v7  ;;  %v4983_v62 = vadd.f32 %v7006_v36, %v4709_v53  ;;  %5145 = vrot.lane.b32.xlu0 %v5017_v0, %s7097_s21  ;;  %5151 = vrot.lane.b32.xlu1 %v5020_v59, %s7097_s21  ;;  %v5052_v4 = vadd.f32 1.0, %v5020_v59  ;;  %v9315_v28 = vmul.f32 %v5049_v20, %v1184_v58  ;;  %v7063_v36 = vld [vmem:[%s7164_s14 + $0x38] sm:$0xff] }
 0x2eb   : > { %v4839_v23 = vpop.f32.mrf.mxu1  ;;  %v4710_v27 = vadd.f32 %v9184_v8, %v4436_v45  ;;  %v1154_v61 = vsub.f32 %v7062_v2, %v9205_v50  ;;  %v1189_v11 = vmul.f32 %v9272_v44, %v1155_v22  ;;  %v4438_v48 = vadd.f32 %v9172_v1, %v4164_v60  ;;  %v7065_v60 = vld [vmem:[%s7164_s14 + $0x48] sm:$0xff] }
 0x2ec   : > { %v5022_v14 = vadd.f32 %v9270_v38, %v4983_v62  ;;  %v4982_v0 = vadd.f32 %v4839_v23, %v4708_v9  ;;  %v9324_v56 = vmul.f32 %v5052_v4, %v1187_v49  ;;  %v5051_v53 = vadd.f32 1.0, %v5019_v6  ;;  %v7064_v4 = vld [vmem:[%s7164_s14 + $0x30] sm:$0xff]  ;;  %v9354_v23 = vpop.f32.mrf.mxu0 }
 0x2ed   : > { %v7009_v58 = vpop.f32.mrf.mxu1  ;;  %v4713_v8 = vadd.f32 %v9191_v35, %v9170_v43  ;;  %v1188_v9 = vmul.f32 %v9272_v44, %v1154_v61  ;;  %v1157_v49 = vsub.f32 %v7063_v36, %v9205_v50  ;;  %v4166_v1 = vadd.f32 %v9057_v51, %v9052_v40 }
 0x2ee   : > { %v5021_v7 = vadd.f32 %v9270_v38, %v4982_v0  ;;  %v4985_v59 = vadd.f32 %v7009_v58, %v4711_v19  ;;  %5149 = vrot.lane.b32.xlu1 %v5019_v6, %s7097_s21  ;;  %v9336_v20 = vmul.f32 %v5051_v53, %v1186_v29  ;;  %v5054_v24 = vadd.f32 1.0, %v5022_v14 }
 0x2ef   : > { %v4849_v55 = vpop.f32.mrf.mxu1  ;;  %v4712_v35 = vadd.f32 %v9198_v31, %v4438_v48  ;;  %v1156_v45 = vsub.f32 %v7064_v4, %v9205_v50  ;;  %v1191_v19 = vmul.f32 %v9272_v44, %v1157_v49  ;;  %v4440_v51 = vadd.f32 %v9181_v12, %v4166_v1 }
 0x2f0   : > { %v5024_v34 = vadd.f32 %v9270_v38, %v4985_v59  ;;  %v4984_v39 = vadd.f32 %v4849_v55, %v4710_v27  ;;  %5153 = vrot.lane.b32.xlu0 %v5021_v7, %s7097_s21  ;;  %v5053_v6 = vadd.f32 1.0, %v5021_v7  ;;  %v9346_v62 = vmul.f32 %v5054_v24, %v1189_v11  ;;  %v7066_v11 = vld [vmem:[%s7164_s14 + $0x40] sm:$0xff]  ;;  %v9376_v24 = vpop.f32.mrf.mxu0 }
 0x2f1   : > { %v7012_v43 = vpop.f32.mrf.mxu1  ;;  %v4715_v31 = vadd.f32 %v9207_v33, %v9179_v46  ;;  %v1190_v53 = vmul.f32 %v9272_v44, %v1156_v45  ;;  %v1159_v27 = vsub.f32 %v7065_v60, %v9205_v50  ;;  %v4168_v12 = vadd.f32 %v9065_v63, %v9060_v52  ;;  %v10071_v63 = vld [vmem:[#allocation30_spill] sm:$0xff]  ;;  %v10073_v45 = vld [vmem:[#allocation56_spill] sm:$0xff] }
 0x2f2   : > { %v5023_v29 = vadd.f32 %v9270_v38, %v4984_v39  ;;  %v4987_v57 = vadd.f32 %v7012_v43, %v4713_v8  ;;  %5155 = vrot.lane.b32.xlu1 %v5022_v14, %s7097_s21  ;;  %v9358_v22 = vmul.f32 %v5053_v6, %v1188_v9  ;;  %v5056_v40 = vadd.f32 1.0, %v5024_v34  ;;  %v7067_v6 = vld [vmem:[%s7164_s14 + $0x58] sm:$0xff] }
 0x2f3   : > { %v4859_v0 = vpop.f32.mrf.mxu1  ;;  %v4714_v46 = vadd.f32 %v9216_v18, %v4440_v51  ;;  %v1158_v7 = vsub.f32 %v7066_v11, %v9205_v50  ;;  %v1193_v59 = vmul.f32 %v9272_v44, %v1159_v27  ;;  %v4442_v9 = vadd.f32 %v10071_v63, %v4168_v12  ;;  %v10072_v18 = vld [vmem:[#allocation31_spill] sm:$0xff]  ;;  %v10077_v63 = vld [vmem:[#allocation4_spill] sm:$0xff] }
 0x2f4   : > { %v5026_v58 = vadd.f32 %v9270_v38, %v4987_v57  ;;  %v4986_v2 = vadd.f32 %v4859_v0, %v4712_v35  ;;  %5157 = vrot.lane.b32.xlu0 %v5023_v29, %s7097_s21  ;;  %v5055_v14 = vadd.f32 1.0, %v5023_v29  ;;  %v9368_v61 = vmul.f32 %v5056_v40, %v1191_v19  ;;  %v10074_v19 = vld [vmem:[#allocation5_spill] sm:$0xff]  ;;  %v7068_v40 = vld [vmem:[%s7164_s14 + $0x50] sm:$0xff]  ;;  %v9398_v0 = vpop.f32.mrf.mxu0  ;;  %v7069_v11 = vld [vmem:[%s7164_s14 + $0x68] sm:$0xff] }
 0x2f5   : > { %v7015_v33 = vpop.f32.mrf.mxu1  ;;  %v4717_v36 = vadd.f32 %v9223_v3, %v10072_v18  ;;  %v1192_v39 = vmul.f32 %v9272_v44, %v1158_v7  ;;  %v1161_v1 = vsub.f32 %v7067_v6, %v9205_v50  ;;  %v4170_v29 = vadd.f32 %v10074_v19, %v10073_v45  ;;  %v7070_v18 = vld [vmem:[%s7164_s14 + $0x60] sm:$0xff] }
 0x2f6   : > { %v5025_v48 = vadd.f32 %v9270_v38, %v4986_v2  ;;  %v4989_v8 = vadd.f32 %v7015_v33, %v4715_v31  ;;  %5159 = vrot.lane.b32.xlu1 %v5024_v34, %s7097_s21  ;;  %v9380_v55 = vmul.f32 %v5055_v14, %v1190_v53  ;;  %v5058_v52 = vadd.f32 1.0, %v5026_v58  ;;  %v10078_v45 = vld [vmem:[#allocation42_spill] sm:$0xff] }
 0x2f7   : > { %v4869_v49 = vpop.f32.mrf.mxu1  ;;  %v4716_v3 = vadd.f32 %v9230_v26, %v4442_v9  ;;  %v1160_v51 = vsub.f32 %v7068_v40, %v9205_v50  ;;  %v1195_v31 = vmul.f32 %v9272_v44, %v1161_v1  ;;  %v4444_v14 = vadd.f32 %v9196_v5, %v4170_v29  ;;  %v10075_v26 = vld [vmem:[#allocation37_spill] sm:$0xff] }
 0x2f8   : > { %v5028_v35 = vadd.f32 %v9270_v38, %v4989_v8  ;;  %v4988_v43 = vadd.f32 %v4869_v49, %v4714_v46  ;;  %5161 = vrot.lane.b32.xlu0 %v5025_v48, %s7097_s21  ;;  %v5057_v34 = vadd.f32 1.0, %v5025_v48  ;;  %v9390_v4 = vmul.f32 %v5058_v52, %v1193_v59  ;;  %v10076_v52 = vld [vmem:[#allocation6_spill] sm:$0xff]  ;;  %v7071_v40 = vld [vmem:[%s7164_s14 + $0x78] sm:$0xff] }
 0x2f9   : > { %v7018_v57 = vpop.f32.mrf.mxu1  ;;  %v4719_v12 = vadd.f32 %v9237_v32, %v10075_v26  ;;  %v1194_v33 = vmul.f32 %v9272_v44, %v1160_v51  ;;  %v1163_v7 = vsub.f32 %v7069_v11, %v9205_v50  ;;  %v4172_v5 = vadd.f32 %v10077_v63, %v10076_v52 }
 0x2fa   : > { %v5027_v53 = vadd.f32 %v9270_v38, %v4988_v43  ;;  %v4991_v60 = vadd.f32 %v7018_v57, %v4717_v36  ;;  %5163 = vrot.lane.b32.xlu1 %v5026_v58, %s7097_s21  ;;  %v9402_v27 = vmul.f32 %v5057_v34, %v1192_v39  ;;  %v5060_v2 = vadd.f32 1.0, %v5028_v35  ;;  %v9420_v39 = vpop.f32.mrf.mxu0 }
 0x2fb   : > { %v4879_v46 = vpop.f32.mrf.mxu1  ;;  %v4718_v32 = vadd.f32 %v9244_v47, %v4444_v14  ;;  %v1162_v36 = vsub.f32 %v7070_v18, %v9205_v50  ;;  %v1197_v49 = vmul.f32 %v9272_v44, %v1163_v7  ;;  %v4446_v19 = vadd.f32 %v10078_v45, %v4172_v5  ;;  %v10079_v47 = vld [vmem:[#allocation33_spill] sm:$0xff]  ;;  %v10081_v14 = vld [vmem:[#allocation7_spill] sm:$0xff]  ;;  %v10082_v5 = vld [vmem:[#allocation46_spill] sm:$0xff] }
 0x2fc   : > { %v5030_v59 = vadd.f32 %v9270_v38, %v4991_v60  ;;  %v4990_v48 = vadd.f32 %v4879_v46, %v4716_v3  ;;  %5165 = vrot.lane.b32.xlu0 %v5027_v53, %s7097_s21  ;;  %v5059_v58 = vadd.f32 1.0, %v5027_v53  ;;  %v9412_v8 = vmul.f32 %v5060_v2, %v1195_v31  ;;  %v10080_v2 = vld [vmem:[#allocation8_spill] sm:$0xff]  ;;  %v9442_v7 = vpop.f32.mrf.mxu0 }
 0x2fd   : > { %v7021_v9 = vpop.f32.mrf.mxu1  ;;  %v4721_v29 = vadd.f32 %v9256_v13, %v10079_v47  ;;  %v1196_v57 = vmul.f32 %v9272_v44, %v1162_v36  ;;  %v1165_v51 = vsub.f32 %v7071_v40, %v9205_v50  ;;  %v4174_v26 = vadd.f32 %v10081_v14, %v10080_v2  ;;  %v7072_v46 = vld [vmem:[%s7164_s14 + $0x70] sm:$0xff]  ;;  %v10085_v47 = vld [vmem:[#allocation9_spill] sm:$0xff] }
 0x2fe   : > { %v5029_v6 = vadd.f32 %v9270_v38, %v4990_v48  ;;  %v4993_v1 = vadd.f32 %v7021_v9, %v4719_v12  ;;  %5167 = vrot.lane.b32.xlu1 %v5028_v35, %s7097_s21  ;;  %v9424_v43 = vmul.f32 %v5059_v58, %v1194_v33  ;;  %v5062_v34 = vadd.f32 1.0, %v5030_v59 }
 0x2ff   : > { %v4889_v3 = vpop.f32.mrf.mxu1  ;;  %v4720_v13 = vadd.f32 %v9278_v16, %v4446_v19  ;;  %v1164_v33 = vsub.f32 %v7072_v46, %v9205_v50  ;;  %v1199_v11 = vmul.f32 %v9272_v44, %v1165_v51  ;;  %v10083_v16 = vld [vmem:[#allocation39_spill] sm:$0xff]  ;;  %v10084_v19 = vld [vmem:[#allocation10_spill] sm:$0xff] }
 0x300   : > { %v5032_v31 = vadd.f32 %v9270_v38, %v4993_v1  ;;  %v4992_v53 = vadd.f32 %v4889_v3, %v4718_v32  ;;  %5169 = vrot.lane.b32.xlu0 %v5029_v6, %s7097_s21  ;;  %v5061_v35 = vadd.f32 1.0, %v5029_v6  ;;  %v9434_v60 = vmul.f32 %v5062_v34, %v1197_v49  ;;  %v7073_v49 = vld [vmem:[%s7164_s14 + $0x88] sm:$0xff] }
 0x301   : > { %v7024_v12 = vpop.f32.mrf.mxu1  ;;  %v4448_v32 = vadd.f32 %v10082_v5, %v4174_v26  ;;  %v4723_v9 = vadd.f32 %v9291_v21, %v10083_v16  ;;  %v1198_v36 = vmul.f32 %v9272_v44, %v1164_v33  ;;  %v1167_v6 = vsub.f32 %v7073_v49, %v9205_v50  ;;  %v7075_v33 = vld [vmem:[%s7164_s14 + $0x98] sm:$0xff]  ;;  %v7076_v16 = vld [vmem:[%s7164_s14 + $0x90] sm:$0xff] }
 0x302   : > { %v5031_v48 = vadd.f32 %v9270_v38, %v4992_v53  ;;  %v4995_v58 = vadd.f32 %v7024_v12, %v4721_v29  ;;  %5171 = vrot.lane.b32.xlu1 %v5030_v59, %s7097_s21  ;;  %v9446_v52 = vmul.f32 %v5061_v35, %v1196_v57  ;;  %v5064_v63 = vadd.f32 1.0, %v5032_v31  ;;  %v7074_v57 = vld [vmem:[%s7164_s14 + $0x80] sm:$0xff]  ;;  %v9464_v53 = vpop.f32.mrf.mxu0  ;;  %v10086_v5 = vld [vmem:[#allocation13_spill] sm:$0xff] }
 0x303   : > { %v4899_v18 = vpop.f32.mrf.mxu1  ;;  %v4176_v29 = vadd.f32 %v10085_v47, %v10084_v19  ;;  %v4722_v21 = vadd.f32 %v9310_v15, %v4448_v32  ;;  %v1166_v40 = vsub.f32 %v7074_v57, %v9205_v50  ;;  %v1201_v51 = vmul.f32 %v9272_v44, %v1167_v6  ;;  %v10087_v32 = vld [vmem:[#allocation12_spill] sm:$0xff]  ;;  %v10088_v19 = vld [vmem:[#allocation25_spill] sm:$0xff]  ;;  %v7077_v57 = vld [vmem:[%s7164_s14 + $0xa8] sm:$0xff] }
 0x304   : > { %v5034_v1 = vadd.f32 %v9270_v38, %v4995_v58  ;;  %v4994_v34 = vadd.f32 %v4899_v18, %v4720_v13  ;;  %5173 = vrot.lane.b32.xlu0 %v5031_v48, %s7097_s21  ;;  %v5063_v59 = vadd.f32 1.0, %v5031_v48  ;;  %v9456_v45 = vmul.f32 %v5064_v63, %v1199_v11 }
 0x305   : > { %v7027_v3 = vpop.f32.mrf.mxu1  ;;  %v4450_v13 = vadd.f32 %v9221_v17, %v4176_v29  ;;  %v4725_v15 = vadd.f32 %v9332_v25, %v9219_v54  ;;  %v1200_v46 = vmul.f32 %v9272_v44, %v1166_v40  ;;  %v1169_v11 = vsub.f32 %v7075_v33, %v9205_v50 }
 0x306   : > { %v5033_v35 = vadd.f32 %v9270_v38, %v4994_v34  ;;  %v4997_v2 = vadd.f32 %v7027_v3, %v4723_v9  ;;  %5175 = vrot.lane.b32.xlu1 %v5032_v31, %s7097_s21  ;;  %v9468_v14 = vmul.f32 %v5063_v59, %v1198_v36  ;;  %v5066_v26 = vadd.f32 1.0, %v5034_v1  ;;  %v9486_v36 = vpop.f32.mrf.mxu0 }
 0x307   : > { %v4909_v12 = vpop.f32.mrf.mxu1  ;;  %v4178_v17 = vadd.f32 %v10087_v32, %v10086_v5  ;;  %v4724_v54 = vadd.f32 %v9354_v23, %v4450_v13  ;;  %v1168_v9 = vsub.f32 %v7076_v16, %v9205_v50  ;;  %v1203_v18 = vmul.f32 %v9272_v44, %v1169_v11  ;;  %v10089_v23 = vld [vmem:[#allocation53_spill] sm:$0xff]  ;;  %v10091_v13 = vld [vmem:[#allocation14_spill] sm:$0xff] }
 0x308   : > { %v5036_v48 = vadd.f32 %v9270_v38, %v4997_v2  ;;  %v4996_v58 = vadd.f32 %v4909_v12, %v4722_v21  ;;  %5177 = vrot.lane.b32.xlu0 %v5033_v35, %s7097_s21  ;;  %v5065_v31 = vadd.f32 1.0, %v5033_v35  ;;  %v9478_v63 = vmul.f32 %v5066_v26, %v1201_v51  ;;  %v10090_v26 = vld [vmem:[#allocation16_spill] sm:$0xff] }
 0x309   : > { %v7030_v25 = vpop.f32.mrf.mxu1  ;;  %v4452_v47 = vadd.f32 %v10088_v19, %v4178_v17  ;;  %v4727_v29 = vadd.f32 %v9376_v24, %v10089_v23  ;;  %v1202_v3 = vmul.f32 %v9272_v44, %v1168_v9  ;;  %v1171_v40 = vsub.f32 %v7077_v57, %v9205_v50  ;;  %v7079_v9 = vld [vmem:[%s7164_s14 + $0xb8] sm:$0xff]  ;;  %v10092_v19 = vld [vmem:[#allocation18_spill] sm:$0xff]  ;;  %v7080_v23 = vld [vmem:[%s7164_s14 + $0xb0] sm:$0xff] }
 0x30a   : > { %v5035_v49 = vadd.f32 %v9270_v38, %v4996_v58  ;;  %v4999_v6 = vadd.f32 %v7030_v25, %v4725_v15  ;;  %5179 = vrot.lane.b32.xlu1 %v5034_v1, %s7097_s21  ;;  %v9490_v34 = vmul.f32 %v5065_v31, %v1200_v46  ;;  %v5068_v59 = vadd.f32 1.0, %v5036_v48  ;;  %v7078_v46 = vld [vmem:[%s7164_s14 + $0xa0] sm:$0xff]  ;;  %v6962_v58 = vpop.f32.mrf.mxu0 }
 0x30b   : > { %v4919_v21 = vpop.f32.mrf.mxu1  ;;  %v4180_v15 = vadd.f32 %v10091_v13, %v10090_v26  ;;  %v4726_v24 = vadd.f32 %v9398_v0, %v4452_v47  ;;  %v1170_v33 = vsub.f32 %v7078_v46, %v9205_v50  ;;  %v1205_v11 = vmul.f32 %v9272_v44, %v1171_v40  ;;  %v10093_v47 = vld [vmem:[#allocation17_spill] sm:$0xff]  ;;  %v10094_v26 = vld [vmem:[#allocation28_spill] sm:$0xff]  ;;  %v7081_v46 = vld [vmem:[%s7164_s14 + $0xc8] sm:$0xff] }
 0x30c   : > { %v5038_v51 = vadd.f32 %v9270_v38, %v4999_v6  ;;  %v4998_v35 = vadd.f32 %v4919_v21, %v4724_v54  ;;  %5181 = vrot.lane.b32.xlu0 %v5035_v49, %s7097_s21  ;;  %v5067_v1 = vadd.f32 1.0, %v5035_v49  ;;  %v9500_v2 = vmul.f32 %v5068_v59, %v1203_v18 }
 0x30d   : > { %v7033_v12 = vpop.f32.mrf.mxu1  ;;  %v4454_v54 = vadd.f32 %v9235_v10, %v4180_v15  ;;  %v4729_v0 = vadd.f32 %v9420_v39, %v9233_v41  ;;  %v1204_v16 = vmul.f32 %v9272_v44, %v1170_v33  ;;  %v1173_v18 = vsub.f32 %v7079_v9, %v9205_v50  ;;  %v10095_v15 = vld [vmem:[#allocation27_spill] sm:$0xff] }
 0x30e   : > { %v5037_v31 = vadd.f32 %v9270_v38, %v4998_v35  ;;  %v5001_v5 = vadd.f32 %v7033_v12, %v4727_v29  ;;  %5183 = vrot.lane.b32.xlu1 %v5036_v48, %s7097_s21  ;;  %v9510_v32 = vmul.f32 %v5067_v1, %v1202_v3  ;;  %v5070_v17 = vadd.f32 1.0, %v5038_v51  ;;  %v4685_v3 = vpop.f32.mrf.mxu0 }
 0x30f   : > { %v4929_v25 = vpop.f32.mrf.mxu1  ;;  %v4182_v10 = vadd.f32 %v10093_v47, %v10092_v19  ;;  %v4728_v41 = vadd.f32 %v9442_v7, %v4454_v54  ;;  %v1172_v29 = vsub.f32 %v7080_v23, %v9205_v50  ;;  %v1207_v21 = vmul.f32 %v9272_v44, %v1173_v18  ;;  %v10097_v54 = vld [vmem:[#allocation20_spill] sm:$0xff] }
 0x310   : > { %v5040_v49 = vadd.f32 %v9270_v38, %v5001_v5  ;;  %v5000_v6 = vadd.f32 %v4929_v25, %v4726_v24  ;;  %5185 = vrot.lane.b32.xlu0 %v5037_v31, %s7097_s21  ;;  %v5069_v48 = vadd.f32 1.0, %v5037_v31  ;;  %v9520_v59 = vmul.f32 %v5070_v17, %v1205_v11  ;;  %v10096_v17 = vld [vmem:[#allocation21_spill] sm:$0xff] }
 0x311   : > { %v7036_v39 = vpop.f32.mrf.mxu1  ;;  %v4456_v13 = vadd.f32 %v10094_v26, %v4182_v10  ;;  %v4731_v7 = vadd.f32 %v9464_v53, %v10095_v15  ;;  %v1206_v12 = vmul.f32 %v9272_v44, %v1172_v29  ;;  %v1175_v33 = vsub.f32 %v7081_v46, %v9205_v50  ;;  %v7083_v29 = vld [vmem:[%s7164_s14 + $0xd8] sm:$0xff]  ;;  %v10098_v26 = vld [vmem:[#allocation26_spill] sm:$0xff] }
 0x312   : > { %v5039_v57 = vadd.f32 %v9270_v38, %v5000_v6  ;;  %v5003_v40 = vadd.f32 %v7036_v39, %v4729_v0  ;;  %5187 = vrot.lane.b32.xlu1 %v5038_v51, %s7097_s21  ;;  %v9530_v35 = vmul.f32 %v5069_v48, %v1204_v16  ;;  %v5072_v1 = vadd.f32 1.0, %v5040_v49  ;;  %v7082_v16 = vld [vmem:[%s7164_s14 + $0xc0] sm:$0xff]  ;;  %v6965_v6 = vpop.f32.mrf.mxu0 }
 0x313   : > { %v4939_v24 = vpop.f32.mrf.mxu1  ;;  %v4184_v0 = vadd.f32 %v10097_v54, %v10096_v17  ;;  %v4730_v53 = vadd.f32 %v9486_v36, %v4456_v13  ;;  %v1174_v9 = vsub.f32 %v7082_v16, %v9205_v50  ;;  %v1209_v18 = vmul.f32 %v9272_v44, %v1175_v33  ;;  %v10099_v13 = vld [vmem:[#allocation24_spill] sm:$0xff]  ;;  %v10100_v17 = vld [vmem:[#allocation34_spill] sm:$0xff]  ;;  %v7085_v16 = vld [vmem:[%s7164_s14 + $0xe8] sm:$0xff] }
 0x314   : > { %v5042_v11 = vadd.f32 %v9270_v38, %v5003_v40  ;;  %v5002_v31 = vadd.f32 %v4939_v24, %v4728_v41  ;;  %5189 = vrot.lane.b32.xlu0 %v5039_v57, %s7097_s21  ;;  %v5071_v51 = vadd.f32 1.0, %v5039_v57  ;;  %v9540_v5 = vmul.f32 %v5072_v1, %v1207_v21 }
 0x315   : > { %v7039_v25 = vpop.f32.mrf.mxu1  ;;  %v4458_v41 = vadd.f32 %v9249_v42, %v4184_v0  ;;  %v4733_v36 = vadd.f32 %v6962_v58, %v9247_v37  ;;  %v1208_v23 = vmul.f32 %v9272_v44, %v1174_v9  ;;  %v1177_v21 = vsub.f32 %v7083_v29, %v9205_v50  ;;  %v7084_v58 = vld [vmem:[%s7164_s14 + $0xd0] sm:$0xff] }
 0x316   : > { %v5041_v48 = vadd.f32 %v9270_v38, %v5002_v31  ;;  %v5005_v19 = vadd.f32 %v7039_v25, %v4731_v7  ;;  %5191 = vrot.lane.b32.xlu1 %v5040_v49, %s7097_s21  ;;  %v9550_v47 = vmul.f32 %v5071_v51, %v1206_v12  ;;  %v5074_v10 = vadd.f32 1.0, %v5042_v11  ;;  %v4695_v12 = vpop.f32.mrf.mxu0  ;;  %v10101_v0 = vld [vmem:[#allocation32_spill] sm:$0xff] }
 0x317   : > { %v4949_v39 = vpop.f32.mrf.mxu1  ;;  %v4186_v15 = vadd.f32 %v10099_v13, %v10098_v26  ;;  %v4732_v42 = vadd.f32 %v4685_v3, %v4458_v41  ;;  %v1176_v7 = vsub.f32 %v7084_v58, %v9205_v50  ;;  %v1211_v24 = vmul.f32 %v9272_v44, %v1177_v21  ;;  %v7087_v13 = vld [vmem:[%s7164_s14 + $0xf8] sm:$0xff] }
 0x318   : > { %v5044_v57 = vadd.f32 %v9270_v38, %v5005_v19  ;;  %v5004_v40 = vadd.f32 %v4949_v39, %v4730_v53  ;;  %5193 = vrot.lane.b32.xlu0 %v5041_v48, %s7097_s21  ;;  %v5073_v49 = vadd.f32 1.0, %v5041_v48  ;;  %v9559_v1 = vmul.f32 %v5074_v10, %v1209_v18 }
 0x319   : > { %v7042_v37 = vpop.f32.mrf.mxu1  ;;  %v4460_v54 = vadd.f32 %v10100_v17, %v4186_v15  ;;  %v4735_v3 = vadd.f32 %v6965_v6, %v10101_v0  ;;  %v1210_v25 = vmul.f32 %v9272_v44, %v1176_v7  ;;  %v1179_v9 = vsub.f32 %v7085_v16, %v9205_v50 }
 0x31a   : > { %v5043_v46 = vadd.f32 %v9270_v38, %v5004_v40  ;;  %v5007_v33 = vadd.f32 %v7042_v37, %v4733_v36  ;;  %5195 = vrot.lane.b32.xlu1 %v5042_v11, %s7097_s21  ;;  %v9568_v31 = vmul.f32 %v5073_v49, %v1208_v23  ;;  %v5076_v51 = vadd.f32 1.0, %v5044_v57  ;;  %v7086_v36 = vld [vmem:[%s7164_s14 + $0xe0] sm:$0xff] }
 0x31b   : > { %v4959_v53 = vpop.f32.mrf.mxu1  ;;  %v4734_v10 = vadd.f32 %v4695_v12, %v4460_v54  ;;  %v1178_v6 = vsub.f32 %v7086_v36, %v9205_v50  ;;  %v1213_v39 = vmul.f32 %v9272_v44, %v1179_v9  ;;  %v1181_v15 = vsub.f32 %v7087_v13, %v9205_v50 }
 0x31c   : > { %v5046_v18 = vadd.f32 %v9270_v38, %v5007_v33  ;;  %v5006_v48 = vadd.f32 %v4959_v53, %v4732_v42  ;;  %5197 = vrot.lane.b32.xlu0 %v5043_v46, %s7097_s21  ;;  %v5075_v11 = vadd.f32 1.0, %v5043_v46  ;;  %v9577_v19 = vmul.f32 %v5076_v51, %v1211_v24  ;;  %v7088_v24 = vld [vmem:[%s7164_s14 + $0xf0] sm:$0xff] }
 0x31d   : > { %v7045_v41 = vpop.f32.mrf.mxu1  ;;  %v1212_v26 = vmul.f32 %v9272_v44, %v1178_v6  ;;  %v1215_v51 = vmul.f32 %v9272_v44, %v1181_v15 }
 0x31e   : > { %v5045_v23 = vadd.f32 %v9270_v38, %v5006_v48  ;;  %v5009_v29 = vadd.f32 %v7045_v41, %v4735_v3  ;;  %5199 = vrot.lane.b32.xlu1 %v5044_v57, %s7097_s21  ;;  %v9584_v21 = vmul.f32 %v5075_v11, %v1210_v25  ;;  %v5078_v40 = vadd.f32 1.0, %v5046_v18 }
 0x31f   : > { %v4969_v49 = vpop.f32.mrf.mxu1  ;;  %v1180_v57 = vsub.f32 %v7088_v24, %v9205_v50 }
 0x320   : > { %v5048_v42 = vadd.f32 %v9270_v38, %v5009_v29  ;;  %v5008_v37 = vadd.f32 %v4969_v49, %v4734_v10  ;;  %5201 = vrot.lane.b32.xlu0 %v5045_v23, %s7097_s21  ;;  %v5077_v58 = vadd.f32 1.0, %v5045_v23  ;;  %v9591_v7 = vmul.f32 %v5078_v40, %v1213_v39 }
 0x321   : > { %v1214_v54 = vmul.f32 %v9272_v44, %v1180_v57 }
 0x322   : > { %v5047_v12 = vadd.f32 %v9270_v38, %v5008_v37  ;;  %5203 = vrot.lane.b32.xlu1 %v5046_v18, %s7097_s21  ;;  %v9597_v46 = vmul.f32 %v5077_v58, %v1212_v26  ;;  %v5080_v33 = vadd.f32 1.0, %v5048_v42 }
 0x324   : > { %5205 = vrot.lane.b32.xlu0 %v5047_v12, %s7097_s21  ;;  %v5079_v17 = vadd.f32 1.0, %v5047_v12  ;;  %v9602_v0 = vmul.f32 %v5080_v33, %v1215_v51 }
 0x326   : > { %5207 = vrot.lane.b32.xlu1 %v5048_v42, %s7097_s21  ;;  %v9605_v3 = vmul.f32 %v5079_v17, %v1214_v54 }
 0x358   : > { %v5148_v50 = vpop.permute.xlu0 %5147 }
 0x359   : > { %v5242_v38 = vadd.f32 %v5148_v50, %v9302_v30 }
 0x35b   : > { %5274 = vst.msk [vmem:[%s9611_s23 + $0x8] sm:$0xff] %vm335_vm0, %v5242_v38 }
 0x35c   : > { %v5146_v44 = vpop.permute.xlu0 %5145  ;;  %v5152_v53 = vpop.permute.xlu1 %5151 }
 0x35d   : > { %v5241_v25 = vadd.f32 %v5146_v44, %v9315_v28  ;;  %v5244_v16 = vadd.f32 %v5152_v53, %v9324_v56 }
 0x35f   : > { %5273 = vst.msk [vmem:[%s9611_s23] sm:$0xff] %vm335_vm0, %v5241_v25  ;;  %5276 = vst.msk [vmem:[%s9611_s23 + $0x18] sm:$0xff] %vm335_vm0, %v5244_v16 }
 0x360   : > { %v5150_v9 = vpop.permute.xlu1 %5149 }
 0x361   : > { %v5243_v18 = vadd.f32 %v5150_v9, %v9336_v20 }
 0x362   : > { %v5154_v48 = vpop.permute.xlu0 %5153 }
 0x363   : > { %5275 = vst.msk [vmem:[%s9611_s23 + $0x10] sm:$0xff] %vm335_vm0, %v5243_v18  ;;  %v5245_v30 = vadd.f32 %v5154_v48, %v9358_v22 }
 0x364   : > { %v5156_v11 = vpop.permute.xlu1 %5155 }
 0x365   : > { %5277 = vst.msk [vmem:[%s9611_s23 + $0x20] sm:$0xff] %vm335_vm0, %v5245_v30  ;;  %v5246_v28 = vadd.f32 %v5156_v11, %v9346_v62 }
 0x366   : > { %v5158_v56 = vpop.permute.xlu0 %5157 }
 0x367   : > { %5278 = vst.msk [vmem:[%s9611_s23 + $0x28] sm:$0xff] %vm335_vm0, %v5246_v28  ;;  %v5247_v10 = vadd.f32 %v5158_v56, %v9380_v55 }
 0x368   : > { %v5160_v41 = vpop.permute.xlu1 %5159 }
 0x369   : > { %5279 = vst.msk [vmem:[%s9611_s23 + $0x30] sm:$0xff] %vm335_vm0, %v5247_v10  ;;  %v5248_v20 = vadd.f32 %v5160_v41, %v9368_v61 }
 0x36a   : > { %v5162_v36 = vpop.permute.xlu0 %5161 }
 0x36b   : > { %5280 = vst.msk [vmem:[%s9611_s23 + $0x38] sm:$0xff] %vm335_vm0, %v5248_v20  ;;  %v5249_v22 = vadd.f32 %v5162_v36, %v9402_v27 }
 0x36c   : > { %v5164_v6 = vpop.permute.xlu1 %5163 }
 0x36d   : > { %5281 = vst.msk [vmem:[%s9611_s23 + $0x40] sm:$0xff] %vm335_vm0, %v5249_v22  ;;  %v5250_v62 = vadd.f32 %v5164_v6, %v9390_v4 }
 0x36e   : > { %v5166_v39 = vpop.permute.xlu0 %5165 }
 0x36f   : > { %5282 = vst.msk [vmem:[%s9611_s23 + $0x48] sm:$0xff] %vm335_vm0, %v5250_v62  ;;  %v5251_v55 = vadd.f32 %v5166_v39, %v9424_v43 }
 0x370   : > { %v5168_v23 = vpop.permute.xlu1 %5167 }
 0x371   : > { %5283 = vst.msk [vmem:[%s9611_s23 + $0x50] sm:$0xff] %vm335_vm0, %v5251_v55  ;;  %v5252_v61 = vadd.f32 %v5168_v23, %v9412_v8 }
 0x372   : > { %v5170_v29 = vpop.permute.xlu0 %5169 }
 0x373   : > { %5284 = vst.msk [vmem:[%s9611_s23 + $0x58] sm:$0xff] %vm335_vm0, %v5252_v61  ;;  %v5253_v27 = vadd.f32 %v5170_v29, %v9446_v52 }
 0x374   : > { %v5172_v40 = vpop.permute.xlu1 %5171 }
 0x375   : > { %5285 = vst.msk [vmem:[%s9611_s23 + $0x60] sm:$0xff] %vm335_vm0, %v5253_v27  ;;  %v5254_v4 = vadd.f32 %v5172_v40, %v9434_v60 }
 0x376   : > { %v5174_v49 = vpop.permute.xlu0 %5173 }
 0x377   : > { %5286 = vst.msk [vmem:[%s9611_s23 + $0x68] sm:$0xff] %vm335_vm0, %v5254_v4  ;;  %v5255_v43 = vadd.f32 %v5174_v49, %v9468_v14 }
 0x378   : > { %v5176_v26 = vpop.permute.xlu1 %5175 }
 0x379   : > { %5287 = vst.msk [vmem:[%s9611_s23 + $0x70] sm:$0xff] %vm335_vm0, %v5255_v43  ;;  %v5256_v8 = vadd.f32 %v5176_v26, %v9456_v45 }
 0x37a   : > { %v5178_v13 = vpop.permute.xlu0 %5177 }
 0x37b   : > { %5288 = vst.msk [vmem:[%s9611_s23 + $0x78] sm:$0xff] %vm335_vm0, %v5256_v8  ;;  %v5257_v52 = vadd.f32 %v5178_v13, %v9490_v34 }
 0x37c   : > { %v5180_v15 = vpop.permute.xlu1 %5179 }
 0x37d   : > { %5289 = vst.msk [vmem:[%s9611_s23 + $0x80] sm:$0xff] %vm335_vm0, %v5257_v52  ;;  %v5258_v60 = vadd.f32 %v5180_v15, %v9478_v63 }
 0x37e   : > { %v5182_v42 = vpop.permute.xlu0 %5181 }
 0x37f   : > { %5290 = vst.msk [vmem:[%s9611_s23 + $0x88] sm:$0xff] %vm335_vm0, %v5258_v60  ;;  %v5259_v14 = vadd.f32 %v5182_v42, %v9510_v32 }
 0x380   : > { %v5184_v37 = vpop.permute.xlu1 %5183 }
 0x381   : > { %5291 = vst.msk [vmem:[%s9611_s23 + $0x90] sm:$0xff] %vm335_vm0, %v5259_v14  ;;  %v5260_v45 = vadd.f32 %v5184_v37, %v9500_v2 }
 0x382   : > { %v5186_v58 = vpop.permute.xlu0 %5185 }
 0x383   : > { %5292 = vst.msk [vmem:[%s9611_s23 + $0x98] sm:$0xff] %vm335_vm0, %v5260_v45  ;;  %v5261_v34 = vadd.f32 %v5186_v58, %v9530_v35 }
 0x384   : > { %v5188_v24 = vpop.permute.xlu1 %5187 }
 0x385   : > { %5293 = vst.msk [vmem:[%s9611_s23 + $0xa0] sm:$0xff] %vm335_vm0, %v5261_v34  ;;  %v5262_v63 = vadd.f32 %v5188_v24, %v9520_v59 }
 0x386   : > { %v5190_v57 = vpop.permute.xlu0 %5189 }
 0x387   : > { %5294 = vst.msk [vmem:[%s9611_s23 + $0xa8] sm:$0xff] %vm335_vm0, %v5262_v63  ;;  %v5263_v32 = vadd.f32 %v5190_v57, %v9550_v47 }
 0x388   : > { %v5192_v12 = vpop.permute.xlu1 %5191 }
 0x389   : > { %5295 = vst.msk [vmem:[%s9611_s23 + $0xb0] sm:$0xff] %vm335_vm0, %v5263_v32  ;;  %v5264_v2 = vadd.f32 %v5192_v12, %v9540_v5 }
 0x38a   : > { %v5194_v33 = vpop.permute.xlu0 %5193 }
 0x38b   : > { %5296 = vst.msk [vmem:[%s9611_s23 + $0xb8] sm:$0xff] %vm335_vm0, %v5264_v2  ;;  %v5265_v35 = vadd.f32 %v5194_v33, %v9568_v31 }
 0x38c   : > { %v5196_v51 = vpop.permute.xlu1 %5195 }
 0x38d   : > { %5297 = vst.msk [vmem:[%s9611_s23 + $0xc0] sm:$0xff] %vm335_vm0, %v5265_v35  ;;  %v5266_v59 = vadd.f32 %v5196_v51, %v9559_v1 }
 0x38e   : > { %v5198_v17 = vpop.permute.xlu0 %5197 }
 0x38f   : > { %5298 = vst.msk [vmem:[%s9611_s23 + $0xc8] sm:$0xff] %vm335_vm0, %v5266_v59  ;;  %v5267_v47 = vadd.f32 %v5198_v17, %v9584_v21 }
 0x390   : > { %v5200_v5 = vpop.permute.xlu1 %5199 }
 0x391   : > { %5299 = vst.msk [vmem:[%s9611_s23 + $0xd0] sm:$0xff] %vm335_vm0, %v5267_v47  ;;  %v5268_v54 = vadd.f32 %v5200_v5, %v9577_v19 }
 0x392   : > { %v5202_v50 = vpop.permute.xlu0 %5201 }
 0x393   : > { %5300 = vst.msk [vmem:[%s9611_s23 + $0xd8] sm:$0xff] %vm335_vm0, %v5268_v54  ;;  %v5269_v31 = vadd.f32 %v5202_v50, %v9597_v46 }
 0x394   : > { %v5204_v38 = vpop.permute.xlu1 %5203 }
 0x395   : > { %5301 = vst.msk [vmem:[%s9611_s23 + $0xe0] sm:$0xff] %vm335_vm0, %v5269_v31  ;;  %v5270_v1 = vadd.f32 %v5204_v38, %v9591_v7 }
 0x396   : > { %v5206_v44 = vpop.permute.xlu0 %5205 }
 0x397   : > { %5302 = vst.msk [vmem:[%s9611_s23 + $0xe8] sm:$0xff] %vm335_vm0, %v5270_v1  ;;  %v5271_v21 = vadd.f32 %v5206_v44, %v9605_v3 }
 0x398   : > { %v5208_v53 = vpop.permute.xlu1 %5207 }
 0x399   : > { %5303 = vst.msk [vmem:[%s9611_s23 + $0xf0] sm:$0xff] %vm335_vm0, %v5271_v21  ;;  %v5272_v19 = vadd.f32 %v5208_v53, %v9602_v0 }
 0x39b   : > { %5304 = vst.msk [vmem:[%s9611_s23 + $0xf8] sm:$0xff] %vm335_vm0, %v5272_v19 }
 0x39c PF: > { %s17_s24 = sadd.s32 1, %s7095_s24  }
 0x39d   : > { %p14_p4 = scmp.ge.s32.totalorder %s17_s24, 4  }
 0x39f   :  { %16 = sbr.rel (!%p14_p4) target bundleno = 1 (0x1), region = 89 }

</bundles_post_ra>
